<compile_context>
chip_gen: v7x
topology: tpu7x:2x2x1
jax: 0.10.0
libtpu: 0.0.40
codegen_flags: <defaults>
</compile_context>

<pallas_src>
import functools

import jax
import jax.numpy as jnp
from jax.experimental import pallas as pl
from jax.experimental.pallas import tpu as pltpu


# ----------------------------------------------------------------------------
# Pallas kernel: whole StackBlock (all BaseBlocks fused), one batch tile / step
# ----------------------------------------------------------------------------
def _stack_block_kernel(*refs, nblk, cins, cout, kt, kf, dil, pf, pt, f, t,
                        cmax):
    x_ref = refs[0]                         # (1, cin0, F, T) unpadded input
    blk_refs = refs[1:1 + 4 * nblk]         # per block: wt, wf, wps(SMEM), shift(SMEM)
    o_ref = refs[1 + 4 * nblk]              # (1, cout, F, T)
    act_ref = refs[2 + 4 * nblk]            # (1, cmax, F+2pf, T+2pt) padded scratch

    # Zero only the conv halo strips (the center is always fully overwritten
    # before being read, so the interior never needs re-initialization).
    if pf > 0:
        zrow = jnp.zeros((1, cmax, pf, t + 2 * pt), act_ref.dtype)
        act_ref[:, :, :pf, :] = zrow
        act_ref[:, :, pf + f:, :] = zrow
    if pt > 0:
        zcol = jnp.zeros((1, cmax, f + 2 * pf, pt), act_ref.dtype)
        act_ref[:, :, :, :pt] = zcol
        act_ref[:, :, :, pt + t:] = zcol

    # Pad the input into the shared activation scratch (no wrapper jnp.pad,
    # no extra HBM pass over a padded copy of the input).
    c0 = cins[0]
    act_ref[:, :c0, pf:pf + f, pt:pt + t] = x_ref[...].astype(act_ref.dtype)

    for b in range(nblk):
        wt_ref, wf_ref, wps_ref, sh_ref = blk_refs[4 * b:4 * b + 4]
        cin = cins[b]
        residual = (cin == cout)            # static per block
        last = (b == nblk - 1)

        # Center view of the block input, read once: used as the residual and
        # reused for the center taps of both depthwise convs.
        center = act_ref[:, :cin, pf:pf + f, pt:pt + t]      # (1, cin, f, t)

        # Depthwise ConvT (dilated, along T/lanes) + ConvF (along F/sublanes),
        # accumulated into a single f32 value.  Weight broadcast along T is
        # done here (compact weights in VMEM, no pre-broadcast DMA).
        acc = jnp.zeros((1, cin, f, t), jnp.float32)
        for j in range(kt):
            sl = center if j * dil == pt else \
                act_ref[:, :cin, pf:pf + f, j * dil:j * dil + t]
            acc = acc + wt_ref[j][None] * sl
        for i in range(kf):
            sl = center if i == pf else \
                act_ref[:, :cin, i:i + f, pt:pt + t]
            acc = acc + wf_ref[i][None] * sl

        # pconv (1x1, BN scale folded into wps) + BN shift, unrolled over the
        # tiny channel dims on the VPU (no MXU), then one channel-stacked
        # activation + store (denser stores than per-channel writes).
        outs = []
        for co in range(cout):
            y = acc[:, 0] * wps_ref[co, 0]
            for ci in range(1, cin):
                y = y + acc[:, ci] * wps_ref[co, ci]
            outs.append(y + sh_ref[co])
        y = jnp.stack(outs, axis=1)                     # (1, cout, f, t)
        y = y * jax.nn.sigmoid(y)                       # SiLU (dropout = identity)
        if residual:
            y = y + center
        y = jnp.maximum(y, 0.0)                         # ReLU
        if last:
            o_ref[...] = y.astype(o_ref.dtype)
        else:
            act_ref[:, :cout, pf:pf + f, pt:pt + t] = y


# ----------------------------------------------------------------------------
# JAX glue: parameter prep (BN/group folding) + single pallas_call per StackBlock
# ----------------------------------------------------------------------------
def _prep_block_params(p, fdim):
    """Fold inference BN + the freq-group lookup into compact kernel weights."""
    w_t = p["w_t"][:, 0, 0, :]                    # (cin*ng, kt)
    w_f = p["w_f"][:, 0, :, 0]                    # (cin, kf)
    w_p = p["w_p"][:, :, 0, 0]                    # (cout, cin)
    cout, cin = w_p.shape
    kt, kf = w_t.shape[1], w_f.shape[1]
    ng = w_t.shape[0] // cin

    # ConvT depthwise weight per (tap, channel, freq row): the PyTorch
    # reshape/group trick selects row c*ng + f // (F//ng).
    grp = jnp.arange(fdim) // (fdim // ng)                    # (F,)
    ch_idx = jnp.arange(cin)[:, None] * ng + grp[None, :]     # (cin, F)
    wt = jnp.transpose(w_t[ch_idx], (2, 0, 1))[..., None]     # (kt, cin, F, 1)

    # ConvF depthwise weight, broadcast along F only (tiny array).
    wf = jnp.broadcast_to(jnp.transpose(w_f)[:, :, None, None],
                          (kf, cin, fdim, 1))                 # (kf, cin, F, 1)

    # Inference BN folded: scale into the pconv weight, shift kept as a scalar add.
    eps = 1e-5
    inv_std = 1.0 / jnp.sqrt(p["rvar"] + eps)
    scale = p["gamma"] * inv_std                              # (cout,)
    wps = w_p * scale[:, None]                                # (cout, cin)
    shift = p["beta"] - p["rmean"] * scale                    # (cout,)
    return wt, wf, wps, shift, cin, cout, kt, kf


def stack_block_forward(x_nchw, blocks_params, *, kernel_size, padding, idx):
    """StackBlock forward.  x_nchw: (N, C, F, T) -> (N, Cout, F, T)."""
    n, c0, fdim, tdim = x_nchw.shape
    kf_k, kt_k = kernel_size[0], kernel_size[1]
    dil = 2 ** idx
    pt = (kt_k - 1) * dil // 2
    pf = padding
    assert 2 * pf == kf_k - 1, "ConvF must be 'same' so residual/output shapes match"

    inputs = [x_nchw]
    in_specs = [pl.BlockSpec((1, c0, fdim, tdim), lambda nb: (nb, 0, 0, 0))]
    cins, cout = [], None
    for p in blocks_params:
        wt, wf, wps, shift, cin, cout_b, kt_b, kf_b = _prep_block_params(p, fdim)
        assert kt_b == kt_k and kf_b == kf_k
        cins.append(cin)
        cout = cout_b
        inputs += [wt, wf, wps, shift]
        in_specs += [
            pl.BlockSpec(wt.shape, lambda nb: (0, 0, 0, 0)),
            pl.BlockSpec(wf.shape, lambda nb: (0, 0, 0, 0)),
            pl.BlockSpec(wps.shape, lambda nb: (0, 0),
                         memory_space=pltpu.MemorySpace.SMEM),
            pl.BlockSpec(shift.shape, lambda nb: (0,),
                         memory_space=pltpu.MemorySpace.SMEM),
        ]

    nblk = len(blocks_params)
    cmax = max([c0] + [cout])
    kernel = functools.partial(
        _stack_block_kernel, nblk=nblk, cins=tuple(cins), cout=cout,
        kt=kt_k, kf=kf_k, dil=dil, pf=pf, pt=pt, f=fdim, t=tdim, cmax=cmax)

    return pl.pallas_call(
        kernel,
        out_shape=jax.ShapeDtypeStruct((n, cout, fdim, tdim), jnp.float32),
        grid_spec=pltpu.PrefetchScalarGridSpec(
            num_scalar_prefetch=0,
            grid=(n,),
            in_specs=in_specs,
            out_specs=pl.BlockSpec((1, cout, fdim, tdim),
                                   lambda nb: (nb, 0, 0, 0)),
            scratch_shapes=[pltpu.VMEM(
                (1, cmax, fdim + 2 * pf, tdim + 2 * pt), jnp.float32)]),
        compiler_params=pltpu.CompilerParams(
            dimension_semantics=("parallel",),
            vmem_limit_bytes=32 * 1024 * 1024),
    )(*inputs)


# ----------------------------------------------------------------------------
# Deterministic parameter init (PyTorch weight shapes)
# ----------------------------------------------------------------------------
def init_base_block(key, cin, cout, kernel_size, num_groups):
    kf_k, kt_k = kernel_size[0], kernel_size[1]
    ng = num_groups if num_groups else 1
    k1, k2, k3, k4, k5 = jax.random.split(key, 5)
    return dict(
        w_t=0.3 * jax.random.normal(k1, (cin * ng, 1, 1, kt_k), jnp.float32),
        w_f=0.3 * jax.random.normal(k2, (cin, 1, kf_k, 1), jnp.float32),
        w_p=(1.0 / jnp.sqrt(cin)) *
            jax.random.normal(k3, (cout, cin, 1, 1), jnp.float32),
        gamma=1.0 + 0.1 * jax.random.normal(k4, (cout,), jnp.float32),
        beta=0.1 * jax.random.normal(k5, (cout,), jnp.float32),
        rmean=jnp.zeros((cout,), jnp.float32),
        rvar=jnp.ones((cout,), jnp.float32),
    )


# ----------------------------------------------------------------------------
# Pure-XLA reference (NCHW, lax convs) for validation
# ----------------------------------------------------------------------------
def _base_block_ref_nchw(x, p, *, kernel_size, dilation, padding, num_groups):
    n, c, f, t = x.shape
    kf_k, kt_k = kernel_size[0], kernel_size[1]
    ng = num_groups if num_groups else 1
    pt = (kt_k - 1) * dilation // 2
    xr = x.reshape(n, c * ng, f // ng, t)
    xt = jax.lax.conv_general_dilated(
        xr, p["w_t"], window_strides=(1, 1), padding=((0, 0), (pt, pt)),
        rhs_dilation=(1, dilation), dimension_numbers=("NCHW", "OIHW", "NCHW"),
        feature_group_count=c * ng).reshape(n, c, f, t)
    xf = jax.lax.conv_general_dilated(
        x, p["w_f"], window_strides=(1, 1), padding=((padding, padding), (0, 0)),
        dimension_numbers=("NCHW", "OIHW", "NCHW"), feature_group_count=c)
    y = jax.lax.conv_general_dilated(
        xt + xf, p["w_p"], window_strides=(1, 1), padding=((0, 0), (0, 0)),
        dimension_numbers=("NCHW", "OIHW", "NCHW"))
    eps = 1e-5
    inv_std = 1.0 / jnp.sqrt(p["rvar"] + eps)
    y = y * (p["gamma"] * inv_std)[None, :, None, None] \
        + (p["beta"] - p["rmean"] * p["gamma"] * inv_std)[None, :, None, None]
    y = y * jax.nn.sigmoid(y)
    if c == p["w_p"].shape[0]:
        y = y + x
    return jnp.maximum(y, 0.0)


def stack_block_ref(x_nchw, blocks_params, *, kernel_size, padding,
                    num_groups, idx):
    dilation = 2 ** idx
    y = x_nchw
    for p in blocks_params:
        y = _base_block_ref_nchw(y, p, kernel_size=kernel_size,
                                 dilation=dilation, padding=padding,
                                 num_groups=num_groups)
    return y


# ----------------------------------------------------------------------------
if __name__ == "__main__":
    N, C_IN, C_OUT = 2, 4, 8
    F, T = 16, 16
    KERNEL = (3, 3)          # (freq kernel, time kernel)
    PADDING = 1              # "same" for the freq-axis depthwise conv
    NUM_GROUPS = 2
    NUM_BLKS = 2
    IDX = 1                  # dilation = 2**idx = 2
    STRIDE = 1               # stride>1 branch (AdaptiveAvgPool) not exercised

    key = jax.random.PRNGKey(0)
    keys = jax.random.split(key, NUM_BLKS + 1)
    x = jax.random.normal(keys[0], (N, C_IN, F, T), jnp.float32)

    params = []
    cin = C_IN
    for i in range(NUM_BLKS):
        params.append(init_base_block(keys[i + 1], cin, C_OUT, KERNEL, NUM_GROUPS))
        cin = C_OUT

    out = stack_block_forward(x, params, kernel_size=KERNEL,
                              padding=PADDING, idx=IDX)
    out = jax.block_until_ready(out)
    assert out.shape == (N, C_OUT, F, T)

    ref = stack_block_ref(x, params, kernel_size=KERNEL, padding=PADDING,
                          num_groups=NUM_GROUPS, idx=IDX)
    max_err = float(jnp.max(jnp.abs(out - ref)))
    assert jnp.allclose(out, ref, rtol=1e-3, atol=1e-3), f"max_err={max_err}"

    print("KERNEL_OK")
</pallas_src>

<mosaic_0001>
module attributes {stable_mosaic.version = 11 : i64} {
  func.func @_stack_block_kernel(%arg0: i32, %arg1: memref<1x4x16x16xf32, #tpu.memory_space<vmem>>, %arg2: memref<3x4x16x1xf32, #tpu.memory_space<vmem>>, %arg3: memref<3x4x16x1xf32, #tpu.memory_space<vmem>>, %arg4: memref<8x4xf32, #tpu.memory_space<smem>>, %arg5: memref<8xf32, #tpu.memory_space<smem>>, %arg6: memref<3x8x16x1xf32, #tpu.memory_space<vmem>>, %arg7: memref<3x8x16x1xf32, #tpu.memory_space<vmem>>, %arg8: memref<8x8xf32, #tpu.memory_space<smem>>, %arg9: memref<8xf32, #tpu.memory_space<smem>>, %arg10: memref<1x8x16x16xf32, #tpu.memory_space<vmem>>, %arg11: memref<1x8x18x20xf32, #tpu.memory_space<vmem>>) attributes {dimension_semantics = [#tpu.dimension_semantics<parallel>], iteration_bounds = array<i64: 2>, scalar_prefetch = 0 : i64, scratch_operands = 1 : i64, tpu.core_type = #tpu.core_type<tc>, window_params = [{transform_indices = @transform_0, window_bounds = array<i64: 1, 4, 16, 16>}, {pipeline_mode = #tpu.pipeline_mode<synchronous>, transform_indices = @transform_1, window_bounds = array<i64: 3, 4, 16, 1>}, {pipeline_mode = #tpu.pipeline_mode<synchronous>, transform_indices = @transform_2, window_bounds = array<i64: 3, 4, 16, 1>}, {transform_indices = @transform_3, window_bounds = array<i64: 8, 4>}, {transform_indices = @transform_4, window_bounds = array<i64: 8>}, {pipeline_mode = #tpu.pipeline_mode<synchronous>, transform_indices = @transform_5, window_bounds = array<i64: 3, 8, 16, 1>}, {pipeline_mode = #tpu.pipeline_mode<synchronous>, transform_indices = @transform_6, window_bounds = array<i64: 3, 8, 16, 1>}, {transform_indices = @transform_7, window_bounds = array<i64: 8, 8>}, {transform_indices = @transform_8, window_bounds = array<i64: 8>}, {transform_indices = @transform_9, window_bounds = array<i64: 1, 8, 16, 16>}]} {
    %cst = arith.constant 0.000000e+00 : f32
    %0 = vector.broadcast %cst : f32 to vector<1x8x1x20xf32>
    %c0 = arith.constant 0 : index
    %c0_0 = arith.constant 0 : index
    %c0_1 = arith.constant 0 : index
    %c0_2 = arith.constant 0 : index
    %1 = vector.load %arg11[%c0, %c0_0, %c0_1, %c0_2] : memref<1x8x18x20xf32, #tpu.memory_space<vmem>>, vector<1x8x1x20xf32>
    tpu.vector_store %arg11[%c0, %c0_0, %c0_1, %c0_2], %0 {strides = array<i32>} : memref<1x8x18x20xf32, #tpu.memory_space<vmem>>, vector<1x8x1x20xf32>,
    %c0_3 = arith.constant 0 : index
    %c0_4 = arith.constant 0 : index
    %c17 = arith.constant 17 : index
    %c0_5 = arith.constant 0 : index
    %2 = vector.load %arg11[%c0_3, %c0_4, %c17, %c0_5] : memref<1x8x18x20xf32, #tpu.memory_space<vmem>>, vector<1x8x1x20xf32>
    tpu.vector_store %arg11[%c0_3, %c0_4, %c17, %c0_5], %0 {strides = array<i32>} : memref<1x8x18x20xf32, #tpu.memory_space<vmem>>, vector<1x8x1x20xf32>,
    %cst_6 = arith.constant 0.000000e+00 : f32
    %3 = vector.broadcast %cst_6 : f32 to vector<1x8x18x2xf32>
    %c0_7 = arith.constant 0 : index
    %c0_8 = arith.constant 0 : index
    %c0_9 = arith.constant 0 : index
    %c0_10 = arith.constant 0 : index
    %4 = vector.load %arg11[%c0_7, %c0_8, %c0_9, %c0_10] : memref<1x8x18x20xf32, #tpu.memory_space<vmem>>, vector<1x8x18x2xf32>
    tpu.vector_store %arg11[%c0_7, %c0_8, %c0_9, %c0_10], %3 {strides = array<i32>} : memref<1x8x18x20xf32, #tpu.memory_space<vmem>>, vector<1x8x18x2xf32>,
    %c0_11 = arith.constant 0 : index
    %c0_12 = arith.constant 0 : index
    %c0_13 = arith.constant 0 : index
    %c18 = arith.constant 18 : index
    %5 = vector.load %arg11[%c0_11, %c0_12, %c0_13, %c18] : memref<1x8x18x20xf32, #tpu.memory_space<vmem>>, vector<1x8x18x2xf32>
    tpu.vector_store %arg11[%c0_11, %c0_12, %c0_13, %c18], %3 {strides = array<i32>} : memref<1x8x18x20xf32, #tpu.memory_space<vmem>>, vector<1x8x18x2xf32>,
    %c0_14 = arith.constant 0 : index
    %c0_15 = arith.constant 0 : index
    %c0_16 = arith.constant 0 : index
    %c0_17 = arith.constant 0 : index
    %6 = vector.load %arg1[%c0_14, %c0_15, %c0_16, %c0_17] : memref<1x4x16x16xf32, #tpu.memory_space<vmem>>, vector<1x4x16x16xf32>
    %c0_18 = arith.constant 0 : index
    %c0_19 = arith.constant 0 : index
    %c1 = arith.constant 1 : index
    %c2 = arith.constant 2 : index
    %7 = vector.load %arg11[%c0_18, %c0_19, %c1, %c2] : memref<1x8x18x20xf32, #tpu.memory_space<vmem>>, vector<1x4x16x16xf32>
    tpu.vector_store %arg11[%c0_18, %c0_19, %c1, %c2], %6 {strides = array<i32>} : memref<1x8x18x20xf32, #tpu.memory_space<vmem>>, vector<1x4x16x16xf32>,
    %c0_20 = arith.constant 0 : index
    %c0_21 = arith.constant 0 : index
    %c1_22 = arith.constant 1 : index
    %c2_23 = arith.constant 2 : index
    %8 = vector.load %arg11[%c0_20, %c0_21, %c1_22, %c2_23] : memref<1x8x18x20xf32, #tpu.memory_space<vmem>>, vector<1x4x16x16xf32>
    %cst_24 = arith.constant 0.000000e+00 : f32
    %9 = vector.broadcast %cst_24 : f32 to vector<1x4x16x16xf32>
    %c0_25 = arith.constant 0 : index
    %c0_26 = arith.constant 0 : index
    %c1_27 = arith.constant 1 : index
    %c0_28 = arith.constant 0 : index
    %10 = vector.load %arg11[%c0_25, %c0_26, %c1_27, %c0_28] : memref<1x8x18x20xf32, #tpu.memory_space<vmem>>, vector<1x4x16x16xf32>
    %c0_29 = arith.constant 0 : index
    %c0_30 = arith.constant 0 : index
    %c0_31 = arith.constant 0 : index
    %c0_32 = arith.constant 0 : index
    %11 = vector.load %arg2[%c0_29, %c0_30, %c0_31, %c0_32] : memref<3x4x16x1xf32, #tpu.memory_space<vmem>>, vector<1x4x16x1xf32>
    %12 = vector.shape_cast %11 : vector<1x4x16x1xf32> to vector<4x16x1xf32>
    %13 = vector.shape_cast %12 : vector<4x16x1xf32> to vector<1x4x16x1xf32>
    %14 = vector.broadcast %13 : vector<1x4x16x1xf32> to vector<1x4x16x16xf32>
    %15 = arith.mulf %14, %10 : vector<1x4x16x16xf32>
    %16 = arith.addf %9, %15 : vector<1x4x16x16xf32>
    %c1_33 = arith.constant 1 : index
    %c0_34 = arith.constant 0 : index
    %c0_35 = arith.constant 0 : index
    %c0_36 = arith.constant 0 : index
    %17 = vector.load %arg2[%c1_33, %c0_34, %c0_35, %c0_36] : memref<3x4x16x1xf32, #tpu.memory_space<vmem>>, vector<1x4x16x1xf32>
    %18 = vector.shape_cast %17 : vector<1x4x16x1xf32> to vector<4x16x1xf32>
    %19 = vector.shape_cast %18 : vector<4x16x1xf32> to vector<1x4x16x1xf32>
    %20 = vector.broadcast %19 : vector<1x4x16x1xf32> to vector<1x4x16x16xf32>
    %21 = arith.mulf %20, %8 : vector<1x4x16x16xf32>
    %22 = arith.addf %16, %21 : vector<1x4x16x16xf32>
    %c0_37 = arith.constant 0 : index
    %c0_38 = arith.constant 0 : index
    %c1_39 = arith.constant 1 : index
    %c4 = arith.constant 4 : index
    %23 = vector.load %arg11[%c0_37, %c0_38, %c1_39, %c4] : memref<1x8x18x20xf32, #tpu.memory_space<vmem>>, vector<1x4x16x16xf32>
    %c2_40 = arith.constant 2 : index
    %c0_41 = arith.constant 0 : index
    %c0_42 = arith.constant 0 : index
    %c0_43 = arith.constant 0 : index
    %24 = vector.load %arg2[%c2_40, %c0_41, %c0_42, %c0_43] : memref<3x4x16x1xf32, #tpu.memory_space<vmem>>, vector<1x4x16x1xf32>
    %25 = vector.shape_cast %24 : vector<1x4x16x1xf32> to vector<4x16x1xf32>
    %26 = vector.shape_cast %25 : vector<4x16x1xf32> to vector<1x4x16x1xf32>
    %27 = vector.broadcast %26 : vector<1x4x16x1xf32> to vector<1x4x16x16xf32>
    %28 = arith.mulf %27, %23 : vector<1x4x16x16xf32>
    %29 = arith.addf %22, %28 : vector<1x4x16x16xf32>
    %c0_44 = arith.constant 0 : index
    %c0_45 = arith.constant 0 : index
    %c0_46 = arith.constant 0 : index
    %c2_47 = arith.constant 2 : index
    %30 = vector.load %arg11[%c0_44, %c0_45, %c0_46, %c2_47] : memref<1x8x18x20xf32, #tpu.memory_space<vmem>>, vector<1x4x16x16xf32>
    %c0_48 = arith.constant 0 : index
    %c0_49 = arith.constant 0 : index
    %c0_50 = arith.constant 0 : index
    %c0_51 = arith.constant 0 : index
    %31 = vector.load %arg3[%c0_48, %c0_49, %c0_50, %c0_51] : memref<3x4x16x1xf32, #tpu.memory_space<vmem>>, vector<1x4x16x1xf32>
    %32 = vector.shape_cast %31 : vector<1x4x16x1xf32> to vector<4x16x1xf32>
    %33 = vector.shape_cast %32 : vector<4x16x1xf32> to vector<1x4x16x1xf32>
    %34 = vector.broadcast %33 : vector<1x4x16x1xf32> to vector<1x4x16x16xf32>
    %35 = arith.mulf %34, %30 : vector<1x4x16x16xf32>
    %36 = arith.addf %29, %35 : vector<1x4x16x16xf32>
    %c1_52 = arith.constant 1 : index
    %c0_53 = arith.constant 0 : index
    %c0_54 = arith.constant 0 : index
    %c0_55 = arith.constant 0 : index
    %37 = vector.load %arg3[%c1_52, %c0_53, %c0_54, %c0_55] : memref<3x4x16x1xf32, #tpu.memory_space<vmem>>, vector<1x4x16x1xf32>
    %38 = vector.shape_cast %37 : vector<1x4x16x1xf32> to vector<4x16x1xf32>
    %39 = vector.shape_cast %38 : vector<4x16x1xf32> to vector<1x4x16x1xf32>
    %40 = vector.broadcast %39 : vector<1x4x16x1xf32> to vector<1x4x16x16xf32>
    %41 = arith.mulf %40, %8 : vector<1x4x16x16xf32>
    %42 = arith.addf %36, %41 : vector<1x4x16x16xf32>
    %c0_56 = arith.constant 0 : index
    %c0_57 = arith.constant 0 : index
    %c2_58 = arith.constant 2 : index
    %c2_59 = arith.constant 2 : index
    %43 = vector.load %arg11[%c0_56, %c0_57, %c2_58, %c2_59] : memref<1x8x18x20xf32, #tpu.memory_space<vmem>>, vector<1x4x16x16xf32>
    %c2_60 = arith.constant 2 : index
    %c0_61 = arith.constant 0 : index
    %c0_62 = arith.constant 0 : index
    %c0_63 = arith.constant 0 : index
    %44 = vector.load %arg3[%c2_60, %c0_61, %c0_62, %c0_63] : memref<3x4x16x1xf32, #tpu.memory_space<vmem>>, vector<1x4x16x1xf32>
    %45 = vector.shape_cast %44 : vector<1x4x16x1xf32> to vector<4x16x1xf32>
    %46 = vector.shape_cast %45 : vector<4x16x1xf32> to vector<1x4x16x1xf32>
    %47 = vector.broadcast %46 : vector<1x4x16x1xf32> to vector<1x4x16x16xf32>
    %48 = arith.mulf %47, %43 : vector<1x4x16x16xf32>
    %49 = arith.addf %42, %48 : vector<1x4x16x16xf32>
    %50 = vector.extract_strided_slice %49 {offsets = [0, 0, 0, 0], sizes = [1, 1, 16, 16], strides = [1, 1, 1, 1]} : vector<1x4x16x16xf32> to vector<1x1x16x16xf32>
    %51 = vector.shape_cast %50 : vector<1x1x16x16xf32> to vector<1x16x16xf32>
    %c0_64 = arith.constant 0 : index
    %c0_65 = arith.constant 0 : index
    %52 = memref.load %arg4[%c0_64, %c0_65] : memref<8x4xf32, #tpu.memory_space<smem>>
    %53 = vector.broadcast %52 : f32 to vector<1x16x16xf32>
    %54 = arith.mulf %51, %53 : vector<1x16x16xf32>
    %55 = vector.extract_strided_slice %49 {offsets = [0, 1, 0, 0], sizes = [1, 1, 16, 16], strides = [1, 1, 1, 1]} : vector<1x4x16x16xf32> to vector<1x1x16x16xf32>
    %56 = vector.shape_cast %55 : vector<1x1x16x16xf32> to vector<1x16x16xf32>
    %c0_66 = arith.constant 0 : index
    %c1_67 = arith.constant 1 : index
    %57 = memref.load %arg4[%c0_66, %c1_67] : memref<8x4xf32, #tpu.memory_space<smem>>
    %58 = vector.broadcast %57 : f32 to vector<1x16x16xf32>
    %59 = arith.mulf %56, %58 : vector<1x16x16xf32>
    %60 = arith.addf %54, %59 : vector<1x16x16xf32>
    %61 = vector.extract_strided_slice %49 {offsets = [0, 2, 0, 0], sizes = [1, 1, 16, 16], strides = [1, 1, 1, 1]} : vector<1x4x16x16xf32> to vector<1x1x16x16xf32>
    %62 = vector.shape_cast %61 : vector<1x1x16x16xf32> to vector<1x16x16xf32>
    %c0_68 = arith.constant 0 : index
    %c2_69 = arith.constant 2 : index
    %63 = memref.load %arg4[%c0_68, %c2_69] : memref<8x4xf32, #tpu.memory_space<smem>>
    %64 = vector.broadcast %63 : f32 to vector<1x16x16xf32>
    %65 = arith.mulf %62, %64 : vector<1x16x16xf32>
    %66 = arith.addf %60, %65 : vector<1x16x16xf32>
    %67 = vector.extract_strided_slice %49 {offsets = [0, 3, 0, 0], sizes = [1, 1, 16, 16], strides = [1, 1, 1, 1]} : vector<1x4x16x16xf32> to vector<1x1x16x16xf32>
    %68 = vector.shape_cast %67 : vector<1x1x16x16xf32> to vector<1x16x16xf32>
    %c0_70 = arith.constant 0 : index
    %c3 = arith.constant 3 : index
    %69 = memref.load %arg4[%c0_70, %c3] : memref<8x4xf32, #tpu.memory_space<smem>>
    %70 = vector.broadcast %69 : f32 to vector<1x16x16xf32>
    %71 = arith.mulf %68, %70 : vector<1x16x16xf32>
    %72 = arith.addf %66, %71 : vector<1x16x16xf32>
    %c0_71 = arith.constant 0 : index
    %73 = memref.load %arg5[%c0_71] : memref<8xf32, #tpu.memory_space<smem>>
    %74 = vector.broadcast %73 : f32 to vector<1x16x16xf32>
    %75 = arith.addf %72, %74 : vector<1x16x16xf32>
    %76 = vector.extract_strided_slice %49 {offsets = [0, 0, 0, 0], sizes = [1, 1, 16, 16], strides = [1, 1, 1, 1]} : vector<1x4x16x16xf32> to vector<1x1x16x16xf32>
    %77 = vector.shape_cast %76 : vector<1x1x16x16xf32> to vector<1x16x16xf32>
    %c1_72 = arith.constant 1 : index
    %c0_73 = arith.constant 0 : index
    %78 = memref.load %arg4[%c1_72, %c0_73] : memref<8x4xf32, #tpu.memory_space<smem>>
    %79 = vector.broadcast %78 : f32 to vector<1x16x16xf32>
    %80 = arith.mulf %77, %79 : vector<1x16x16xf32>
    %81 = vector.extract_strided_slice %49 {offsets = [0, 1, 0, 0], sizes = [1, 1, 16, 16], strides = [1, 1, 1, 1]} : vector<1x4x16x16xf32> to vector<1x1x16x16xf32>
    %82 = vector.shape_cast %81 : vector<1x1x16x16xf32> to vector<1x16x16xf32>
    %c1_74 = arith.constant 1 : index
    %c1_75 = arith.constant 1 : index
    %83 = memref.load %arg4[%c1_74, %c1_75] : memref<8x4xf32, #tpu.memory_space<smem>>
    %84 = vector.broadcast %83 : f32 to vector<1x16x16xf32>
    %85 = arith.mulf %82, %84 : vector<1x16x16xf32>
    %86 = arith.addf %80, %85 : vector<1x16x16xf32>
    %87 = vector.extract_strided_slice %49 {offsets = [0, 2, 0, 0], sizes = [1, 1, 16, 16], strides = [1, 1, 1, 1]} : vector<1x4x16x16xf32> to vector<1x1x16x16xf32>
    %88 = vector.shape_cast %87 : vector<1x1x16x16xf32> to vector<1x16x16xf32>
    %c1_76 = arith.constant 1 : index
    %c2_77 = arith.constant 2 : index
    %89 = memref.load %arg4[%c1_76, %c2_77] : memref<8x4xf32, #tpu.memory_space<smem>>
    %90 = vector.broadcast %89 : f32 to vector<1x16x16xf32>
    %91 = arith.mulf %88, %90 : vector<1x16x16xf32>
    %92 = arith.addf %86, %91 : vector<1x16x16xf32>
    %93 = vector.extract_strided_slice %49 {offsets = [0, 3, 0, 0], sizes = [1, 1, 16, 16], strides = [1, 1, 1, 1]} : vector<1x4x16x16xf32> to vector<1x1x16x16xf32>
    %94 = vector.shape_cast %93 : vector<1x1x16x16xf32> to vector<1x16x16xf32>
    %c1_78 = arith.constant 1 : index
    %c3_79 = arith.constant 3 : index
    %95 = memref.load %arg4[%c1_78, %c3_79] : memref<8x4xf32, #tpu.memory_space<smem>>
    %96 = vector.broadcast %95 : f32 to vector<1x16x16xf32>
    %97 = arith.mulf %94, %96 : vector<1x16x16xf32>
    %98 = arith.addf %92, %97 : vector<1x16x16xf32>
    %c1_80 = arith.constant 1 : index
    %99 = memref.load %arg5[%c1_80] : memref<8xf32, #tpu.memory_space<smem>>
    %100 = vector.broadcast %99 : f32 to vector<1x16x16xf32>
    %101 = arith.addf %98, %100 : vector<1x16x16xf32>
    %102 = vector.extract_strided_slice %49 {offsets = [0, 0, 0, 0], sizes = [1, 1, 16, 16], strides = [1, 1, 1, 1]} : vector<1x4x16x16xf32> to vector<1x1x16x16xf32>
    %103 = vector.shape_cast %102 : vector<1x1x16x16xf32> to vector<1x16x16xf32>
    %c2_81 = arith.constant 2 : index
    %c0_82 = arith.constant 0 : index
    %104 = memref.load %arg4[%c2_81, %c0_82] : memref<8x4xf32, #tpu.memory_space<smem>>
    %105 = vector.broadcast %104 : f32 to vector<1x16x16xf32>
    %106 = arith.mulf %103, %105 : vector<1x16x16xf32>
    %107 = vector.extract_strided_slice %49 {offsets = [0, 1, 0, 0], sizes = [1, 1, 16, 16], strides = [1, 1, 1, 1]} : vector<1x4x16x16xf32> to vector<1x1x16x16xf32>
    %108 = vector.shape_cast %107 : vector<1x1x16x16xf32> to vector<1x16x16xf32>
    %c2_83 = arith.constant 2 : index
    %c1_84 = arith.constant 1 : index
    %109 = memref.load %arg4[%c2_83, %c1_84] : memref<8x4xf32, #tpu.memory_space<smem>>
    %110 = vector.broadcast %109 : f32 to vector<1x16x16xf32>
    %111 = arith.mulf %108, %110 : vector<1x16x16xf32>
    %112 = arith.addf %106, %111 : vector<1x16x16xf32>
    %113 = vector.extract_strided_slice %49 {offsets = [0, 2, 0, 0], sizes = [1, 1, 16, 16], strides = [1, 1, 1, 1]} : vector<1x4x16x16xf32> to vector<1x1x16x16xf32>
    %114 = vector.shape_cast %113 : vector<1x1x16x16xf32> to vector<1x16x16xf32>
    %c2_85 = arith.constant 2 : index
    %c2_86 = arith.constant 2 : index
    %115 = memref.load %arg4[%c2_85, %c2_86] : memref<8x4xf32, #tpu.memory_space<smem>>
    %116 = vector.broadcast %115 : f32 to vector<1x16x16xf32>
    %117 = arith.mulf %114, %116 : vector<1x16x16xf32>
    %118 = arith.addf %112, %117 : vector<1x16x16xf32>
    %119 = vector.extract_strided_slice %49 {offsets = [0, 3, 0, 0], sizes = [1, 1, 16, 16], strides = [1, 1, 1, 1]} : vector<1x4x16x16xf32> to vector<1x1x16x16xf32>
    %120 = vector.shape_cast %119 : vector<1x1x16x16xf32> to vector<1x16x16xf32>
    %c2_87 = arith.constant 2 : index
    %c3_88 = arith.constant 3 : index
    %121 = memref.load %arg4[%c2_87, %c3_88] : memref<8x4xf32, #tpu.memory_space<smem>>
    %122 = vector.broadcast %121 : f32 to vector<1x16x16xf32>
    %123 = arith.mulf %120, %122 : vector<1x16x16xf32>
    %124 = arith.addf %118, %123 : vector<1x16x16xf32>
    %c2_89 = arith.constant 2 : index
    %125 = memref.load %arg5[%c2_89] : memref<8xf32, #tpu.memory_space<smem>>
    %126 = vector.broadcast %125 : f32 to vector<1x16x16xf32>
    %127 = arith.addf %124, %126 : vector<1x16x16xf32>
    %128 = vector.extract_strided_slice %49 {offsets = [0, 0, 0, 0], sizes = [1, 1, 16, 16], strides = [1, 1, 1, 1]} : vector<1x4x16x16xf32> to vector<1x1x16x16xf32>
    %129 = vector.shape_cast %128 : vector<1x1x16x16xf32> to vector<1x16x16xf32>
    %c3_90 = arith.constant 3 : index
    %c0_91 = arith.constant 0 : index
    %130 = memref.load %arg4[%c3_90, %c0_91] : memref<8x4xf32, #tpu.memory_space<smem>>
    %131 = vector.broadcast %130 : f32 to vector<1x16x16xf32>
    %132 = arith.mulf %129, %131 : vector<1x16x16xf32>
    %133 = vector.extract_strided_slice %49 {offsets = [0, 1, 0, 0], sizes = [1, 1, 16, 16], strides = [1, 1, 1, 1]} : vector<1x4x16x16xf32> to vector<1x1x16x16xf32>
    %134 = vector.shape_cast %133 : vector<1x1x16x16xf32> to vector<1x16x16xf32>
    %c3_92 = arith.constant 3 : index
    %c1_93 = arith.constant 1 : index
    %135 = memref.load %arg4[%c3_92, %c1_93] : memref<8x4xf32, #tpu.memory_space<smem>>
    %136 = vector.broadcast %135 : f32 to vector<1x16x16xf32>
    %137 = arith.mulf %134, %136 : vector<1x16x16xf32>
    %138 = arith.addf %132, %137 : vector<1x16x16xf32>
    %139 = vector.extract_strided_slice %49 {offsets = [0, 2, 0, 0], sizes = [1, 1, 16, 16], strides = [1, 1, 1, 1]} : vector<1x4x16x16xf32> to vector<1x1x16x16xf32>
    %140 = vector.shape_cast %139 : vector<1x1x16x16xf32> to vector<1x16x16xf32>
    %c3_94 = arith.constant 3 : index
    %c2_95 = arith.constant 2 : index
    %141 = memref.load %arg4[%c3_94, %c2_95] : memref<8x4xf32, #tpu.memory_space<smem>>
    %142 = vector.broadcast %141 : f32 to vector<1x16x16xf32>
    %143 = arith.mulf %140, %142 : vector<1x16x16xf32>
    %144 = arith.addf %138, %143 : vector<1x16x16xf32>
    %145 = vector.extract_strided_slice %49 {offsets = [0, 3, 0, 0], sizes = [1, 1, 16, 16], strides = [1, 1, 1, 1]} : vector<1x4x16x16xf32> to vector<1x1x16x16xf32>
    %146 = vector.shape_cast %145 : vector<1x1x16x16xf32> to vector<1x16x16xf32>
    %c3_96 = arith.constant 3 : index
    %c3_97 = arith.constant 3 : index
    %147 = memref.load %arg4[%c3_96, %c3_97] : memref<8x4xf32, #tpu.memory_space<smem>>
    %148 = vector.broadcast %147 : f32 to vector<1x16x16xf32>
    %149 = arith.mulf %146, %148 : vector<1x16x16xf32>
    %150 = arith.addf %144, %149 : vector<1x16x16xf32>
    %c3_98 = arith.constant 3 : index
    %151 = memref.load %arg5[%c3_98] : memref<8xf32, #tpu.memory_space<smem>>
    %152 = vector.broadcast %151 : f32 to vector<1x16x16xf32>
    %153 = arith.addf %150, %152 : vector<1x16x16xf32>
    %154 = vector.extract_strided_slice %49 {offsets = [0, 0, 0, 0], sizes = [1, 1, 16, 16], strides = [1, 1, 1, 1]} : vector<1x4x16x16xf32> to vector<1x1x16x16xf32>
    %155 = vector.shape_cast %154 : vector<1x1x16x16xf32> to vector<1x16x16xf32>
    %c4_99 = arith.constant 4 : index
    %c0_100 = arith.constant 0 : index
    %156 = memref.load %arg4[%c4_99, %c0_100] : memref<8x4xf32, #tpu.memory_space<smem>>
    %157 = vector.broadcast %156 : f32 to vector<1x16x16xf32>
    %158 = arith.mulf %155, %157 : vector<1x16x16xf32>
    %159 = vector.extract_strided_slice %49 {offsets = [0, 1, 0, 0], sizes = [1, 1, 16, 16], strides = [1, 1, 1, 1]} : vector<1x4x16x16xf32> to vector<1x1x16x16xf32>
    %160 = vector.shape_cast %159 : vector<1x1x16x16xf32> to vector<1x16x16xf32>
    %c4_101 = arith.constant 4 : index
    %c1_102 = arith.constant 1 : index
    %161 = memref.load %arg4[%c4_101, %c1_102] : memref<8x4xf32, #tpu.memory_space<smem>>
    %162 = vector.broadcast %161 : f32 to vector<1x16x16xf32>
    %163 = arith.mulf %160, %162 : vector<1x16x16xf32>
    %164 = arith.addf %158, %163 : vector<1x16x16xf32>
    %165 = vector.extract_strided_slice %49 {offsets = [0, 2, 0, 0], sizes = [1, 1, 16, 16], strides = [1, 1, 1, 1]} : vector<1x4x16x16xf32> to vector<1x1x16x16xf32>
    %166 = vector.shape_cast %165 : vector<1x1x16x16xf32> to vector<1x16x16xf32>
    %c4_103 = arith.constant 4 : index
    %c2_104 = arith.constant 2 : index
    %167 = memref.load %arg4[%c4_103, %c2_104] : memref<8x4xf32, #tpu.memory_space<smem>>
    %168 = vector.broadcast %167 : f32 to vector<1x16x16xf32>
    %169 = arith.mulf %166, %168 : vector<1x16x16xf32>
    %170 = arith.addf %164, %169 : vector<1x16x16xf32>
    %171 = vector.extract_strided_slice %49 {offsets = [0, 3, 0, 0], sizes = [1, 1, 16, 16], strides = [1, 1, 1, 1]} : vector<1x4x16x16xf32> to vector<1x1x16x16xf32>
    %172 = vector.shape_cast %171 : vector<1x1x16x16xf32> to vector<1x16x16xf32>
    %c4_105 = arith.constant 4 : index
    %c3_106 = arith.constant 3 : index
    %173 = memref.load %arg4[%c4_105, %c3_106] : memref<8x4xf32, #tpu.memory_space<smem>>
    %174 = vector.broadcast %173 : f32 to vector<1x16x16xf32>
    %175 = arith.mulf %172, %174 : vector<1x16x16xf32>
    %176 = arith.addf %170, %175 : vector<1x16x16xf32>
    %c4_107 = arith.constant 4 : index
    %177 = memref.load %arg5[%c4_107] : memref<8xf32, #tpu.memory_space<smem>>
    %178 = vector.broadcast %177 : f32 to vector<1x16x16xf32>
    %179 = arith.addf %176, %178 : vector<1x16x16xf32>
    %180 = vector.extract_strided_slice %49 {offsets = [0, 0, 0, 0], sizes = [1, 1, 16, 16], strides = [1, 1, 1, 1]} : vector<1x4x16x16xf32> to vector<1x1x16x16xf32>
    %181 = vector.shape_cast %180 : vector<1x1x16x16xf32> to vector<1x16x16xf32>
    %c5 = arith.constant 5 : index
    %c0_108 = arith.constant 0 : index
    %182 = memref.load %arg4[%c5, %c0_108] : memref<8x4xf32, #tpu.memory_space<smem>>
    %183 = vector.broadcast %182 : f32 to vector<1x16x16xf32>
    %184 = arith.mulf %181, %183 : vector<1x16x16xf32>
    %185 = vector.extract_strided_slice %49 {offsets = [0, 1, 0, 0], sizes = [1, 1, 16, 16], strides = [1, 1, 1, 1]} : vector<1x4x16x16xf32> to vector<1x1x16x16xf32>
    %186 = vector.shape_cast %185 : vector<1x1x16x16xf32> to vector<1x16x16xf32>
    %c5_109 = arith.constant 5 : index
    %c1_110 = arith.constant 1 : index
    %187 = memref.load %arg4[%c5_109, %c1_110] : memref<8x4xf32, #tpu.memory_space<smem>>
    %188 = vector.broadcast %187 : f32 to vector<1x16x16xf32>
    %189 = arith.mulf %186, %188 : vector<1x16x16xf32>
    %190 = arith.addf %184, %189 : vector<1x16x16xf32>
    %191 = vector.extract_strided_slice %49 {offsets = [0, 2, 0, 0], sizes = [1, 1, 16, 16], strides = [1, 1, 1, 1]} : vector<1x4x16x16xf32> to vector<1x1x16x16xf32>
    %192 = vector.shape_cast %191 : vector<1x1x16x16xf32> to vector<1x16x16xf32>
    %c5_111 = arith.constant 5 : index
    %c2_112 = arith.constant 2 : index
    %193 = memref.load %arg4[%c5_111, %c2_112] : memref<8x4xf32, #tpu.memory_space<smem>>
    %194 = vector.broadcast %193 : f32 to vector<1x16x16xf32>
    %195 = arith.mulf %192, %194 : vector<1x16x16xf32>
    %196 = arith.addf %190, %195 : vector<1x16x16xf32>
    %197 = vector.extract_strided_slice %49 {offsets = [0, 3, 0, 0], sizes = [1, 1, 16, 16], strides = [1, 1, 1, 1]} : vector<1x4x16x16xf32> to vector<1x1x16x16xf32>
    %198 = vector.shape_cast %197 : vector<1x1x16x16xf32> to vector<1x16x16xf32>
    %c5_113 = arith.constant 5 : index
    %c3_114 = arith.constant 3 : index
    %199 = memref.load %arg4[%c5_113, %c3_114] : memref<8x4xf32, #tpu.memory_space<smem>>
    %200 = vector.broadcast %199 : f32 to vector<1x16x16xf32>
    %201 = arith.mulf %198, %200 : vector<1x16x16xf32>
    %202 = arith.addf %196, %201 : vector<1x16x16xf32>
    %c5_115 = arith.constant 5 : index
    %203 = memref.load %arg5[%c5_115] : memref<8xf32, #tpu.memory_space<smem>>
    %204 = vector.broadcast %203 : f32 to vector<1x16x16xf32>
    %205 = arith.addf %202, %204 : vector<1x16x16xf32>
    %206 = vector.extract_strided_slice %49 {offsets = [0, 0, 0, 0], sizes = [1, 1, 16, 16], strides = [1, 1, 1, 1]} : vector<1x4x16x16xf32> to vector<1x1x16x16xf32>
    %207 = vector.shape_cast %206 : vector<1x1x16x16xf32> to vector<1x16x16xf32>
    %c6 = arith.constant 6 : index
    %c0_116 = arith.constant 0 : index
    %208 = memref.load %arg4[%c6, %c0_116] : memref<8x4xf32, #tpu.memory_space<smem>>
    %209 = vector.broadcast %208 : f32 to vector<1x16x16xf32>
    %210 = arith.mulf %207, %209 : vector<1x16x16xf32>
    %211 = vector.extract_strided_slice %49 {offsets = [0, 1, 0, 0], sizes = [1, 1, 16, 16], strides = [1, 1, 1, 1]} : vector<1x4x16x16xf32> to vector<1x1x16x16xf32>
    %212 = vector.shape_cast %211 : vector<1x1x16x16xf32> to vector<1x16x16xf32>
    %c6_117 = arith.constant 6 : index
    %c1_118 = arith.constant 1 : index
    %213 = memref.load %arg4[%c6_117, %c1_118] : memref<8x4xf32, #tpu.memory_space<smem>>
    %214 = vector.broadcast %213 : f32 to vector<1x16x16xf32>
    %215 = arith.mulf %212, %214 : vector<1x16x16xf32>
    %216 = arith.addf %210, %215 : vector<1x16x16xf32>
    %217 = vector.extract_strided_slice %49 {offsets = [0, 2, 0, 0], sizes = [1, 1, 16, 16], strides = [1, 1, 1, 1]} : vector<1x4x16x16xf32> to vector<1x1x16x16xf32>
    %218 = vector.shape_cast %217 : vector<1x1x16x16xf32> to vector<1x16x16xf32>
    %c6_119 = arith.constant 6 : index
    %c2_120 = arith.constant 2 : index
    %219 = memref.load %arg4[%c6_119, %c2_120] : memref<8x4xf32, #tpu.memory_space<smem>>
    %220 = vector.broadcast %219 : f32 to vector<1x16x16xf32>
    %221 = arith.mulf %218, %220 : vector<1x16x16xf32>
    %222 = arith.addf %216, %221 : vector<1x16x16xf32>
    %223 = vector.extract_strided_slice %49 {offsets = [0, 3, 0, 0], sizes = [1, 1, 16, 16], strides = [1, 1, 1, 1]} : vector<1x4x16x16xf32> to vector<1x1x16x16xf32>
    %224 = vector.shape_cast %223 : vector<1x1x16x16xf32> to vector<1x16x16xf32>
    %c6_121 = arith.constant 6 : index
    %c3_122 = arith.constant 3 : index
    %225 = memref.load %arg4[%c6_121, %c3_122] : memref<8x4xf32, #tpu.memory_space<smem>>
    %226 = vector.broadcast %225 : f32 to vector<1x16x16xf32>
    %227 = arith.mulf %224, %226 : vector<1x16x16xf32>
    %228 = arith.addf %222, %227 : vector<1x16x16xf32>
    %c6_123 = arith.constant 6 : index
    %229 = memref.load %arg5[%c6_123] : memref<8xf32, #tpu.memory_space<smem>>
    %230 = vector.broadcast %229 : f32 to vector<1x16x16xf32>
    %231 = arith.addf %228, %230 : vector<1x16x16xf32>
    %232 = vector.extract_strided_slice %49 {offsets = [0, 0, 0, 0], sizes = [1, 1, 16, 16], strides = [1, 1, 1, 1]} : vector<1x4x16x16xf32> to vector<1x1x16x16xf32>
    %233 = vector.shape_cast %232 : vector<1x1x16x16xf32> to vector<1x16x16xf32>
    %c7 = arith.constant 7 : index
    %c0_124 = arith.constant 0 : index
    %234 = memref.load %arg4[%c7, %c0_124] : memref<8x4xf32, #tpu.memory_space<smem>>
    %235 = vector.broadcast %234 : f32 to vector<1x16x16xf32>
    %236 = arith.mulf %233, %235 : vector<1x16x16xf32>
    %237 = vector.extract_strided_slice %49 {offsets = [0, 1, 0, 0], sizes = [1, 1, 16, 16], strides = [1, 1, 1, 1]} : vector<1x4x16x16xf32> to vector<1x1x16x16xf32>
    %238 = vector.shape_cast %237 : vector<1x1x16x16xf32> to vector<1x16x16xf32>
    %c7_125 = arith.constant 7 : index
    %c1_126 = arith.constant 1 : index
    %239 = memref.load %arg4[%c7_125, %c1_126] : memref<8x4xf32, #tpu.memory_space<smem>>
    %240 = vector.broadcast %239 : f32 to vector<1x16x16xf32>
    %241 = arith.mulf %238, %240 : vector<1x16x16xf32>
    %242 = arith.addf %236, %241 : vector<1x16x16xf32>
    %243 = vector.extract_strided_slice %49 {offsets = [0, 2, 0, 0], sizes = [1, 1, 16, 16], strides = [1, 1, 1, 1]} : vector<1x4x16x16xf32> to vector<1x1x16x16xf32>
    %244 = vector.shape_cast %243 : vector<1x1x16x16xf32> to vector<1x16x16xf32>
    %c7_127 = arith.constant 7 : index
    %c2_128 = arith.constant 2 : index
    %245 = memref.load %arg4[%c7_127, %c2_128] : memref<8x4xf32, #tpu.memory_space<smem>>
    %246 = vector.broadcast %245 : f32 to vector<1x16x16xf32>
    %247 = arith.mulf %244, %246 : vector<1x16x16xf32>
    %248 = arith.addf %242, %247 : vector<1x16x16xf32>
    %249 = vector.extract_strided_slice %49 {offsets = [0, 3, 0, 0], sizes = [1, 1, 16, 16], strides = [1, 1, 1, 1]} : vector<1x4x16x16xf32> to vector<1x1x16x16xf32>
    %250 = vector.shape_cast %249 : vector<1x1x16x16xf32> to vector<1x16x16xf32>
    %c7_129 = arith.constant 7 : index
    %c3_130 = arith.constant 3 : index
    %251 = memref.load %arg4[%c7_129, %c3_130] : memref<8x4xf32, #tpu.memory_space<smem>>
    %252 = vector.broadcast %251 : f32 to vector<1x16x16xf32>
    %253 = arith.mulf %250, %252 : vector<1x16x16xf32>
    %254 = arith.addf %248, %253 : vector<1x16x16xf32>
    %c7_131 = arith.constant 7 : index
    %255 = memref.load %arg5[%c7_131] : memref<8xf32, #tpu.memory_space<smem>>
    %256 = vector.broadcast %255 : f32 to vector<1x16x16xf32>
    %257 = arith.addf %254, %256 : vector<1x16x16xf32>
    %258 = vector.shape_cast %75 : vector<1x16x16xf32> to vector<1x1x16x16xf32>
    %259 = vector.shape_cast %101 : vector<1x16x16xf32> to vector<1x1x16x16xf32>
    %260 = vector.shape_cast %127 : vector<1x16x16xf32> to vector<1x1x16x16xf32>
    %261 = vector.shape_cast %153 : vector<1x16x16xf32> to vector<1x1x16x16xf32>
    %262 = vector.shape_cast %179 : vector<1x16x16xf32> to vector<1x1x16x16xf32>
    %263 = vector.shape_cast %205 : vector<1x16x16xf32> to vector<1x1x16x16xf32>
    %264 = vector.shape_cast %231 : vector<1x16x16xf32> to vector<1x1x16x16xf32>
    %265 = vector.shape_cast %257 : vector<1x16x16xf32> to vector<1x1x16x16xf32>
    %266 = tpu.concatenate %258, %259, %260, %261, %262, %263, %264, %265 in 1 : vector<1x1x16x16xf32>, vector<1x1x16x16xf32>, vector<1x1x16x16xf32>, vector<1x1x16x16xf32>, vector<1x1x16x16xf32>, vector<1x1x16x16xf32>, vector<1x1x16x16xf32>, vector<1x1x16x16xf32> -> vector<1x8x16x16xf32>
    %267 = arith.negf %266 : vector<1x8x16x16xf32>
    %268 = math.exp %267 : vector<1x8x16x16xf32>
    %cst_132 = arith.constant 1.000000e+00 : f32
    %269 = vector.broadcast %cst_132 : f32 to vector<1x8x16x16xf32>
    %270 = arith.addf %269, %268 : vector<1x8x16x16xf32>
    %271 = arith.divf %269, %270 : vector<1x8x16x16xf32>
    %272 = arith.mulf %266, %271 : vector<1x8x16x16xf32>
    %cst_133 = arith.constant 0.000000e+00 : f32
    %273 = vector.broadcast %cst_133 : f32 to vector<1x8x16x16xf32>
    %274 = arith.maximumf %272, %273 : vector<1x8x16x16xf32>
    %c0_134 = arith.constant 0 : index
    %c0_135 = arith.constant 0 : index
    %c1_136 = arith.constant 1 : index
    %c2_137 = arith.constant 2 : index
    %275 = vector.load %arg11[%c0_134, %c0_135, %c1_136, %c2_137] : memref<1x8x18x20xf32, #tpu.memory_space<vmem>>, vector<1x8x16x16xf32>
    tpu.vector_store %arg11[%c0_134, %c0_135, %c1_136, %c2_137], %274 {strides = array<i32>} : memref<1x8x18x20xf32, #tpu.memory_space<vmem>>, vector<1x8x16x16xf32>,
    %c0_138 = arith.constant 0 : index
    %c0_139 = arith.constant 0 : index
    %c1_140 = arith.constant 1 : index
    %c2_141 = arith.constant 2 : index
    %276 = vector.load %arg11[%c0_138, %c0_139, %c1_140, %c2_141] : memref<1x8x18x20xf32, #tpu.memory_space<vmem>>, vector<1x8x16x16xf32>
    %cst_142 = arith.constant 0.000000e+00 : f32
    %277 = vector.broadcast %cst_142 : f32 to vector<1x8x16x16xf32>
    %c0_143 = arith.constant 0 : index
    %c0_144 = arith.constant 0 : index
    %c1_145 = arith.constant 1 : index
    %c0_146 = arith.constant 0 : index
    %278 = vector.load %arg11[%c0_143, %c0_144, %c1_145, %c0_146] : memref<1x8x18x20xf32, #tpu.memory_space<vmem>>, vector<1x8x16x16xf32>
    %c0_147 = arith.constant 0 : index
    %c0_148 = arith.constant 0 : index
    %c0_149 = arith.constant 0 : index
    %c0_150 = arith.constant 0 : index
    %279 = vector.load %arg6[%c0_147, %c0_148, %c0_149, %c0_150] : memref<3x8x16x1xf32, #tpu.memory_space<vmem>>, vector<1x8x16x1xf32>
    %280 = vector.shape_cast %279 : vector<1x8x16x1xf32> to vector<8x16x1xf32>
    %281 = vector.shape_cast %280 : vector<8x16x1xf32> to vector<1x8x16x1xf32>
    %282 = vector.broadcast %281 : vector<1x8x16x1xf32> to vector<1x8x16x16xf32>
    %283 = arith.mulf %282, %278 : vector<1x8x16x16xf32>
    %284 = arith.addf %277, %283 : vector<1x8x16x16xf32>
    %c1_151 = arith.constant 1 : index
    %c0_152 = arith.constant 0 : index
    %c0_153 = arith.constant 0 : index
    %c0_154 = arith.constant 0 : index
    %285 = vector.load %arg6[%c1_151, %c0_152, %c0_153, %c0_154] : memref<3x8x16x1xf32, #tpu.memory_space<vmem>>, vector<1x8x16x1xf32>
    %286 = vector.shape_cast %285 : vector<1x8x16x1xf32> to vector<8x16x1xf32>
    %287 = vector.shape_cast %286 : vector<8x16x1xf32> to vector<1x8x16x1xf32>
    %288 = vector.broadcast %287 : vector<1x8x16x1xf32> to vector<1x8x16x16xf32>
    %289 = arith.mulf %288, %276 : vector<1x8x16x16xf32>
    %290 = arith.addf %284, %289 : vector<1x8x16x16xf32>
    %c0_155 = arith.constant 0 : index
    %c0_156 = arith.constant 0 : index
    %c1_157 = arith.constant 1 : index
    %c4_158 = arith.constant 4 : index
    %291 = vector.load %arg11[%c0_155, %c0_156, %c1_157, %c4_158] : memref<1x8x18x20xf32, #tpu.memory_space<vmem>>, vector<1x8x16x16xf32>
    %c2_159 = arith.constant 2 : index
    %c0_160 = arith.constant 0 : index
    %c0_161 = arith.constant 0 : index
    %c0_162 = arith.constant 0 : index
    %292 = vector.load %arg6[%c2_159, %c0_160, %c0_161, %c0_162] : memref<3x8x16x1xf32, #tpu.memory_space<vmem>>, vector<1x8x16x1xf32>
    %293 = vector.shape_cast %292 : vector<1x8x16x1xf32> to vector<8x16x1xf32>
    %294 = vector.shape_cast %293 : vector<8x16x1xf32> to vector<1x8x16x1xf32>
    %295 = vector.broadcast %294 : vector<1x8x16x1xf32> to vector<1x8x16x16xf32>
    %296 = arith.mulf %295, %291 : vector<1x8x16x16xf32>
    %297 = arith.addf %290, %296 : vector<1x8x16x16xf32>
    %c0_163 = arith.constant 0 : index
    %c0_164 = arith.constant 0 : index
    %c0_165 = arith.constant 0 : index
    %c2_166 = arith.constant 2 : index
    %298 = vector.load %arg11[%c0_163, %c0_164, %c0_165, %c2_166] : memref<1x8x18x20xf32, #tpu.memory_space<vmem>>, vector<1x8x16x16xf32>
    %c0_167 = arith.constant 0 : index
    %c0_168 = arith.constant 0 : index
    %c0_169 = arith.constant 0 : index
    %c0_170 = arith.constant 0 : index
    %299 = vector.load %arg7[%c0_167, %c0_168, %c0_169, %c0_170] : memref<3x8x16x1xf32, #tpu.memory_space<vmem>>, vector<1x8x16x1xf32>
    %300 = vector.shape_cast %299 : vector<1x8x16x1xf32> to vector<8x16x1xf32>
    %301 = vector.shape_cast %300 : vector<8x16x1xf32> to vector<1x8x16x1xf32>
    %302 = vector.broadcast %301 : vector<1x8x16x1xf32> to vector<1x8x16x16xf32>
    %303 = arith.mulf %302, %298 : vector<1x8x16x16xf32>
    %304 = arith.addf %297, %303 : vector<1x8x16x16xf32>
    %c1_171 = arith.constant 1 : index
    %c0_172 = arith.constant 0 : index
    %c0_173 = arith.constant 0 : index
    %c0_174 = arith.constant 0 : index
    %305 = vector.load %arg7[%c1_171, %c0_172, %c0_173, %c0_174] : memref<3x8x16x1xf32, #tpu.memory_space<vmem>>, vector<1x8x16x1xf32>
    %306 = vector.shape_cast %305 : vector<1x8x16x1xf32> to vector<8x16x1xf32>
    %307 = vector.shape_cast %306 : vector<8x16x1xf32> to vector<1x8x16x1xf32>
    %308 = vector.broadcast %307 : vector<1x8x16x1xf32> to vector<1x8x16x16xf32>
    %309 = arith.mulf %308, %276 : vector<1x8x16x16xf32>
    %310 = arith.addf %304, %309 : vector<1x8x16x16xf32>
    %c0_175 = arith.constant 0 : index
    %c0_176 = arith.constant 0 : index
    %c2_177 = arith.constant 2 : index
    %c2_178 = arith.constant 2 : index
    %311 = vector.load %arg11[%c0_175, %c0_176, %c2_177, %c2_178] : memref<1x8x18x20xf32, #tpu.memory_space<vmem>>, vector<1x8x16x16xf32>
    %c2_179 = arith.constant 2 : index
    %c0_180 = arith.constant 0 : index
    %c0_181 = arith.constant 0 : index
    %c0_182 = arith.constant 0 : index
    %312 = vector.load %arg7[%c2_179, %c0_180, %c0_181, %c0_182] : memref<3x8x16x1xf32, #tpu.memory_space<vmem>>, vector<1x8x16x1xf32>
    %313 = vector.shape_cast %312 : vector<1x8x16x1xf32> to vector<8x16x1xf32>
    %314 = vector.shape_cast %313 : vector<8x16x1xf32> to vector<1x8x16x1xf32>
    %315 = vector.broadcast %314 : vector<1x8x16x1xf32> to vector<1x8x16x16xf32>
    %316 = arith.mulf %315, %311 : vector<1x8x16x16xf32>
    %317 = arith.addf %310, %316 : vector<1x8x16x16xf32>
    %318 = vector.extract_strided_slice %317 {offsets = [0, 0, 0, 0], sizes = [1, 1, 16, 16], strides = [1, 1, 1, 1]} : vector<1x8x16x16xf32> to vector<1x1x16x16xf32>
    %319 = vector.shape_cast %318 : vector<1x1x16x16xf32> to vector<1x16x16xf32>
    %c0_183 = arith.constant 0 : index
    %c0_184 = arith.constant 0 : index
    %320 = memref.load %arg8[%c0_183, %c0_184] : memref<8x8xf32, #tpu.memory_space<smem>>
    %321 = vector.broadcast %320 : f32 to vector<1x16x16xf32>
    %322 = arith.mulf %319, %321 : vector<1x16x16xf32>
    %323 = vector.extract_strided_slice %317 {offsets = [0, 1, 0, 0], sizes = [1, 1, 16, 16], strides = [1, 1, 1, 1]} : vector<1x8x16x16xf32> to vector<1x1x16x16xf32>
    %324 = vector.shape_cast %323 : vector<1x1x16x16xf32> to vector<1x16x16xf32>
    %c0_185 = arith.constant 0 : index
    %c1_186 = arith.constant 1 : index
    %325 = memref.load %arg8[%c0_185, %c1_186] : memref<8x8xf32, #tpu.memory_space<smem>>
    %326 = vector.broadcast %325 : f32 to vector<1x16x16xf32>
    %327 = arith.mulf %324, %326 : vector<1x16x16xf32>
    %328 = arith.addf %322, %327 : vector<1x16x16xf32>
    %329 = vector.extract_strided_slice %317 {offsets = [0, 2, 0, 0], sizes = [1, 1, 16, 16], strides = [1, 1, 1, 1]} : vector<1x8x16x16xf32> to vector<1x1x16x16xf32>
    %330 = vector.shape_cast %329 : vector<1x1x16x16xf32> to vector<1x16x16xf32>
    %c0_187 = arith.constant 0 : index
    %c2_188 = arith.constant 2 : index
    %331 = memref.load %arg8[%c0_187, %c2_188] : memref<8x8xf32, #tpu.memory_space<smem>>
    %332 = vector.broadcast %331 : f32 to vector<1x16x16xf32>
    %333 = arith.mulf %330, %332 : vector<1x16x16xf32>
    %334 = arith.addf %328, %333 : vector<1x16x16xf32>
    %335 = vector.extract_strided_slice %317 {offsets = [0, 3, 0, 0], sizes = [1, 1, 16, 16], strides = [1, 1, 1, 1]} : vector<1x8x16x16xf32> to vector<1x1x16x16xf32>
    %336 = vector.shape_cast %335 : vector<1x1x16x16xf32> to vector<1x16x16xf32>
    %c0_189 = arith.constant 0 : index
    %c3_190 = arith.constant 3 : index
    %337 = memref.load %arg8[%c0_189, %c3_190] : memref<8x8xf32, #tpu.memory_space<smem>>
    %338 = vector.broadcast %337 : f32 to vector<1x16x16xf32>
    %339 = arith.mulf %336, %338 : vector<1x16x16xf32>
    %340 = arith.addf %334, %339 : vector<1x16x16xf32>
    %341 = vector.extract_strided_slice %317 {offsets = [0, 4, 0, 0], sizes = [1, 1, 16, 16], strides = [1, 1, 1, 1]} : vector<1x8x16x16xf32> to vector<1x1x16x16xf32>
    %342 = vector.shape_cast %341 : vector<1x1x16x16xf32> to vector<1x16x16xf32>
    %c0_191 = arith.constant 0 : index
    %c4_192 = arith.constant 4 : index
    %343 = memref.load %arg8[%c0_191, %c4_192] : memref<8x8xf32, #tpu.memory_space<smem>>
    %344 = vector.broadcast %343 : f32 to vector<1x16x16xf32>
    %345 = arith.mulf %342, %344 : vector<1x16x16xf32>
    %346 = arith.addf %340, %345 : vector<1x16x16xf32>
    %347 = vector.extract_strided_slice %317 {offsets = [0, 5, 0, 0], sizes = [1, 1, 16, 16], strides = [1, 1, 1, 1]} : vector<1x8x16x16xf32> to vector<1x1x16x16xf32>
    %348 = vector.shape_cast %347 : vector<1x1x16x16xf32> to vector<1x16x16xf32>
    %c0_193 = arith.constant 0 : index
    %c5_194 = arith.constant 5 : index
    %349 = memref.load %arg8[%c0_193, %c5_194] : memref<8x8xf32, #tpu.memory_space<smem>>
    %350 = vector.broadcast %349 : f32 to vector<1x16x16xf32>
    %351 = arith.mulf %348, %350 : vector<1x16x16xf32>
    %352 = arith.addf %346, %351 : vector<1x16x16xf32>
    %353 = vector.extract_strided_slice %317 {offsets = [0, 6, 0, 0], sizes = [1, 1, 16, 16], strides = [1, 1, 1, 1]} : vector<1x8x16x16xf32> to vector<1x1x16x16xf32>
    %354 = vector.shape_cast %353 : vector<1x1x16x16xf32> to vector<1x16x16xf32>
    %c0_195 = arith.constant 0 : index
    %c6_196 = arith.constant 6 : index
    %355 = memref.load %arg8[%c0_195, %c6_196] : memref<8x8xf32, #tpu.memory_space<smem>>
    %356 = vector.broadcast %355 : f32 to vector<1x16x16xf32>
    %357 = arith.mulf %354, %356 : vector<1x16x16xf32>
    %358 = arith.addf %352, %357 : vector<1x16x16xf32>
    %359 = vector.extract_strided_slice %317 {offsets = [0, 7, 0, 0], sizes = [1, 1, 16, 16], strides = [1, 1, 1, 1]} : vector<1x8x16x16xf32> to vector<1x1x16x16xf32>
    %360 = vector.shape_cast %359 : vector<1x1x16x16xf32> to vector<1x16x16xf32>
    %c0_197 = arith.constant 0 : index
    %c7_198 = arith.constant 7 : index
    %361 = memref.load %arg8[%c0_197, %c7_198] : memref<8x8xf32, #tpu.memory_space<smem>>
    %362 = vector.broadcast %361 : f32 to vector<1x16x16xf32>
    %363 = arith.mulf %360, %362 : vector<1x16x16xf32>
    %364 = arith.addf %358, %363 : vector<1x16x16xf32>
    %c0_199 = arith.constant 0 : index
    %365 = memref.load %arg9[%c0_199] : memref<8xf32, #tpu.memory_space<smem>>
    %366 = vector.broadcast %365 : f32 to vector<1x16x16xf32>
    %367 = arith.addf %364, %366 : vector<1x16x16xf32>
    %368 = vector.extract_strided_slice %317 {offsets = [0, 0, 0, 0], sizes = [1, 1, 16, 16], strides = [1, 1, 1, 1]} : vector<1x8x16x16xf32> to vector<1x1x16x16xf32>
    %369 = vector.shape_cast %368 : vector<1x1x16x16xf32> to vector<1x16x16xf32>
    %c1_200 = arith.constant 1 : index
    %c0_201 = arith.constant 0 : index
    %370 = memref.load %arg8[%c1_200, %c0_201] : memref<8x8xf32, #tpu.memory_space<smem>>
    %371 = vector.broadcast %370 : f32 to vector<1x16x16xf32>
    %372 = arith.mulf %369, %371 : vector<1x16x16xf32>
    %373 = vector.extract_strided_slice %317 {offsets = [0, 1, 0, 0], sizes = [1, 1, 16, 16], strides = [1, 1, 1, 1]} : vector<1x8x16x16xf32> to vector<1x1x16x16xf32>
    %374 = vector.shape_cast %373 : vector<1x1x16x16xf32> to vector<1x16x16xf32>
    %c1_202 = arith.constant 1 : index
    %c1_203 = arith.constant 1 : index
    %375 = memref.load %arg8[%c1_202, %c1_203] : memref<8x8xf32, #tpu.memory_space<smem>>
    %376 = vector.broadcast %375 : f32 to vector<1x16x16xf32>
    %377 = arith.mulf %374, %376 : vector<1x16x16xf32>
    %378 = arith.addf %372, %377 : vector<1x16x16xf32>
    %379 = vector.extract_strided_slice %317 {offsets = [0, 2, 0, 0], sizes = [1, 1, 16, 16], strides = [1, 1, 1, 1]} : vector<1x8x16x16xf32> to vector<1x1x16x16xf32>
    %380 = vector.shape_cast %379 : vector<1x1x16x16xf32> to vector<1x16x16xf32>
    %c1_204 = arith.constant 1 : index
    %c2_205 = arith.constant 2 : index
    %381 = memref.load %arg8[%c1_204, %c2_205] : memref<8x8xf32, #tpu.memory_space<smem>>
    %382 = vector.broadcast %381 : f32 to vector<1x16x16xf32>
    %383 = arith.mulf %380, %382 : vector<1x16x16xf32>
    %384 = arith.addf %378, %383 : vector<1x16x16xf32>
    %385 = vector.extract_strided_slice %317 {offsets = [0, 3, 0, 0], sizes = [1, 1, 16, 16], strides = [1, 1, 1, 1]} : vector<1x8x16x16xf32> to vector<1x1x16x16xf32>
    %386 = vector.shape_cast %385 : vector<1x1x16x16xf32> to vector<1x16x16xf32>
    %c1_206 = arith.constant 1 : index
    %c3_207 = arith.constant 3 : index
    %387 = memref.load %arg8[%c1_206, %c3_207] : memref<8x8xf32, #tpu.memory_space<smem>>
    %388 = vector.broadcast %387 : f32 to vector<1x16x16xf32>
    %389 = arith.mulf %386, %388 : vector<1x16x16xf32>
    %390 = arith.addf %384, %389 : vector<1x16x16xf32>
    %391 = vector.extract_strided_slice %317 {offsets = [0, 4, 0, 0], sizes = [1, 1, 16, 16], strides = [1, 1, 1, 1]} : vector<1x8x16x16xf32> to vector<1x1x16x16xf32>
    %392 = vector.shape_cast %391 : vector<1x1x16x16xf32> to vector<1x16x16xf32>
    %c1_208 = arith.constant 1 : index
    %c4_209 = arith.constant 4 : index
    %393 = memref.load %arg8[%c1_208, %c4_209] : memref<8x8xf32, #tpu.memory_space<smem>>
    %394 = vector.broadcast %393 : f32 to vector<1x16x16xf32>
    %395 = arith.mulf %392, %394 : vector<1x16x16xf32>
    %396 = arith.addf %390, %395 : vector<1x16x16xf32>
    %397 = vector.extract_strided_slice %317 {offsets = [0, 5, 0, 0], sizes = [1, 1, 16, 16], strides = [1, 1, 1, 1]} : vector<1x8x16x16xf32> to vector<1x1x16x16xf32>
    %398 = vector.shape_cast %397 : vector<1x1x16x16xf32> to vector<1x16x16xf32>
    %c1_210 = arith.constant 1 : index
    %c5_211 = arith.constant 5 : index
    %399 = memref.load %arg8[%c1_210, %c5_211] : memref<8x8xf32, #tpu.memory_space<smem>>
    %400 = vector.broadcast %399 : f32 to vector<1x16x16xf32>
    %401 = arith.mulf %398, %400 : vector<1x16x16xf32>
    %402 = arith.addf %396, %401 : vector<1x16x16xf32>
    %403 = vector.extract_strided_slice %317 {offsets = [0, 6, 0, 0], sizes = [1, 1, 16, 16], strides = [1, 1, 1, 1]} : vector<1x8x16x16xf32> to vector<1x1x16x16xf32>
    %404 = vector.shape_cast %403 : vector<1x1x16x16xf32> to vector<1x16x16xf32>
    %c1_212 = arith.constant 1 : index
    %c6_213 = arith.constant 6 : index
    %405 = memref.load %arg8[%c1_212, %c6_213] : memref<8x8xf32, #tpu.memory_space<smem>>
    %406 = vector.broadcast %405 : f32 to vector<1x16x16xf32>
    %407 = arith.mulf %404, %406 : vector<1x16x16xf32>
    %408 = arith.addf %402, %407 : vector<1x16x16xf32>
    %409 = vector.extract_strided_slice %317 {offsets = [0, 7, 0, 0], sizes = [1, 1, 16, 16], strides = [1, 1, 1, 1]} : vector<1x8x16x16xf32> to vector<1x1x16x16xf32>
    %410 = vector.shape_cast %409 : vector<1x1x16x16xf32> to vector<1x16x16xf32>
    %c1_214 = arith.constant 1 : index
    %c7_215 = arith.constant 7 : index
    %411 = memref.load %arg8[%c1_214, %c7_215] : memref<8x8xf32, #tpu.memory_space<smem>>
    %412 = vector.broadcast %411 : f32 to vector<1x16x16xf32>
    %413 = arith.mulf %410, %412 : vector<1x16x16xf32>
    %414 = arith.addf %408, %413 : vector<1x16x16xf32>
    %c1_216 = arith.constant 1 : index
    %415 = memref.load %arg9[%c1_216] : memref<8xf32, #tpu.memory_space<smem>>
    %416 = vector.broadcast %415 : f32 to vector<1x16x16xf32>
    %417 = arith.addf %414, %416 : vector<1x16x16xf32>
    %418 = vector.extract_strided_slice %317 {offsets = [0, 0, 0, 0], sizes = [1, 1, 16, 16], strides = [1, 1, 1, 1]} : vector<1x8x16x16xf32> to vector<1x1x16x16xf32>
    %419 = vector.shape_cast %418 : vector<1x1x16x16xf32> to vector<1x16x16xf32>
    %c2_217 = arith.constant 2 : index
    %c0_218 = arith.constant 0 : index
    %420 = memref.load %arg8[%c2_217, %c0_218] : memref<8x8xf32, #tpu.memory_space<smem>>
    %421 = vector.broadcast %420 : f32 to vector<1x16x16xf32>
    %422 = arith.mulf %419, %421 : vector<1x16x16xf32>
    %423 = vector.extract_strided_slice %317 {offsets = [0, 1, 0, 0], sizes = [1, 1, 16, 16], strides = [1, 1, 1, 1]} : vector<1x8x16x16xf32> to vector<1x1x16x16xf32>
    %424 = vector.shape_cast %423 : vector<1x1x16x16xf32> to vector<1x16x16xf32>
    %c2_219 = arith.constant 2 : index
    %c1_220 = arith.constant 1 : index
    %425 = memref.load %arg8[%c2_219, %c1_220] : memref<8x8xf32, #tpu.memory_space<smem>>
    %426 = vector.broadcast %425 : f32 to vector<1x16x16xf32>
    %427 = arith.mulf %424, %426 : vector<1x16x16xf32>
    %428 = arith.addf %422, %427 : vector<1x16x16xf32>
    %429 = vector.extract_strided_slice %317 {offsets = [0, 2, 0, 0], sizes = [1, 1, 16, 16], strides = [1, 1, 1, 1]} : vector<1x8x16x16xf32> to vector<1x1x16x16xf32>
    %430 = vector.shape_cast %429 : vector<1x1x16x16xf32> to vector<1x16x16xf32>
    %c2_221 = arith.constant 2 : index
    %c2_222 = arith.constant 2 : index
    %431 = memref.load %arg8[%c2_221, %c2_222] : memref<8x8xf32, #tpu.memory_space<smem>>
    %432 = vector.broadcast %431 : f32 to vector<1x16x16xf32>
    %433 = arith.mulf %430, %432 : vector<1x16x16xf32>
    %434 = arith.addf %428, %433 : vector<1x16x16xf32>
    %435 = vector.extract_strided_slice %317 {offsets = [0, 3, 0, 0], sizes = [1, 1, 16, 16], strides = [1, 1, 1, 1]} : vector<1x8x16x16xf32> to vector<1x1x16x16xf32>
    %436 = vector.shape_cast %435 : vector<1x1x16x16xf32> to vector<1x16x16xf32>
    %c2_223 = arith.constant 2 : index
    %c3_224 = arith.constant 3 : index
    %437 = memref.load %arg8[%c2_223, %c3_224] : memref<8x8xf32, #tpu.memory_space<smem>>
    %438 = vector.broadcast %437 : f32 to vector<1x16x16xf32>
    %439 = arith.mulf %436, %438 : vector<1x16x16xf32>
    %440 = arith.addf %434, %439 : vector<1x16x16xf32>
    %441 = vector.extract_strided_slice %317 {offsets = [0, 4, 0, 0], sizes = [1, 1, 16, 16], strides = [1, 1, 1, 1]} : vector<1x8x16x16xf32> to vector<1x1x16x16xf32>
    %442 = vector.shape_cast %441 : vector<1x1x16x16xf32> to vector<1x16x16xf32>
    %c2_225 = arith.constant 2 : index
    %c4_226 = arith.constant 4 : index
    %443 = memref.load %arg8[%c2_225, %c4_226] : memref<8x8xf32, #tpu.memory_space<smem>>
    %444 = vector.broadcast %443 : f32 to vector<1x16x16xf32>
    %445 = arith.mulf %442, %444 : vector<1x16x16xf32>
    %446 = arith.addf %440, %445 : vector<1x16x16xf32>
    %447 = vector.extract_strided_slice %317 {offsets = [0, 5, 0, 0], sizes = [1, 1, 16, 16], strides = [1, 1, 1, 1]} : vector<1x8x16x16xf32> to vector<1x1x16x16xf32>
    %448 = vector.shape_cast %447 : vector<1x1x16x16xf32> to vector<1x16x16xf32>
    %c2_227 = arith.constant 2 : index
    %c5_228 = arith.constant 5 : index
    %449 = memref.load %arg8[%c2_227, %c5_228] : memref<8x8xf32, #tpu.memory_space<smem>>
    %450 = vector.broadcast %449 : f32 to vector<1x16x16xf32>
    %451 = arith.mulf %448, %450 : vector<1x16x16xf32>
    %452 = arith.addf %446, %451 : vector<1x16x16xf32>
    %453 = vector.extract_strided_slice %317 {offsets = [0, 6, 0, 0], sizes = [1, 1, 16, 16], strides = [1, 1, 1, 1]} : vector<1x8x16x16xf32> to vector<1x1x16x16xf32>
    %454 = vector.shape_cast %453 : vector<1x1x16x16xf32> to vector<1x16x16xf32>
    %c2_229 = arith.constant 2 : index
    %c6_230 = arith.constant 6 : index
    %455 = memref.load %arg8[%c2_229, %c6_230] : memref<8x8xf32, #tpu.memory_space<smem>>
    %456 = vector.broadcast %455 : f32 to vector<1x16x16xf32>
    %457 = arith.mulf %454, %456 : vector<1x16x16xf32>
    %458 = arith.addf %452, %457 : vector<1x16x16xf32>
    %459 = vector.extract_strided_slice %317 {offsets = [0, 7, 0, 0], sizes = [1, 1, 16, 16], strides = [1, 1, 1, 1]} : vector<1x8x16x16xf32> to vector<1x1x16x16xf32>
    %460 = vector.shape_cast %459 : vector<1x1x16x16xf32> to vector<1x16x16xf32>
    %c2_231 = arith.constant 2 : index
    %c7_232 = arith.constant 7 : index
    %461 = memref.load %arg8[%c2_231, %c7_232] : memref<8x8xf32, #tpu.memory_space<smem>>
    %462 = vector.broadcast %461 : f32 to vector<1x16x16xf32>
    %463 = arith.mulf %460, %462 : vector<1x16x16xf32>
    %464 = arith.addf %458, %463 : vector<1x16x16xf32>
    %c2_233 = arith.constant 2 : index
    %465 = memref.load %arg9[%c2_233] : memref<8xf32, #tpu.memory_space<smem>>
    %466 = vector.broadcast %465 : f32 to vector<1x16x16xf32>
    %467 = arith.addf %464, %466 : vector<1x16x16xf32>
    %468 = vector.extract_strided_slice %317 {offsets = [0, 0, 0, 0], sizes = [1, 1, 16, 16], strides = [1, 1, 1, 1]} : vector<1x8x16x16xf32> to vector<1x1x16x16xf32>
    %469 = vector.shape_cast %468 : vector<1x1x16x16xf32> to vector<1x16x16xf32>
    %c3_234 = arith.constant 3 : index
    %c0_235 = arith.constant 0 : index
    %470 = memref.load %arg8[%c3_234, %c0_235] : memref<8x8xf32, #tpu.memory_space<smem>>
    %471 = vector.broadcast %470 : f32 to vector<1x16x16xf32>
    %472 = arith.mulf %469, %471 : vector<1x16x16xf32>
    %473 = vector.extract_strided_slice %317 {offsets = [0, 1, 0, 0], sizes = [1, 1, 16, 16], strides = [1, 1, 1, 1]} : vector<1x8x16x16xf32> to vector<1x1x16x16xf32>
    %474 = vector.shape_cast %473 : vector<1x1x16x16xf32> to vector<1x16x16xf32>
    %c3_236 = arith.constant 3 : index
    %c1_237 = arith.constant 1 : index
    %475 = memref.load %arg8[%c3_236, %c1_237] : memref<8x8xf32, #tpu.memory_space<smem>>
    %476 = vector.broadcast %475 : f32 to vector<1x16x16xf32>
    %477 = arith.mulf %474, %476 : vector<1x16x16xf32>
    %478 = arith.addf %472, %477 : vector<1x16x16xf32>
    %479 = vector.extract_strided_slice %317 {offsets = [0, 2, 0, 0], sizes = [1, 1, 16, 16], strides = [1, 1, 1, 1]} : vector<1x8x16x16xf32> to vector<1x1x16x16xf32>
    %480 = vector.shape_cast %479 : vector<1x1x16x16xf32> to vector<1x16x16xf32>
    %c3_238 = arith.constant 3 : index
    %c2_239 = arith.constant 2 : index
    %481 = memref.load %arg8[%c3_238, %c2_239] : memref<8x8xf32, #tpu.memory_space<smem>>
    %482 = vector.broadcast %481 : f32 to vector<1x16x16xf32>
    %483 = arith.mulf %480, %482 : vector<1x16x16xf32>
    %484 = arith.addf %478, %483 : vector<1x16x16xf32>
    %485 = vector.extract_strided_slice %317 {offsets = [0, 3, 0, 0], sizes = [1, 1, 16, 16], strides = [1, 1, 1, 1]} : vector<1x8x16x16xf32> to vector<1x1x16x16xf32>
    %486 = vector.shape_cast %485 : vector<1x1x16x16xf32> to vector<1x16x16xf32>
    %c3_240 = arith.constant 3 : index
    %c3_241 = arith.constant 3 : index
    %487 = memref.load %arg8[%c3_240, %c3_241] : memref<8x8xf32, #tpu.memory_space<smem>>
    %488 = vector.broadcast %487 : f32 to vector<1x16x16xf32>
    %489 = arith.mulf %486, %488 : vector<1x16x16xf32>
    %490 = arith.addf %484, %489 : vector<1x16x16xf32>
    %491 = vector.extract_strided_slice %317 {offsets = [0, 4, 0, 0], sizes = [1, 1, 16, 16], strides = [1, 1, 1, 1]} : vector<1x8x16x16xf32> to vector<1x1x16x16xf32>
    %492 = vector.shape_cast %491 : vector<1x1x16x16xf32> to vector<1x16x16xf32>
    %c3_242 = arith.constant 3 : index
    %c4_243 = arith.constant 4 : index
    %493 = memref.load %arg8[%c3_242, %c4_243] : memref<8x8xf32, #tpu.memory_space<smem>>
    %494 = vector.broadcast %493 : f32 to vector<1x16x16xf32>
    %495 = arith.mulf %492, %494 : vector<1x16x16xf32>
    %496 = arith.addf %490, %495 : vector<1x16x16xf32>
    %497 = vector.extract_strided_slice %317 {offsets = [0, 5, 0, 0], sizes = [1, 1, 16, 16], strides = [1, 1, 1, 1]} : vector<1x8x16x16xf32> to vector<1x1x16x16xf32>
    %498 = vector.shape_cast %497 : vector<1x1x16x16xf32> to vector<1x16x16xf32>
    %c3_244 = arith.constant 3 : index
    %c5_245 = arith.constant 5 : index
    %499 = memref.load %arg8[%c3_244, %c5_245] : memref<8x8xf32, #tpu.memory_space<smem>>
    %500 = vector.broadcast %499 : f32 to vector<1x16x16xf32>
    %501 = arith.mulf %498, %500 : vector<1x16x16xf32>
    %502 = arith.addf %496, %501 : vector<1x16x16xf32>
    %503 = vector.extract_strided_slice %317 {offsets = [0, 6, 0, 0], sizes = [1, 1, 16, 16], strides = [1, 1, 1, 1]} : vector<1x8x16x16xf32> to vector<1x1x16x16xf32>
    %504 = vector.shape_cast %503 : vector<1x1x16x16xf32> to vector<1x16x16xf32>
    %c3_246 = arith.constant 3 : index
    %c6_247 = arith.constant 6 : index
    %505 = memref.load %arg8[%c3_246, %c6_247] : memref<8x8xf32, #tpu.memory_space<smem>>
    %506 = vector.broadcast %505 : f32 to vector<1x16x16xf32>
    %507 = arith.mulf %504, %506 : vector<1x16x16xf32>
    %508 = arith.addf %502, %507 : vector<1x16x16xf32>
    %509 = vector.extract_strided_slice %317 {offsets = [0, 7, 0, 0], sizes = [1, 1, 16, 16], strides = [1, 1, 1, 1]} : vector<1x8x16x16xf32> to vector<1x1x16x16xf32>
    %510 = vector.shape_cast %509 : vector<1x1x16x16xf32> to vector<1x16x16xf32>
    %c3_248 = arith.constant 3 : index
    %c7_249 = arith.constant 7 : index
    %511 = memref.load %arg8[%c3_248, %c7_249] : memref<8x8xf32, #tpu.memory_space<smem>>
    %512 = vector.broadcast %511 : f32 to vector<1x16x16xf32>
    %513 = arith.mulf %510, %512 : vector<1x16x16xf32>
    %514 = arith.addf %508, %513 : vector<1x16x16xf32>
    %c3_250 = arith.constant 3 : index
    %515 = memref.load %arg9[%c3_250] : memref<8xf32, #tpu.memory_space<smem>>
    %516 = vector.broadcast %515 : f32 to vector<1x16x16xf32>
    %517 = arith.addf %514, %516 : vector<1x16x16xf32>
    %518 = vector.extract_strided_slice %317 {offsets = [0, 0, 0, 0], sizes = [1, 1, 16, 16], strides = [1, 1, 1, 1]} : vector<1x8x16x16xf32> to vector<1x1x16x16xf32>
    %519 = vector.shape_cast %518 : vector<1x1x16x16xf32> to vector<1x16x16xf32>
    %c4_251 = arith.constant 4 : index
    %c0_252 = arith.constant 0 : index
    %520 = memref.load %arg8[%c4_251, %c0_252] : memref<8x8xf32, #tpu.memory_space<smem>>
    %521 = vector.broadcast %520 : f32 to vector<1x16x16xf32>
    %522 = arith.mulf %519, %521 : vector<1x16x16xf32>
    %523 = vector.extract_strided_slice %317 {offsets = [0, 1, 0, 0], sizes = [1, 1, 16, 16], strides = [1, 1, 1, 1]} : vector<1x8x16x16xf32> to vector<1x1x16x16xf32>
    %524 = vector.shape_cast %523 : vector<1x1x16x16xf32> to vector<1x16x16xf32>
    %c4_253 = arith.constant 4 : index
    %c1_254 = arith.constant 1 : index
    %525 = memref.load %arg8[%c4_253, %c1_254] : memref<8x8xf32, #tpu.memory_space<smem>>
    %526 = vector.broadcast %525 : f32 to vector<1x16x16xf32>
    %527 = arith.mulf %524, %526 : vector<1x16x16xf32>
    %528 = arith.addf %522, %527 : vector<1x16x16xf32>
    %529 = vector.extract_strided_slice %317 {offsets = [0, 2, 0, 0], sizes = [1, 1, 16, 16], strides = [1, 1, 1, 1]} : vector<1x8x16x16xf32> to vector<1x1x16x16xf32>
    %530 = vector.shape_cast %529 : vector<1x1x16x16xf32> to vector<1x16x16xf32>
    %c4_255 = arith.constant 4 : index
    %c2_256 = arith.constant 2 : index
    %531 = memref.load %arg8[%c4_255, %c2_256] : memref<8x8xf32, #tpu.memory_space<smem>>
    %532 = vector.broadcast %531 : f32 to vector<1x16x16xf32>
    %533 = arith.mulf %530, %532 : vector<1x16x16xf32>
    %534 = arith.addf %528, %533 : vector<1x16x16xf32>
    %535 = vector.extract_strided_slice %317 {offsets = [0, 3, 0, 0], sizes = [1, 1, 16, 16], strides = [1, 1, 1, 1]} : vector<1x8x16x16xf32> to vector<1x1x16x16xf32>
    %536 = vector.shape_cast %535 : vector<1x1x16x16xf32> to vector<1x16x16xf32>
    %c4_257 = arith.constant 4 : index
    %c3_258 = arith.constant 3 : index
    %537 = memref.load %arg8[%c4_257, %c3_258] : memref<8x8xf32, #tpu.memory_space<smem>>
    %538 = vector.broadcast %537 : f32 to vector<1x16x16xf32>
    %539 = arith.mulf %536, %538 : vector<1x16x16xf32>
    %540 = arith.addf %534, %539 : vector<1x16x16xf32>
    %541 = vector.extract_strided_slice %317 {offsets = [0, 4, 0, 0], sizes = [1, 1, 16, 16], strides = [1, 1, 1, 1]} : vector<1x8x16x16xf32> to vector<1x1x16x16xf32>
    %542 = vector.shape_cast %541 : vector<1x1x16x16xf32> to vector<1x16x16xf32>
    %c4_259 = arith.constant 4 : index
    %c4_260 = arith.constant 4 : index
    %543 = memref.load %arg8[%c4_259, %c4_260] : memref<8x8xf32, #tpu.memory_space<smem>>
    %544 = vector.broadcast %543 : f32 to vector<1x16x16xf32>
    %545 = arith.mulf %542, %544 : vector<1x16x16xf32>
    %546 = arith.addf %540, %545 : vector<1x16x16xf32>
    %547 = vector.extract_strided_slice %317 {offsets = [0, 5, 0, 0], sizes = [1, 1, 16, 16], strides = [1, 1, 1, 1]} : vector<1x8x16x16xf32> to vector<1x1x16x16xf32>
    %548 = vector.shape_cast %547 : vector<1x1x16x16xf32> to vector<1x16x16xf32>
    %c4_261 = arith.constant 4 : index
    %c5_262 = arith.constant 5 : index
    %549 = memref.load %arg8[%c4_261, %c5_262] : memref<8x8xf32, #tpu.memory_space<smem>>
    %550 = vector.broadcast %549 : f32 to vector<1x16x16xf32>
    %551 = arith.mulf %548, %550 : vector<1x16x16xf32>
    %552 = arith.addf %546, %551 : vector<1x16x16xf32>
    %553 = vector.extract_strided_slice %317 {offsets = [0, 6, 0, 0], sizes = [1, 1, 16, 16], strides = [1, 1, 1, 1]} : vector<1x8x16x16xf32> to vector<1x1x16x16xf32>
    %554 = vector.shape_cast %553 : vector<1x1x16x16xf32> to vector<1x16x16xf32>
    %c4_263 = arith.constant 4 : index
    %c6_264 = arith.constant 6 : index
    %555 = memref.load %arg8[%c4_263, %c6_264] : memref<8x8xf32, #tpu.memory_space<smem>>
    %556 = vector.broadcast %555 : f32 to vector<1x16x16xf32>
    %557 = arith.mulf %554, %556 : vector<1x16x16xf32>
    %558 = arith.addf %552, %557 : vector<1x16x16xf32>
    %559 = vector.extract_strided_slice %317 {offsets = [0, 7, 0, 0], sizes = [1, 1, 16, 16], strides = [1, 1, 1, 1]} : vector<1x8x16x16xf32> to vector<1x1x16x16xf32>
    %560 = vector.shape_cast %559 : vector<1x1x16x16xf32> to vector<1x16x16xf32>
    %c4_265 = arith.constant 4 : index
    %c7_266 = arith.constant 7 : index
    %561 = memref.load %arg8[%c4_265, %c7_266] : memref<8x8xf32, #tpu.memory_space<smem>>
    %562 = vector.broadcast %561 : f32 to vector<1x16x16xf32>
    %563 = arith.mulf %560, %562 : vector<1x16x16xf32>
    %564 = arith.addf %558, %563 : vector<1x16x16xf32>
    %c4_267 = arith.constant 4 : index
    %565 = memref.load %arg9[%c4_267] : memref<8xf32, #tpu.memory_space<smem>>
    %566 = vector.broadcast %565 : f32 to vector<1x16x16xf32>
    %567 = arith.addf %564, %566 : vector<1x16x16xf32>
    %568 = vector.extract_strided_slice %317 {offsets = [0, 0, 0, 0], sizes = [1, 1, 16, 16], strides = [1, 1, 1, 1]} : vector<1x8x16x16xf32> to vector<1x1x16x16xf32>
    %569 = vector.shape_cast %568 : vector<1x1x16x16xf32> to vector<1x16x16xf32>
    %c5_268 = arith.constant 5 : index
    %c0_269 = arith.constant 0 : index
    %570 = memref.load %arg8[%c5_268, %c0_269] : memref<8x8xf32, #tpu.memory_space<smem>>
    %571 = vector.broadcast %570 : f32 to vector<1x16x16xf32>
    %572 = arith.mulf %569, %571 : vector<1x16x16xf32>
    %573 = vector.extract_strided_slice %317 {offsets = [0, 1, 0, 0], sizes = [1, 1, 16, 16], strides = [1, 1, 1, 1]} : vector<1x8x16x16xf32> to vector<1x1x16x16xf32>
    %574 = vector.shape_cast %573 : vector<1x1x16x16xf32> to vector<1x16x16xf32>
    %c5_270 = arith.constant 5 : index
    %c1_271 = arith.constant 1 : index
    %575 = memref.load %arg8[%c5_270, %c1_271] : memref<8x8xf32, #tpu.memory_space<smem>>
    %576 = vector.broadcast %575 : f32 to vector<1x16x16xf32>
    %577 = arith.mulf %574, %576 : vector<1x16x16xf32>
    %578 = arith.addf %572, %577 : vector<1x16x16xf32>
    %579 = vector.extract_strided_slice %317 {offsets = [0, 2, 0, 0], sizes = [1, 1, 16, 16], strides = [1, 1, 1, 1]} : vector<1x8x16x16xf32> to vector<1x1x16x16xf32>
    %580 = vector.shape_cast %579 : vector<1x1x16x16xf32> to vector<1x16x16xf32>
    %c5_272 = arith.constant 5 : index
    %c2_273 = arith.constant 2 : index
    %581 = memref.load %arg8[%c5_272, %c2_273] : memref<8x8xf32, #tpu.memory_space<smem>>
    %582 = vector.broadcast %581 : f32 to vector<1x16x16xf32>
    %583 = arith.mulf %580, %582 : vector<1x16x16xf32>
    %584 = arith.addf %578, %583 : vector<1x16x16xf32>
    %585 = vector.extract_strided_slice %317 {offsets = [0, 3, 0, 0], sizes = [1, 1, 16, 16], strides = [1, 1, 1, 1]} : vector<1x8x16x16xf32> to vector<1x1x16x16xf32>
    %586 = vector.shape_cast %585 : vector<1x1x16x16xf32> to vector<1x16x16xf32>
    %c5_274 = arith.constant 5 : index
    %c3_275 = arith.constant 3 : index
    %587 = memref.load %arg8[%c5_274, %c3_275] : memref<8x8xf32, #tpu.memory_space<smem>>
    %588 = vector.broadcast %587 : f32 to vector<1x16x16xf32>
    %589 = arith.mulf %586, %588 : vector<1x16x16xf32>
    %590 = arith.addf %584, %589 : vector<1x16x16xf32>
    %591 = vector.extract_strided_slice %317 {offsets = [0, 4, 0, 0], sizes = [1, 1, 16, 16], strides = [1, 1, 1, 1]} : vector<1x8x16x16xf32> to vector<1x1x16x16xf32>
    %592 = vector.shape_cast %591 : vector<1x1x16x16xf32> to vector<1x16x16xf32>
    %c5_276 = arith.constant 5 : index
    %c4_277 = arith.constant 4 : index
    %593 = memref.load %arg8[%c5_276, %c4_277] : memref<8x8xf32, #tpu.memory_space<smem>>
    %594 = vector.broadcast %593 : f32 to vector<1x16x16xf32>
    %595 = arith.mulf %592, %594 : vector<1x16x16xf32>
    %596 = arith.addf %590, %595 : vector<1x16x16xf32>
    %597 = vector.extract_strided_slice %317 {offsets = [0, 5, 0, 0], sizes = [1, 1, 16, 16], strides = [1, 1, 1, 1]} : vector<1x8x16x16xf32> to vector<1x1x16x16xf32>
    %598 = vector.shape_cast %597 : vector<1x1x16x16xf32> to vector<1x16x16xf32>
    %c5_278 = arith.constant 5 : index
    %c5_279 = arith.constant 5 : index
    %599 = memref.load %arg8[%c5_278, %c5_279] : memref<8x8xf32, #tpu.memory_space<smem>>
    %600 = vector.broadcast %599 : f32 to vector<1x16x16xf32>
    %601 = arith.mulf %598, %600 : vector<1x16x16xf32>
    %602 = arith.addf %596, %601 : vector<1x16x16xf32>
    %603 = vector.extract_strided_slice %317 {offsets = [0, 6, 0, 0], sizes = [1, 1, 16, 16], strides = [1, 1, 1, 1]} : vector<1x8x16x16xf32> to vector<1x1x16x16xf32>
    %604 = vector.shape_cast %603 : vector<1x1x16x16xf32> to vector<1x16x16xf32>
    %c5_280 = arith.constant 5 : index
    %c6_281 = arith.constant 6 : index
    %605 = memref.load %arg8[%c5_280, %c6_281] : memref<8x8xf32, #tpu.memory_space<smem>>
    %606 = vector.broadcast %605 : f32 to vector<1x16x16xf32>
    %607 = arith.mulf %604, %606 : vector<1x16x16xf32>
    %608 = arith.addf %602, %607 : vector<1x16x16xf32>
    %609 = vector.extract_strided_slice %317 {offsets = [0, 7, 0, 0], sizes = [1, 1, 16, 16], strides = [1, 1, 1, 1]} : vector<1x8x16x16xf32> to vector<1x1x16x16xf32>
    %610 = vector.shape_cast %609 : vector<1x1x16x16xf32> to vector<1x16x16xf32>
    %c5_282 = arith.constant 5 : index
    %c7_283 = arith.constant 7 : index
    %611 = memref.load %arg8[%c5_282, %c7_283] : memref<8x8xf32, #tpu.memory_space<smem>>
    %612 = vector.broadcast %611 : f32 to vector<1x16x16xf32>
    %613 = arith.mulf %610, %612 : vector<1x16x16xf32>
    %614 = arith.addf %608, %613 : vector<1x16x16xf32>
    %c5_284 = arith.constant 5 : index
    %615 = memref.load %arg9[%c5_284] : memref<8xf32, #tpu.memory_space<smem>>
    %616 = vector.broadcast %615 : f32 to vector<1x16x16xf32>
    %617 = arith.addf %614, %616 : vector<1x16x16xf32>
    %618 = vector.extract_strided_slice %317 {offsets = [0, 0, 0, 0], sizes = [1, 1, 16, 16], strides = [1, 1, 1, 1]} : vector<1x8x16x16xf32> to vector<1x1x16x16xf32>
    %619 = vector.shape_cast %618 : vector<1x1x16x16xf32> to vector<1x16x16xf32>
    %c6_285 = arith.constant 6 : index
    %c0_286 = arith.constant 0 : index
    %620 = memref.load %arg8[%c6_285, %c0_286] : memref<8x8xf32, #tpu.memory_space<smem>>
    %621 = vector.broadcast %620 : f32 to vector<1x16x16xf32>
    %622 = arith.mulf %619, %621 : vector<1x16x16xf32>
    %623 = vector.extract_strided_slice %317 {offsets = [0, 1, 0, 0], sizes = [1, 1, 16, 16], strides = [1, 1, 1, 1]} : vector<1x8x16x16xf32> to vector<1x1x16x16xf32>
    %624 = vector.shape_cast %623 : vector<1x1x16x16xf32> to vector<1x16x16xf32>
    %c6_287 = arith.constant 6 : index
    %c1_288 = arith.constant 1 : index
    %625 = memref.load %arg8[%c6_287, %c1_288] : memref<8x8xf32, #tpu.memory_space<smem>>
    %626 = vector.broadcast %625 : f32 to vector<1x16x16xf32>
    %627 = arith.mulf %624, %626 : vector<1x16x16xf32>
    %628 = arith.addf %622, %627 : vector<1x16x16xf32>
    %629 = vector.extract_strided_slice %317 {offsets = [0, 2, 0, 0], sizes = [1, 1, 16, 16], strides = [1, 1, 1, 1]} : vector<1x8x16x16xf32> to vector<1x1x16x16xf32>
    %630 = vector.shape_cast %629 : vector<1x1x16x16xf32> to vector<1x16x16xf32>
    %c6_289 = arith.constant 6 : index
    %c2_290 = arith.constant 2 : index
    %631 = memref.load %arg8[%c6_289, %c2_290] : memref<8x8xf32, #tpu.memory_space<smem>>
    %632 = vector.broadcast %631 : f32 to vector<1x16x16xf32>
    %633 = arith.mulf %630, %632 : vector<1x16x16xf32>
    %634 = arith.addf %628, %633 : vector<1x16x16xf32>
    %635 = vector.extract_strided_slice %317 {offsets = [0, 3, 0, 0], sizes = [1, 1, 16, 16], strides = [1, 1, 1, 1]} : vector<1x8x16x16xf32> to vector<1x1x16x16xf32>
    %636 = vector.shape_cast %635 : vector<1x1x16x16xf32> to vector<1x16x16xf32>
    %c6_291 = arith.constant 6 : index
    %c3_292 = arith.constant 3 : index
    %637 = memref.load %arg8[%c6_291, %c3_292] : memref<8x8xf32, #tpu.memory_space<smem>>
    %638 = vector.broadcast %637 : f32 to vector<1x16x16xf32>
    %639 = arith.mulf %636, %638 : vector<1x16x16xf32>
    %640 = arith.addf %634, %639 : vector<1x16x16xf32>
    %641 = vector.extract_strided_slice %317 {offsets = [0, 4, 0, 0], sizes = [1, 1, 16, 16], strides = [1, 1, 1, 1]} : vector<1x8x16x16xf32> to vector<1x1x16x16xf32>
    %642 = vector.shape_cast %641 : vector<1x1x16x16xf32> to vector<1x16x16xf32>
    %c6_293 = arith.constant 6 : index
    %c4_294 = arith.constant 4 : index
    %643 = memref.load %arg8[%c6_293, %c4_294] : memref<8x8xf32, #tpu.memory_space<smem>>
    %644 = vector.broadcast %643 : f32 to vector<1x16x16xf32>
    %645 = arith.mulf %642, %644 : vector<1x16x16xf32>
    %646 = arith.addf %640, %645 : vector<1x16x16xf32>
    %647 = vector.extract_strided_slice %317 {offsets = [0, 5, 0, 0], sizes = [1, 1, 16, 16], strides = [1, 1, 1, 1]} : vector<1x8x16x16xf32> to vector<1x1x16x16xf32>
    %648 = vector.shape_cast %647 : vector<1x1x16x16xf32> to vector<1x16x16xf32>
    %c6_295 = arith.constant 6 : index
    %c5_296 = arith.constant 5 : index
    %649 = memref.load %arg8[%c6_295, %c5_296] : memref<8x8xf32, #tpu.memory_space<smem>>
    %650 = vector.broadcast %649 : f32 to vector<1x16x16xf32>
    %651 = arith.mulf %648, %650 : vector<1x16x16xf32>
    %652 = arith.addf %646, %651 : vector<1x16x16xf32>
    %653 = vector.extract_strided_slice %317 {offsets = [0, 6, 0, 0], sizes = [1, 1, 16, 16], strides = [1, 1, 1, 1]} : vector<1x8x16x16xf32> to vector<1x1x16x16xf32>
    %654 = vector.shape_cast %653 : vector<1x1x16x16xf32> to vector<1x16x16xf32>
    %c6_297 = arith.constant 6 : index
    %c6_298 = arith.constant 6 : index
    %655 = memref.load %arg8[%c6_297, %c6_298] : memref<8x8xf32, #tpu.memory_space<smem>>
    %656 = vector.broadcast %655 : f32 to vector<1x16x16xf32>
    %657 = arith.mulf %654, %656 : vector<1x16x16xf32>
    %658 = arith.addf %652, %657 : vector<1x16x16xf32>
    %659 = vector.extract_strided_slice %317 {offsets = [0, 7, 0, 0], sizes = [1, 1, 16, 16], strides = [1, 1, 1, 1]} : vector<1x8x16x16xf32> to vector<1x1x16x16xf32>
    %660 = vector.shape_cast %659 : vector<1x1x16x16xf32> to vector<1x16x16xf32>
    %c6_299 = arith.constant 6 : index
    %c7_300 = arith.constant 7 : index
    %661 = memref.load %arg8[%c6_299, %c7_300] : memref<8x8xf32, #tpu.memory_space<smem>>
    %662 = vector.broadcast %661 : f32 to vector<1x16x16xf32>
    %663 = arith.mulf %660, %662 : vector<1x16x16xf32>
    %664 = arith.addf %658, %663 : vector<1x16x16xf32>
    %c6_301 = arith.constant 6 : index
    %665 = memref.load %arg9[%c6_301] : memref<8xf32, #tpu.memory_space<smem>>
    %666 = vector.broadcast %665 : f32 to vector<1x16x16xf32>
    %667 = arith.addf %664, %666 : vector<1x16x16xf32>
    %668 = vector.extract_strided_slice %317 {offsets = [0, 0, 0, 0], sizes = [1, 1, 16, 16], strides = [1, 1, 1, 1]} : vector<1x8x16x16xf32> to vector<1x1x16x16xf32>
    %669 = vector.shape_cast %668 : vector<1x1x16x16xf32> to vector<1x16x16xf32>
    %c7_302 = arith.constant 7 : index
    %c0_303 = arith.constant 0 : index
    %670 = memref.load %arg8[%c7_302, %c0_303] : memref<8x8xf32, #tpu.memory_space<smem>>
    %671 = vector.broadcast %670 : f32 to vector<1x16x16xf32>
    %672 = arith.mulf %669, %671 : vector<1x16x16xf32>
    %673 = vector.extract_strided_slice %317 {offsets = [0, 1, 0, 0], sizes = [1, 1, 16, 16], strides = [1, 1, 1, 1]} : vector<1x8x16x16xf32> to vector<1x1x16x16xf32>
    %674 = vector.shape_cast %673 : vector<1x1x16x16xf32> to vector<1x16x16xf32>
    %c7_304 = arith.constant 7 : index
    %c1_305 = arith.constant 1 : index
    %675 = memref.load %arg8[%c7_304, %c1_305] : memref<8x8xf32, #tpu.memory_space<smem>>
    %676 = vector.broadcast %675 : f32 to vector<1x16x16xf32>
    %677 = arith.mulf %674, %676 : vector<1x16x16xf32>
    %678 = arith.addf %672, %677 : vector<1x16x16xf32>
    %679 = vector.extract_strided_slice %317 {offsets = [0, 2, 0, 0], sizes = [1, 1, 16, 16], strides = [1, 1, 1, 1]} : vector<1x8x16x16xf32> to vector<1x1x16x16xf32>
    %680 = vector.shape_cast %679 : vector<1x1x16x16xf32> to vector<1x16x16xf32>
    %c7_306 = arith.constant 7 : index
    %c2_307 = arith.constant 2 : index
    %681 = memref.load %arg8[%c7_306, %c2_307] : memref<8x8xf32, #tpu.memory_space<smem>>
    %682 = vector.broadcast %681 : f32 to vector<1x16x16xf32>
    %683 = arith.mulf %680, %682 : vector<1x16x16xf32>
    %684 = arith.addf %678, %683 : vector<1x16x16xf32>
    %685 = vector.extract_strided_slice %317 {offsets = [0, 3, 0, 0], sizes = [1, 1, 16, 16], strides = [1, 1, 1, 1]} : vector<1x8x16x16xf32> to vector<1x1x16x16xf32>
    %686 = vector.shape_cast %685 : vector<1x1x16x16xf32> to vector<1x16x16xf32>
    %c7_308 = arith.constant 7 : index
    %c3_309 = arith.constant 3 : index
    %687 = memref.load %arg8[%c7_308, %c3_309] : memref<8x8xf32, #tpu.memory_space<smem>>
    %688 = vector.broadcast %687 : f32 to vector<1x16x16xf32>
    %689 = arith.mulf %686, %688 : vector<1x16x16xf32>
    %690 = arith.addf %684, %689 : vector<1x16x16xf32>
    %691 = vector.extract_strided_slice %317 {offsets = [0, 4, 0, 0], sizes = [1, 1, 16, 16], strides = [1, 1, 1, 1]} : vector<1x8x16x16xf32> to vector<1x1x16x16xf32>
    %692 = vector.shape_cast %691 : vector<1x1x16x16xf32> to vector<1x16x16xf32>
    %c7_310 = arith.constant 7 : index
    %c4_311 = arith.constant 4 : index
    %693 = memref.load %arg8[%c7_310, %c4_311] : memref<8x8xf32, #tpu.memory_space<smem>>
    %694 = vector.broadcast %693 : f32 to vector<1x16x16xf32>
    %695 = arith.mulf %692, %694 : vector<1x16x16xf32>
    %696 = arith.addf %690, %695 : vector<1x16x16xf32>
    %697 = vector.extract_strided_slice %317 {offsets = [0, 5, 0, 0], sizes = [1, 1, 16, 16], strides = [1, 1, 1, 1]} : vector<1x8x16x16xf32> to vector<1x1x16x16xf32>
    %698 = vector.shape_cast %697 : vector<1x1x16x16xf32> to vector<1x16x16xf32>
    %c7_312 = arith.constant 7 : index
    %c5_313 = arith.constant 5 : index
    %699 = memref.load %arg8[%c7_312, %c5_313] : memref<8x8xf32, #tpu.memory_space<smem>>
    %700 = vector.broadcast %699 : f32 to vector<1x16x16xf32>
    %701 = arith.mulf %698, %700 : vector<1x16x16xf32>
    %702 = arith.addf %696, %701 : vector<1x16x16xf32>
    %703 = vector.extract_strided_slice %317 {offsets = [0, 6, 0, 0], sizes = [1, 1, 16, 16], strides = [1, 1, 1, 1]} : vector<1x8x16x16xf32> to vector<1x1x16x16xf32>
    %704 = vector.shape_cast %703 : vector<1x1x16x16xf32> to vector<1x16x16xf32>
    %c7_314 = arith.constant 7 : index
    %c6_315 = arith.constant 6 : index
    %705 = memref.load %arg8[%c7_314, %c6_315] : memref<8x8xf32, #tpu.memory_space<smem>>
    %706 = vector.broadcast %705 : f32 to vector<1x16x16xf32>
    %707 = arith.mulf %704, %706 : vector<1x16x16xf32>
    %708 = arith.addf %702, %707 : vector<1x16x16xf32>
    %709 = vector.extract_strided_slice %317 {offsets = [0, 7, 0, 0], sizes = [1, 1, 16, 16], strides = [1, 1, 1, 1]} : vector<1x8x16x16xf32> to vector<1x1x16x16xf32>
    %710 = vector.shape_cast %709 : vector<1x1x16x16xf32> to vector<1x16x16xf32>
    %c7_316 = arith.constant 7 : index
    %c7_317 = arith.constant 7 : index
    %711 = memref.load %arg8[%c7_316, %c7_317] : memref<8x8xf32, #tpu.memory_space<smem>>
    %712 = vector.broadcast %711 : f32 to vector<1x16x16xf32>
    %713 = arith.mulf %710, %712 : vector<1x16x16xf32>
    %714 = arith.addf %708, %713 : vector<1x16x16xf32>
    %c7_318 = arith.constant 7 : index
    %715 = memref.load %arg9[%c7_318] : memref<8xf32, #tpu.memory_space<smem>>
    %716 = vector.broadcast %715 : f32 to vector<1x16x16xf32>
    %717 = arith.addf %714, %716 : vector<1x16x16xf32>
    %718 = vector.shape_cast %367 : vector<1x16x16xf32> to vector<1x1x16x16xf32>
    %719 = vector.shape_cast %417 : vector<1x16x16xf32> to vector<1x1x16x16xf32>
    %720 = vector.shape_cast %467 : vector<1x16x16xf32> to vector<1x1x16x16xf32>
    %721 = vector.shape_cast %517 : vector<1x16x16xf32> to vector<1x1x16x16xf32>
    %722 = vector.shape_cast %567 : vector<1x16x16xf32> to vector<1x1x16x16xf32>
    %723 = vector.shape_cast %617 : vector<1x16x16xf32> to vector<1x1x16x16xf32>
    %724 = vector.shape_cast %667 : vector<1x16x16xf32> to vector<1x1x16x16xf32>
    %725 = vector.shape_cast %717 : vector<1x16x16xf32> to vector<1x1x16x16xf32>
    %726 = tpu.concatenate %718, %719, %720, %721, %722, %723, %724, %725 in 1 : vector<1x1x16x16xf32>, vector<1x1x16x16xf32>, vector<1x1x16x16xf32>, vector<1x1x16x16xf32>, vector<1x1x16x16xf32>, vector<1x1x16x16xf32>, vector<1x1x16x16xf32>, vector<1x1x16x16xf32> -> vector<1x8x16x16xf32>
    %727 = arith.negf %726 : vector<1x8x16x16xf32>
    %728 = math.exp %727 : vector<1x8x16x16xf32>
    %cst_319 = arith.constant 1.000000e+00 : f32
    %729 = vector.broadcast %cst_319 : f32 to vector<1x8x16x16xf32>
    %730 = arith.addf %729, %728 : vector<1x8x16x16xf32>
    %731 = arith.divf %729, %730 : vector<1x8x16x16xf32>
    %732 = arith.mulf %726, %731 : vector<1x8x16x16xf32>
    %733 = arith.addf %732, %276 : vector<1x8x16x16xf32>
    %cst_320 = arith.constant 0.000000e+00 : f32
    %734 = vector.broadcast %cst_320 : f32 to vector<1x8x16x16xf32>
    %735 = arith.maximumf %733, %734 : vector<1x8x16x16xf32>
    %c0_321 = arith.constant 0 : index
    %c0_322 = arith.constant 0 : index
    %c0_323 = arith.constant 0 : index
    %c0_324 = arith.constant 0 : index
    %736 = vector.load %arg10[%c0_321, %c0_322, %c0_323, %c0_324] : memref<1x8x16x16xf32, #tpu.memory_space<vmem>>, vector<1x8x16x16xf32>
    tpu.vector_store %arg10[%c0_321, %c0_322, %c0_323, %c0_324], %735 {strides = array<i32>} : memref<1x8x16x16xf32, #tpu.memory_space<vmem>>, vector<1x8x16x16xf32>,
    return
  }
  func.func @transform_0(%arg0: i32) -> (i32, i32, i32, i32) {
    %c0_i32 = arith.constant 0 : i32
    %c0_i32_0 = arith.constant 0 : i32
    %c0_i32_1 = arith.constant 0 : i32
    %c0_i32_2 = arith.constant 0 : i32
    return %arg0, %c0_i32, %c0_i32_0, %c0_i32_1 : i32, i32, i32, i32
  }
  func.func @transform_1(%arg0: i32) -> (i32, i32, i32, i32) {
    %c0_i32 = arith.constant 0 : i32
    %c0_i32_0 = arith.constant 0 : i32
    %c0_i32_1 = arith.constant 0 : i32
    %c0_i32_2 = arith.constant 0 : i32
    %c0_i32_3 = arith.constant 0 : i32
    return %c0_i32, %c0_i32_0, %c0_i32_1, %c0_i32_2 : i32, i32, i32, i32
  }
  func.func @transform_2(%arg0: i32) -> (i32, i32, i32, i32) {
    %c0_i32 = arith.constant 0 : i32
    %c0_i32_0 = arith.constant 0 : i32
    %c0_i32_1 = arith.constant 0 : i32
    %c0_i32_2 = arith.constant 0 : i32
    %c0_i32_3 = arith.constant 0 : i32
    return %c0_i32, %c0_i32_0, %c0_i32_1, %c0_i32_2 : i32, i32, i32, i32
  }
  func.func @transform_3(%arg0: i32) -> (i32, i32) {
    %c0_i32 = arith.constant 0 : i32
    %c0_i32_0 = arith.constant 0 : i32
    %c0_i32_1 = arith.constant 0 : i32
    return %c0_i32, %c0_i32_0 : i32, i32
  }
  func.func @transform_4(%arg0: i32) -> i32 {
    %c0_i32 = arith.constant 0 : i32
    %c0_i32_0 = arith.constant 0 : i32
    return %c0_i32 : i32
  }
  func.func @transform_5(%arg0: i32) -> (i32, i32, i32, i32) {
    %c0_i32 = arith.constant 0 : i32
    %c0_i32_0 = arith.constant 0 : i32
    %c0_i32_1 = arith.constant 0 : i32
    %c0_i32_2 = arith.constant 0 : i32
    %c0_i32_3 = arith.constant 0 : i32
    return %c0_i32, %c0_i32_0, %c0_i32_1, %c0_i32_2 : i32, i32, i32, i32
  }
  func.func @transform_6(%arg0: i32) -> (i32, i32, i32, i32) {
    %c0_i32 = arith.constant 0 : i32
    %c0_i32_0 = arith.constant 0 : i32
    %c0_i32_1 = arith.constant 0 : i32
    %c0_i32_2 = arith.constant 0 : i32
    %c0_i32_3 = arith.constant 0 : i32
    return %c0_i32, %c0_i32_0, %c0_i32_1, %c0_i32_2 : i32, i32, i32, i32
  }
  func.func @transform_7(%arg0: i32) -> (i32, i32) {
    %c0_i32 = arith.constant 0 : i32
    %c0_i32_0 = arith.constant 0 : i32
    %c0_i32_1 = arith.constant 0 : i32
    return %c0_i32, %c0_i32_0 : i32, i32
  }
  func.func @transform_8(%arg0: i32) -> i32 {
    %c0_i32 = arith.constant 0 : i32
    %c0_i32_0 = arith.constant 0 : i32
    return %c0_i32 : i32
  }
  func.func @transform_9(%arg0: i32) -> (i32, i32, i32, i32) {
    %c0_i32 = arith.constant 0 : i32
    %c0_i32_0 = arith.constant 0 : i32
    %c0_i32_1 = arith.constant 0 : i32
    %c0_i32_2 = arith.constant 0 : i32
    return %arg0, %c0_i32, %c0_i32_0, %c0_i32_1 : i32, i32, i32, i32
  }
}

</mosaic_0001>

<bundles_post_ra>
// kernel: tpu_custom_call.1
= control target key start
LH: loop header
LB: loop body
LE: loop exit
PB: predicated region body
PF: predicated region fallthrough
CT: control target
= control target key end

     0   :  { %s6714_s0 = inlined_call_operand.vmem [shape: f32[2,4,16,16], index: 0, kind: input, shape index: {}]   ;;  %s6715_s1 = inlined_call_operand.vmem [shape: f32[3,4,16,1], index: 1, kind: input, shape index: {}]   ;;  %s6716_s2 = inlined_call_operand.vmem [shape: f32[3,4,16,1], index: 2, kind: input, shape index: {}]   ;;  %s6717_s3 = inlined_call_operand.vmem [shape: f32[8,4], index: 3, kind: input, shape index: {}]   ;;  %s6718_s4 = inlined_call_operand.vmem [shape: f32[8], index: 4, kind: input, shape index: {}]   ;;  %s6719_s5 = inlined_call_operand.vmem [shape: f32[3,8,16,1], index: 5, kind: input, shape index: {}]   ;;  %s6720_s6 = inlined_call_operand.vmem [shape: f32[3,8,16,1], index: 6, kind: input, shape index: {}]   ;;  %s6721_s7 = inlined_call_operand.vmem [shape: f32[8,8], index: 7, kind: input, shape index: {}]   ;;  %s6722_s8 = inlined_call_operand.vmem [shape: f32[8], index: 8, kind: input, shape index: {}]   ;;  %s6723_s9 = inlined_call_operand.hbm [shape: f32[2,8,16,16], index: 9, kind: output, shape index: {}]  }
   0x1   :  { %6894 = sst [smem:[#allocation115_spill]] %s6714_s0 }
   0x2   :  { %6895 = sst [smem:[#allocation116_spill]] %s6715_s1 }
   0x3   :  { %6896 = sst [smem:[#allocation117_spill]] %s6716_s2 }
   0x4   :  { %6897 = sst [smem:[#allocation118_spill]] %s6717_s3 }
   0x5   :  { %6898 = sst [smem:[#allocation119_spill]] %s6718_s4 }
   0x6   :  { %6899 = sst [smem:[#allocation120_spill]] %s6719_s5 }
   0x7   :  { %6900 = sst [smem:[#allocation121_spill]] %s6720_s6 }
   0x8   :  { %6901 = sst [smem:[#allocation122_spill]] %s6721_s7 }
   0x9   :  { %6902 = sst [smem:[#allocation123_spill]] %s6722_s8 }
   0xa   :  { %6903 = sst [smem:[#allocation124_spill]] %s6723_s9 }
   0xb   :  { %14 = vsyncpa [#allocation5], 0 }
   0xc   :  { %15 = vsyncpa [#allocation7], 0 }
   0xd   :  { %16 = vsyncpa [#allocation10], 0 }
   0xe   :  { %17 = vsyncpa [#allocation4], 0 }
   0xf   :  { %19 = vsyncpa [#allocation4 + $0x1], 0  ;;  %s4044_s30 = smov 0   ;;  %s4046_s10 = smov 0  }
  0x10   :  { %s4048_s11 = smov 0   ;;  %s4050_s12 = smov 0  }
  0x11 LB: > { %6904 = sst [smem:[#allocation16_spill]] %s3968_s30  ;;  %s4065_s13 = sadd.s32 4294967295, %s3980_s12   ;;  %s3980_s12 = sphi %s4050_s12, %s7310_s12   ;;  %s3976_s11 = sphi %s4048_s11, %s7313_s11   ;;  %s3972_s10 = sphi %s4046_s10, %s7312_s10   ;;  %s3968_s30 = sphi %s4044_s30, %s7311_s30  }
  0x12   : > { %6905 = sst [smem:[#allocation17_spill]] %s3972_s10  ;;  %s3371_s14 = sadd.s32 4294967294, %s3980_s12  }
  0x13   : > { %6906 = sst [smem:[#allocation18_spill]] %s3976_s11  ;;  %s4069_s15 = sadd.s32 1, %s3980_s12  }
  0x14   : > { %6907 = sst [smem:[#allocation19_spill]] %s3980_s12  ;;  %s226_s16 = sadd.s32 1, %s3976_s11 }
  0x15   : > { %6908 = sst [smem:[#allocation20_spill]] %s4065_s13  ;;  %s223_s17 = ssub.s32 %s3980_s12, %s4069_s15 }
  0x16   : > { %6909 = sst [smem:[#allocation21_spill]] %s4069_s15  ;;  %p236_p0 = scmp.ne.s32.totalorder %s3976_s11, %s3972_s10 }
  0x17   : > { %p224_p1 = scmp.eq.s32.totalorder %s223_s17, 0  ;;  %p237_p2 = scmp.eq.s32.totalorder %s4065_s13, 1 }
  0x18   : > { %p242_p3 = scmp.ne.s32.totalorder %s3972_s10, %s3968_s30  ;;  %p243_p4 = scmp.eq.s32.totalorder %s3371_s14, 1 }
  0x19   : > { %s4080_s18 = scalar_select %p224_p1, %s3976_s11, %s226_s16  }
  0x1a   : > { %p4082_p5 = por %p237_p2, %p236_p0  ;;  %p4086_p6 = por %p243_p4, %p242_p3 }
  0x1b   : > { %6910 = sst [smem:[#allocation22_spill]] %s4080_s18  ;;  %p3372_p7 = scmp.ge.s32.totalorder %s3980_s12, 1 }
  0x1c   : > { %s6911_s19 = scalar_select %p4082_p5, 1, 0 }
  0x1d   : > { %s6913_s20 = scalar_select %p4086_p6, 1, 0 }
  0x1e   : > { %6912 = sst [smem:[#allocation23_spill]] %s6911_s19  ;;  %p250_p8 = scmp.lt.s32.totalorder %s3980_s12, 3 }
  0x1f   : > { %6914 = sst [smem:[#allocation24_spill]] %s6913_s20  ;;  %p6724_p9 = scmp.eq.s32.totalorder %s4065_s13, 0 }
  0x20   : > { %p4093_p10 = pnand %p3372_p7, %p250_p8  ;;  %s6916_s4 = sld [smem:[#allocation119_spill]] }
  0x21   : > { %s6917_s3 = sld [smem:[#allocation118_spill]]  ;;  %s6919_s7 = sld [smem:[#allocation122_spill]] }
  0x22   : > { %s6915_s21 = scalar_select %p4093_p10, 1, 0 }
  0x23   : > { %p3647_p11 = pneg %p4093_p10  ;;  %s6920_s8 = sld [smem:[#allocation123_spill]] }
  0x25   : > { %p4107_p12 = pnand %p6724_p9, %p3647_p11 }
  0x26   : > { %s280_s24 = sshll.u32 %s6916_s4, 4  ;;  %s281_s24 = int_to_ptr.vmem [resolvable:$true] %s280_s24 }
  0x27   : > { %s269_s27 = sshll.u32 %s6917_s3, 4  ;;  %s297_s16 = sshll.u32 %s6919_s7, 4  ;;  %s270_s27 = int_to_ptr.vmem [resolvable:$true] %s269_s27  ;;  %s4114_s16 = int_to_ptr.vmem [resolvable:$true] %s297_s16 }
  0x28   : > { %s3846_s25 = scalar_lea.vmem %s281_s24, 16  ;;  %p3848_p0 = pneg %p4107_p12 }
  0x29   : > { %s308_s23 = sshll.u32 %s6920_s8, 4  ;;  %p3847_p13 = scmp.ne.s32.totalorder %s281_s24, %s3846_s25  ;;  %s309_s23 = int_to_ptr.vmem [resolvable:$true] %s308_s23 }
  0x2a   : > { %p3854_p3 = scmp.lt.s32.totalorder %s281_s24, %s281_s24  ;;  %p3855_p4 = scmp.lt.s32.totalorder %s3846_s25, %s3846_s25 }
  0x2b   : > { %p3849_p1 = pnand %p3848_p0, %p3847_p13 }
  0x2c   : > { %p3856_p7 = por %p3855_p4, %p3854_p3 }
  0x2d   : > { %p3850_p2 = pneg %p3849_p1 }
  0x2f   : > { %p3857_p8 = pnand %p3856_p7, %p3850_p2 }
  0x31   : > { %3860 = shalt.err (!%p3857_p8)
}
  0x32   : > { %s3982_s26 = smov [#allocation6]   ;;  %s3861_s29 = scalar_lea.vmem %s270_s27, 128 }
  0x33   : > { %3653 = dma.vmem_to_smem (!%p4107_p12), %s281_s24, 16, %s3982_s26, [#allocation7]  }
  0x34   : > { %p3862_p11 = scmp.ne.s32.totalorder %s270_s27, %s3861_s29  ;;  %p3869_p5 = scmp.lt.s32.totalorder %s270_s27, %s270_s27 }
  0x35   : > { %p3870_p10 = scmp.lt.s32.totalorder %s3861_s29, %s3861_s29 }
  0x36   : > { %p3864_p9 = pnand %p3862_p11, %p3848_p0 }
  0x37   : > { %p3871_p13 = por %p3870_p10, %p3869_p5 }
  0x38   : > { %p3865_p6 = pneg %p3864_p9 }
  0x3a   : > { %p3872_p1 = pnand %p3871_p13, %p3865_p6 }
  0x3c   : > { %3875 = shalt.err (!%p3872_p1)
}
  0x3d   : > { %s3983_s14 = smov [#allocation3]   ;;  %s3876_s24 = scalar_lea.vmem %s4114_s16, 128 }
  0x3e   : > { %3650 = dma.vmem_to_smem (!%p4107_p12), %s270_s27, 128, %s3983_s14, [#allocation5]  }
  0x3f   : > { %p3877_p2 = scmp.ne.s32.totalorder %s4114_s16, %s3876_s24  ;;  %p3884_p9 = scmp.lt.s32.totalorder %s4114_s16, %s4114_s16 }
  0x40   : > { %p3885_p7 = scmp.lt.s32.totalorder %s3876_s24, %s3876_s24 }
  0x41   : > { %p3879_p3 = pnand %p3877_p2, %p3848_p0 }
  0x42   : > { %p3886_p5 = por %p3885_p7, %p3884_p9 }
  0x43   : > { %p3880_p4 = pneg %p3879_p3 }
  0x45   : > { %p3887_p6 = pnand %p3886_p5, %p3880_p4 }
  0x47   : > { %3890 = shalt.err (!%p3887_p6)
}
  0x48   : > { %s3984_s17 = smov [#allocation8]   ;;  %s3891_s25 = scalar_lea.vmem %s309_s23, 16 }
  0x49   : > { %3656 = dma.vmem_to_smem (!%p4107_p12), %s4114_s16, 128, %s3984_s17, [#allocation7]  }
  0x4a   : > { %p3892_p10 = scmp.ne.s32.totalorder %s309_s23, %s3891_s25  ;;  %p3899_p13 = scmp.lt.s32.totalorder %s309_s23, %s309_s23 }
  0x4b   : > { %p3900_p1 = scmp.lt.s32.totalorder %s3891_s25, %s3891_s25 }
  0x4c   : > { %p3894_p8 = pnand %p3892_p10, %p3848_p0 }
  0x4d   : > { %p3901_p2 = por %p3900_p1, %p3899_p13 }
  0x4e   : > { %p3895_p11 = pneg %p3894_p8 }
  0x50   : > { %p3902_p3 = pnand %p3901_p2, %p3895_p11 }
  0x52   : > { %3905 = shalt.err (!%p3902_p3)
}
  0x53   : > { %s3985_s26 = smov [#allocation9]   ;;  %p6921_p4 = scmp.ne.s32.totalorder %s6915_s21, 0 }
  0x54   : > { %3659 = dma.vmem_to_smem (!%p4107_p12), %s309_s23, 16, %s3985_s26, [#allocation10]  }
  0x55   : > { %329 = sbr.rel (%p6921_p4) target bundleno = 1418 (0x58a), region = 56 }
  0x5c   : > { %p6922_p9 = scmp.eq.s32.totalorder %s4065_s13, 0 }
  0x5e   : > { %3951 = dma.done.wait (%p6922_p9), [#allocation5], 128   ;;  %p6923_p7 = pmov %p6922_p9 }
  0x60   : > { %3953 = vsyncadd (%p6923_p7), [#allocation5], 4294967168  ;;  %p6924_p0 = pmov %p6923_p7 }
  0x62   : > { %3955 = dma.done.wait (%p6924_p0), [#allocation7], 144   ;;  %p6925_p5 = pmov %p6924_p0 }
  0x63   : > { %p6926_p6 = pmov %p6924_p0 }
  0x64   : > { %3957 = vsyncadd (%p6925_p5), [#allocation7], 4294967152 }
  0x65   : > { %3959 = dma.done.wait (%p6926_p6), [#allocation10], 16   ;;  %p6927_p12 = pmov %p6924_p0 }
  0x67   : > { %3961 = vsyncadd (%p6927_p12), [#allocation10], 4294967280 }
  0x68   : > { %347 = sfence }
  0x69   : > { %p378_p10 = scmp.lt.s32.totalorder %s4065_s13, 1  ;;  %v3986_v0 = vmov 0   ;;  %vm383_vm0 = vcmask 155648   ;;  %vm400_vm1 = vcmask 15360   ;;  %v3987_v1 = vmov 0.0   ;;  %s6928_s0 = sld [smem:[#allocation115_spill]] }
  0x6a   : > { %3717 = vset.pattern.permute.xlu1 %v3986_v0  ;;  %3716 = vset.pattern.permute.xlu0 %v3986_v0  ;;  %385 = vst.msk [vmem:[#allocation2 + $0x18] sm:$0x1] %vm383_vm0, %v3987_v1  ;;  %vm426_vm2 = vcmask 162960   ;;  %384 = vst.msk [vmem:[#allocation2] sm:$0x1] %vm383_vm0, %v3987_v1  ;;  %vm403_vm3 = vcmask 9216  }
  0x6b   : > { %s4166_s21 = scalar_select %p378_p10, %s4065_s13, 1  ;;  %406 = vst.msk [vmem:[#allocation2 + $0x20] sm:$0xff] %vm400_vm1, %v3987_v1  ;;  %402 = vst.msk [vmem:[#allocation2 + $0x8] sm:$0xff] %vm400_vm1, %v3987_v1  ;;  %vm429_vm4 = vcmask 156816   ;;  %vm492_vm5 = vcmask 146448   ;;  %vm3237_vm6 = vcmask 130048  }
  0x6c   : > { %386 = vst.msk [vmem:[#allocation2 + $0x30] sm:$0x1] %vm383_vm0, %v3987_v1  ;;  %387 = vst.msk [vmem:[#allocation2 + $0x48] sm:$0x1] %vm383_vm0, %v3987_v1  ;;  %s6731_s14 = smov 2   ;;  %s6929_s1 = sld [smem:[#allocation116_spill]] }
  0x6d   : > { %388 = vst.msk [vmem:[#allocation2 + $0x60] sm:$0x1] %vm383_vm0, %v3987_v1  ;;  %389 = vst.msk [vmem:[#allocation2 + $0x78] sm:$0x1] %vm383_vm0, %v3987_v1  ;;  %s3627_s28 = sshll.u32 %s4166_s21, 6  ;;  %s6930_s2 = sld [smem:[#allocation117_spill]] }
  0x6e   : > { %390 = vst.msk [vmem:[#allocation2 + $0x90] sm:$0x1] %vm383_vm0, %v3987_v1  ;;  %391 = vst.msk [vmem:[#allocation2 + $0xa8] sm:$0x1] %vm383_vm0, %v3987_v1  ;;  %s6729_s25 = smov 126   ;;  %s6727_s26 = smov 124  }
  0x6f   : > { %392 = vst.msk [vmem:[#allocation2 + $0x11] sm:$0x1] %vm383_vm0, %v3987_v1  ;;  %393 = vst.msk [vmem:[#allocation2 + $0x29] sm:$0x1] %vm383_vm0, %v3987_v1  ;;  %s382_s29 = scalar_lea.vmem %s6928_s0, %s3627_s28  ;;  %s6931_s5 = sld [smem:[#allocation120_spill]] }
  0x70   : > { %394 = vst.msk [vmem:[#allocation2 + $0x41] sm:$0x1] %vm383_vm0, %v3987_v1  ;;  %395 = vst.msk [vmem:[#allocation2 + $0x59] sm:$0x1] %vm383_vm0, %v3987_v1  ;;  %v454_v2 = vld [vmem:[%s382_s29 + $0x10] sm:$0xff]  ;;  %v452_v3 = vld [vmem:[%s382_s29] sm:$0xff] }
  0x71   : > { %396 = vst.msk [vmem:[#allocation2 + $0x71] sm:$0x1] %vm383_vm0, %v3987_v1  ;;  %397 = vst.msk [vmem:[#allocation2 + $0x89] sm:$0x1] %vm383_vm0, %v3987_v1  ;;  %472 = vrot.lane.b32.xlu1 %v454_v2, %s6731_s14  ;;  %468 = vrot.lane.b32.xlu0 %v452_v3, %s6731_s14  ;;  %v455_v4 = vld [vmem:[%s382_s29 + $0x18] sm:$0xff]  ;;  %v453_v5 = vld [vmem:[%s382_s29 + $0x8] sm:$0xff] }
  0x72   : > { %398 = vst.msk [vmem:[#allocation2 + $0xa1] sm:$0x1] %vm383_vm0, %v3987_v1  ;;  %399 = vst.msk [vmem:[#allocation2 + $0xb9] sm:$0x1] %vm383_vm0, %v3987_v1  ;;  %v457_v6 = vld [vmem:[%s382_s29 + $0x28] sm:$0xff]  ;;  %v456_v7 = vld [vmem:[%s382_s29 + $0x20] sm:$0xff] }
  0x73   : > { %409 = vst.msk [vmem:[#allocation2 + $0x38] sm:$0xff] %vm400_vm1, %v3987_v1  ;;  %412 = vst.msk [vmem:[#allocation2 + $0x50] sm:$0xff] %vm400_vm1, %v3987_v1  ;;  %v459_v8 = vld [vmem:[%s382_s29 + $0x38] sm:$0xff]  ;;  %v458_v9 = vld [vmem:[%s382_s29 + $0x30] sm:$0xff]  ;;  %s4723_s28 = sld [smem:[#allocation3]]  ;;  %s4731_s24 = sld [smem:[#allocation3 + $0x1]] }
  0x74   : > { %415 = vst.msk [vmem:[#allocation2 + $0x68] sm:$0xff] %vm400_vm1, %v3987_v1  ;;  %418 = vst.msk [vmem:[#allocation2 + $0x80] sm:$0xff] %vm400_vm1, %v3987_v1  ;;  %v510_v10 = vld [vmem:[%s6929_s1 + $0x8] sm:$0xff]  ;;  %v509_v11 = vld [vmem:[%s6929_s1] sm:$0xff]  ;;  %s4725_s16 = sld [smem:[#allocation3 + $0x80]]  ;;  %s4737_s22 = sld [smem:[#allocation3 + $0x101]] }
  0x75   : > { %421 = vst.msk [vmem:[#allocation2 + $0x98] sm:$0xff] %vm400_vm1, %v3987_v1  ;;  %424 = vst.msk [vmem:[#allocation2 + $0xb0] sm:$0xff] %vm400_vm1, %v3987_v1  ;;  %474 = vrot.lane.b32.xlu1 %v455_v4, %s6731_s14  ;;  %470 = vrot.lane.b32.xlu0 %v453_v5, %s6731_s14  ;;  %v511_v12 = vld [vmem:[%s6929_s1 + $0x10] sm:$0xff]  ;;  %v512_v13 = vld [vmem:[%s6929_s1 + $0x18] sm:$0xff]  ;;  %s4727_s23 = sld [smem:[#allocation3 + $0x100]]  ;;  %s4739_s27 = sld [smem:[#allocation3 + $0x181]] }
  0x76   : > { %405 = vst.msk [vmem:[#allocation2 + $0x18] sm:$0xff] %vm400_vm1, %v3987_v1  ;;  %401 = vst.msk [vmem:[#allocation2] sm:$0xff] %vm400_vm1, %v3987_v1  ;;  %v513_v14 = vld [vmem:[%s6929_s1 + $0x20] sm:$0xff]  ;;  %v514_v15 = vld [vmem:[%s6929_s1 + $0x28] sm:$0xff]  ;;  %s4729_s29 = sld [smem:[#allocation3 + $0x180]]  ;;  %s4741_s21 = sld [smem:[#allocation3 + $0x201]] }
  0x77   : > { %432 = vst.msk [vmem:[#allocation2 + $0x20] sm:$0xff] %vm426_vm2, %v3987_v1  ;;  %428 = vst.msk [vmem:[#allocation2 + $0x8] sm:$0xff] %vm426_vm2, %v3987_v1  ;;  %v515_v16 = vld [vmem:[%s6929_s1 + $0x30] sm:$0xff]  ;;  %v516_v17 = vld [vmem:[%s6929_s1 + $0x38] sm:$0xff]  ;;  %s4733_s17 = sld [smem:[#allocation3 + $0x200]]  ;;  %s4747_s0 = sld [smem:[#allocation3 + $0x102]] }
  0x78   : > { %408 = vst.msk [vmem:[#allocation2 + $0x30] sm:$0xff] %vm400_vm1, %v3987_v1  ;;  %411 = vst.msk [vmem:[#allocation2 + $0x48] sm:$0xff] %vm400_vm1, %v3987_v1  ;;  %v3386_v18 = vld [vmem:[%s6929_s1 + $0x40] sm:$0xff]  ;;  %v3387_v19 = vld [vmem:[%s6929_s1 + $0x48] sm:$0xff]  ;;  %s4759_s3 = sld [smem:[#allocation3 + $0x280]]  ;;  %s4769_s4 = sld [smem:[#allocation3 + $0x3]] }
  0x79   : > { %414 = vst.msk [vmem:[#allocation2 + $0x60] sm:$0xff] %vm400_vm1, %v3987_v1  ;;  %417 = vst.msk [vmem:[#allocation2 + $0x78] sm:$0xff] %vm400_vm1, %v3987_v1  ;;  %478 = vrot.lane.b32.xlu1 %v457_v6, %s6731_s14  ;;  %476 = vrot.lane.b32.xlu0 %v456_v7, %s6731_s14  ;;  %v3388_v20 = vld [vmem:[%s6929_s1 + $0x50] sm:$0xff]  ;;  %v3389_v21 = vld [vmem:[%s6929_s1 + $0x58] sm:$0xff]  ;;  %6933 = sst [smem:[#allocation26_spill]] %s4731_s24  ;;  %s4771_s7 = sld [smem:[#allocation3 + $0x83]] }
  0x7a   : > { %420 = vst.msk [vmem:[#allocation2 + $0x90] sm:$0xff] %vm400_vm1, %v3987_v1  ;;  %423 = vst.msk [vmem:[#allocation2 + $0xa8] sm:$0xff] %vm400_vm1, %v3987_v1  ;;  %v3390_v22 = vld [vmem:[%s6929_s1 + $0x60] sm:$0xff]  ;;  %v3391_v23 = vld [vmem:[%s6929_s1 + $0x68] sm:$0xff]  ;;  %6936 = sst [smem:[#allocation29_spill]] %s4737_s22  ;;  %s4778_s8 = sld [smem:[#allocation3 + $0x103]] }
  0x7b   : > { %435 = vst.msk [vmem:[#allocation2 + $0x38] sm:$0xff] %vm426_vm2, %v3987_v1  ;;  %438 = vst.msk [vmem:[#allocation2 + $0x50] sm:$0xff] %vm426_vm2, %v3987_v1  ;;  %v3392_v24 = vld [vmem:[%s6929_s1 + $0x70] sm:$0xff]  ;;  %v3393_v25 = vld [vmem:[%s6929_s1 + $0x78] sm:$0xff]  ;;  %6937 = sst [smem:[#allocation30_spill]] %s4739_s27  ;;  %s4780_s18 = sld [smem:[#allocation3 + $0x183]] }
  0x7c   : > { %441 = vst.msk [vmem:[#allocation2 + $0x68] sm:$0xff] %vm426_vm2, %v3987_v1  ;;  %444 = vst.msk [vmem:[#allocation2 + $0x80] sm:$0xff] %vm426_vm2, %v3987_v1  ;;  %v3394_v26 = vld [vmem:[%s6929_s1 + $0x80] sm:$0xff]  ;;  %v3395_v27 = vld [vmem:[%s6929_s1 + $0x88] sm:$0xff]  ;;  %6932 = sst [smem:[#allocation25_spill]] %s4729_s29  ;;  %s4786_s11 = sld [smem:[#allocation6]] }
  0x7d   : > { %447 = vst.msk [vmem:[#allocation2 + $0x98] sm:$0xff] %vm426_vm2, %v3987_v1  ;;  %450 = vst.msk [vmem:[#allocation2 + $0xb0] sm:$0xff] %vm426_vm2, %v3987_v1  ;;  %482 = vrot.lane.b32.xlu1 %v459_v8, %s6731_s14  ;;  %480 = vrot.lane.b32.xlu0 %v458_v9, %s6731_s14  ;;  %v3396_v28 = vld [vmem:[%s6929_s1 + $0x90] sm:$0xff]  ;;  %v3397_v29 = vld [vmem:[%s6929_s1 + $0x98] sm:$0xff]  ;;  %6934 = sst [smem:[#allocation27_spill]] %s4733_s17  ;;  %s4745_s14 = sld [smem:[#allocation3 + $0x82]] }
  0x7e   : > { %431 = vst.msk [vmem:[#allocation2 + $0x18] sm:$0xff] %vm426_vm2, %v3987_v1  ;;  %427 = vst.msk [vmem:[#allocation2] sm:$0xff] %vm426_vm2, %v3987_v1  ;;  %v3398_v30 = vld [vmem:[%s6929_s1 + $0xa0] sm:$0xff]  ;;  %v3399_v31 = vld [vmem:[%s6929_s1 + $0xa8] sm:$0xff]  ;;  %6938 = sst [smem:[#allocation31_spill]] %s4741_s21  ;;  %s4788_s15 = sld [smem:[#allocation3 + $0x281]] }
  0x7f   : > { %407 = vst.msk [vmem:[#allocation2 + $0x28] sm:$0x3] %vm403_vm3, %v3987_v1  ;;  %404 = vst.msk [vmem:[#allocation2 + $0x10] sm:$0x3] %vm403_vm3, %v3987_v1  ;;  %v3400_v32 = vld [vmem:[%s6929_s1 + $0xb0] sm:$0xff]  ;;  %v3401_v33 = vld [vmem:[%s6929_s1 + $0xb8] sm:$0xff] }
  0x80   : > { %410 = vst.msk [vmem:[#allocation2 + $0x40] sm:$0x3] %vm403_vm3, %v3987_v1  ;;  %413 = vst.msk [vmem:[#allocation2 + $0x58] sm:$0x3] %vm403_vm3, %v3987_v1  ;;  %v775_v34 = vld [vmem:[%s6930_s2] sm:$0xff]  ;;  %v776_v35 = vld [vmem:[%s6930_s2 + $0x8] sm:$0xff] }
  0x81   : > { %416 = vst.msk [vmem:[#allocation2 + $0x70] sm:$0x3] %vm403_vm3, %v3987_v1  ;;  %419 = vst.msk [vmem:[#allocation2 + $0x88] sm:$0x3] %vm403_vm3, %v3987_v1  ;;  %524 = vperm.xlu1 %3717, %v510_v10   ;;  %519 = vperm.xlu0 %3716, %v509_v11   ;;  %v777_v36 = vld [vmem:[%s6930_s2 + $0x10] sm:$0xff]  ;;  %v778_v37 = vld [vmem:[%s6930_s2 + $0x18] sm:$0xff] }
  0x82   : > { %422 = vst.msk [vmem:[#allocation2 + $0xa0] sm:$0x3] %vm403_vm3, %v3987_v1  ;;  %425 = vst.msk [vmem:[#allocation2 + $0xb8] sm:$0x3] %vm403_vm3, %v3987_v1  ;;  %v779_v38 = vld [vmem:[%s6930_s2 + $0x20] sm:$0xff]  ;;  %v780_v39 = vld [vmem:[%s6930_s2 + $0x28] sm:$0xff] }
  0x83   : > { %434 = vst.msk [vmem:[#allocation2 + $0x30] sm:$0xff] %vm426_vm2, %v3987_v1  ;;  %437 = vst.msk [vmem:[#allocation2 + $0x48] sm:$0xff] %vm426_vm2, %v3987_v1  ;;  %v781_v40 = vld [vmem:[%s6930_s2 + $0x30] sm:$0xff]  ;;  %v782_v41 = vld [vmem:[%s6930_s2 + $0x38] sm:$0xff]  ;;  %s4749_s1 = sld [smem:[#allocation3 + $0x182]]  ;;  %s4794_s20 = sld [smem:[#allocation6 + $0x1]] }
  0x84   : > { %440 = vst.msk [vmem:[#allocation2 + $0x60] sm:$0xff] %vm426_vm2, %v3987_v1  ;;  %443 = vst.msk [vmem:[#allocation2 + $0x78] sm:$0xff] %vm426_vm2, %v3987_v1  ;;  %v3402_v42 = vld [vmem:[%s6930_s2 + $0x40] sm:$0xff]  ;;  %v3403_v43 = vld [vmem:[%s6930_s2 + $0x48] sm:$0xff]  ;;  %6940 = sst [smem:[#allocation33_spill]] %s4788_s15  ;;  %s4796_s30 = sld [smem:[#allocation6 + $0x2]] }
  0x85   : > { %446 = vst.msk [vmem:[#allocation2 + $0x90] sm:$0xff] %vm426_vm2, %v3987_v1  ;;  %449 = vst.msk [vmem:[#allocation2 + $0xa8] sm:$0xff] %vm426_vm2, %v3987_v1  ;;  %529 = vperm.xlu1 %3717, %v511_v12   ;;  %534 = vperm.xlu0 %3716, %v512_v13   ;;  %v3404_v44 = vld [vmem:[%s6930_s2 + $0x50] sm:$0xff]  ;;  %s4802_s12 = sld [smem:[#allocation6 + $0x3]]  ;;  %s4810_s19 = sld [smem:[#allocation6 + $0x4]] }
  0x86   : > { %433 = vst.msk [vmem:[#allocation2 + $0x28] sm:$0x3] %vm429_vm4, %v3987_v1  ;;  %430 = vst.msk [vmem:[#allocation2 + $0x10] sm:$0x3] %vm429_vm4, %v3987_v1  ;;  %s4804_s9 = sld [smem:[#allocation3 + $0x203]]  ;;  %s4812_s13 = sld [smem:[#allocation3 + $0x300]] }
  0x87   : > { %436 = vst.msk [vmem:[#allocation2 + $0x40] sm:$0x3] %vm429_vm4, %v3987_v1  ;;  %439 = vst.msk [vmem:[#allocation2 + $0x58] sm:$0x3] %vm429_vm4, %v3987_v1  ;;  %s4818_s10 = sld [smem:[#allocation3 + $0x301]]  ;;  %s4820_s6 = sld [smem:[#allocation3 + $0x380]] }
  0x88   : > { %442 = vst.msk [vmem:[#allocation2 + $0x70] sm:$0x3] %vm429_vm4, %v3987_v1  ;;  %445 = vst.msk [vmem:[#allocation2 + $0x88] sm:$0x3] %vm429_vm4, %v3987_v1 }
  0x89   : > { %448 = vst.msk [vmem:[#allocation2 + $0xa0] sm:$0x3] %vm429_vm4, %v3987_v1  ;;  %451 = vst.msk [vmem:[#allocation2 + $0xb8] sm:$0x3] %vm429_vm4, %v3987_v1  ;;  %539 = vperm.xlu1 %3717, %v513_v14   ;;  %544 = vperm.xlu0 %3716, %v514_v15   ;;  %6941 = sst [smem:[#allocation34_spill]] %s4794_s20 }
  0x8b   : > { %6942 = sst [smem:[#allocation35_spill]] %s4802_s12 }
  0x8c   : > { %6943 = sst [smem:[#allocation36_spill]] %s4804_s9 }
  0x8d   : > { %549 = vperm.xlu1 %3717, %v515_v16   ;;  %554 = vperm.xlu0 %3716, %v516_v17   ;;  %6944 = sst [smem:[#allocation37_spill]] %s4810_s19  ;;  %s4858_s19 = sld [smem:[#allocation3 + $0x303]] }
  0x8e   : > { %6945 = sst [smem:[#allocation38_spill]] %s4818_s10  ;;  %s4832_s10 = sld [smem:[#allocation3 + $0x381]] }
  0x8f   : > { %6946 = sst [smem:[#allocation39_spill]] %s4820_s6  ;;  %s4846_s6 = sld [smem:[#allocation3 + $0x283]] }
  0x91   : > { %584 = vperm.xlu1 %3717, %v3386_v18   ;;  %589 = vperm.xlu0 %3716, %v3387_v19  }
  0x94   : > { %6948 = sst [smem:[#allocation41_spill]] %s4832_s10  ;;  %s4856_s10 = sld [smem:[#allocation6 + $0x5]] }
  0x95   : > { %594 = vperm.xlu1 %3717, %v3388_v20   ;;  %599 = vperm.xlu0 %3716, %v3389_v21  }
  0x99   : > { %604 = vperm.xlu1 %3717, %v3390_v22   ;;  %609 = vperm.xlu0 %3716, %v3391_v23  }
  0x9d   : > { %614 = vperm.xlu1 %3717, %v3392_v24   ;;  %619 = vperm.xlu0 %3716, %v3393_v25  }
  0xa1   : > { %681 = vperm.xlu1 %3717, %v3394_v26   ;;  %686 = vperm.xlu0 %3716, %v3395_v27  }
  0xa5   : > { %691 = vperm.xlu1 %3717, %v3396_v28   ;;  %696 = vperm.xlu0 %3716, %v3397_v29  }
  0xa9   : > { %701 = vperm.xlu1 %3717, %v3398_v30   ;;  %706 = vperm.xlu0 %3716, %v3399_v31  }
  0xad   : > { %711 = vperm.xlu1 %3717, %v3400_v32   ;;  %716 = vperm.xlu0 %3716, %v3401_v33  }
  0xb1   : > { %785 = vperm.xlu1 %3717, %v775_v34   ;;  %790 = vperm.xlu0 %3716, %v776_v35  }
  0xb5   : > { %795 = vperm.xlu1 %3717, %v777_v36   ;;  %800 = vperm.xlu0 %3716, %v778_v37  }
  0xb9   : > { %805 = vperm.xlu1 %3717, %v779_v38   ;;  %810 = vperm.xlu0 %3716, %v780_v39  }
  0xbd   : > { %815 = vperm.xlu1 %3717, %v781_v40   ;;  %820 = vperm.xlu0 %3716, %v782_v41  }
  0xc1   : > { %882 = vperm.xlu1 %3717, %v3402_v42   ;;  %887 = vperm.xlu0 %3716, %v3403_v43  }
  0xc5   : > { %892 = vperm.xlu1 %3717, %v3404_v44  }
  0xe3   : > { %v473_v45 = vpop.permute.xlu1 %472  ;;  %v469_v46 = vpop.permute.xlu0 %468 }
  0xe4   : > { %495 = vst.msk [vmem:[#allocation2 + $0x19] sm:$0xff] %vm492_vm5, %v473_v45  ;;  %493 = vst.msk [vmem:[#allocation2 + $0x1] sm:$0xff] %vm492_vm5, %v469_v46 }
  0xe7   : > { %v475_v47 = vpop.permute.xlu1 %474  ;;  %v471_v48 = vpop.permute.xlu0 %470 }
  0xe8   : > { %496 = vst.msk [vmem:[#allocation2 + $0x21] sm:$0xff] %vm492_vm5, %v475_v47  ;;  %494 = vst.msk [vmem:[#allocation2 + $0x9] sm:$0xff] %vm492_vm5, %v471_v48 }
  0xeb   : > { %v479_v49 = vpop.permute.xlu1 %478  ;;  %v477_v50 = vpop.permute.xlu0 %476  ;;  %v4431_v62 = vld [vmem:[#allocation2 + $0x1] sm:$0xff]  ;;  %v4437_v3 = vld [vmem:[#allocation2 + $0x19] sm:$0xff] }
  0xec   : > { %498 = vst.msk [vmem:[#allocation2 + $0x39] sm:$0xff] %vm492_vm5, %v479_v49  ;;  %497 = vst.msk [vmem:[#allocation2 + $0x31] sm:$0xff] %vm492_vm5, %v477_v50  ;;  %v767_v38 = vld [vmem:[#allocation2] sm:$0xff]  ;;  %v769_v43 = vld [vmem:[#allocation2 + $0x18] sm:$0xff] }
  0xef   : > { %v483_v51 = vpop.permute.xlu1 %482  ;;  %v481_v52 = vpop.permute.xlu0 %480  ;;  %v4429_v61 = vld [vmem:[#allocation2 + $0x9] sm:$0xff]  ;;  %v4439_v4 = vld [vmem:[#allocation2 + $0x21] sm:$0xff] }
  0xf0   : > { %500 = vst.msk [vmem:[#allocation2 + $0x51] sm:$0xff] %vm492_vm5, %v483_v51  ;;  %499 = vst.msk [vmem:[#allocation2 + $0x49] sm:$0xff] %vm492_vm5, %v481_v52  ;;  %v768_v39 = vld [vmem:[#allocation2 + $0x8] sm:$0xff]  ;;  %v770_v45 = vld [vmem:[#allocation2 + $0x20] sm:$0xff] }
  0xf3   : > { %v4445_v9 = vld [vmem:[#allocation2 + $0x31] sm:$0xff]  ;;  %v4447_v10 = vld [vmem:[#allocation2 + $0x39] sm:$0xff] }
  0xf4   : > { %v771_v50 = vld [vmem:[#allocation2 + $0x30] sm:$0xff]  ;;  %v772_v51 = vld [vmem:[#allocation2 + $0x38] sm:$0xff] }
  0xf7   : > { %v4453_v15 = vld [vmem:[#allocation2 + $0x49] sm:$0xff]  ;;  %v4455_v16 = vld [vmem:[#allocation2 + $0x51] sm:$0xff] }
 0x100   : > { %v4413_v53 = vpop.permute.xlu1 %524  ;;  %v4415_v54 = vpop.permute.xlu0 %519 }
 0x104   : > { %v4417_v55 = vpop.permute.xlu1 %529  ;;  %v4419_v56 = vpop.permute.xlu0 %534 }
 0x108   : > { %v4421_v57 = vpop.permute.xlu1 %539  ;;  %v4423_v58 = vpop.permute.xlu0 %544 }
 0x10c   : > { %v4425_v59 = vpop.permute.xlu1 %549  ;;  %v4427_v60 = vpop.permute.xlu0 %554 }
 0x110   : > { %v585_v63 = vpop.permute.xlu1 %584  ;;  %v590_v0 = vpop.permute.xlu0 %589 }
 0x111   : > { %v622_v1 = vmul.f32 %v585_v63, %v4431_v62  ;;  %v623_v2 = vmul.f32 %v590_v0, %v4429_v61 }
 0x113   : > { %638 = vrot.lane.b32.xlu1 %v622_v1, %s6729_s25  ;;  %640 = vrot.lane.b32.xlu0 %v623_v2, %s6729_s25  ;;  %v773_v2 = vld [vmem:[#allocation2 + $0x48] sm:$0xff] }
 0x114   : > { %v595_v5 = vpop.permute.xlu1 %594  ;;  %v600_v6 = vpop.permute.xlu0 %599 }
 0x115   : > { %v624_v7 = vmul.f32 %v595_v5, %v4437_v3  ;;  %v625_v8 = vmul.f32 %v600_v6, %v4439_v4  ;;  %v774_v5 = vld [vmem:[#allocation2 + $0x50] sm:$0xff] }
 0x117   : > { %642 = vrot.lane.b32.xlu1 %v624_v7, %s6729_s25  ;;  %644 = vrot.lane.b32.xlu0 %v625_v8, %s6729_s25 }
 0x118   : > { %v605_v11 = vpop.permute.xlu1 %604  ;;  %v610_v12 = vpop.permute.xlu0 %609 }
 0x119   : > { %v626_v13 = vmul.f32 %v605_v11, %v4445_v9  ;;  %v627_v14 = vmul.f32 %v610_v12, %v4447_v10  ;;  %v3406_v11 = vld [vmem:[%s6930_s2 + $0x60] sm:$0xff]  ;;  %v3405_v12 = vld [vmem:[%s6930_s2 + $0x58] sm:$0xff] }
 0x11b   : > { %646 = vrot.lane.b32.xlu1 %v626_v13, %s6729_s25  ;;  %648 = vrot.lane.b32.xlu0 %v627_v14, %s6729_s25  ;;  %v3408_v14 = vld [vmem:[%s6930_s2 + $0x70] sm:$0xff] }
 0x11c   : > { %v615_v17 = vpop.permute.xlu1 %614  ;;  %v620_v18 = vpop.permute.xlu0 %619 }
 0x11d   : > { %v628_v19 = vmul.f32 %v615_v17, %v4453_v15  ;;  %v629_v20 = vmul.f32 %v620_v18, %v4455_v16  ;;  %v3407_v17 = vld [vmem:[%s6930_s2 + $0x68] sm:$0xff]  ;;  %v3409_v18 = vld [vmem:[%s6930_s2 + $0x78] sm:$0xff] }
 0x11f   : > { %650 = vrot.lane.b32.xlu1 %v628_v19, %s6729_s25  ;;  %652 = vrot.lane.b32.xlu0 %v629_v20, %s6729_s25 }
 0x120   : > { %v682_v21 = vpop.permute.xlu1 %681  ;;  %v687_v22 = vpop.permute.xlu0 %686 }
 0x121   : > { %v719_v23 = vmul.f32 %v682_v21, %v4431_v62  ;;  %v720_v24 = vmul.f32 %v687_v22, %v4429_v61 }
 0x123   : > { %735 = vrot.lane.b32.xlu1 %v719_v23, %s6727_s26  ;;  %737 = vrot.lane.b32.xlu0 %v720_v24, %s6727_s26 }
 0x124   : > { %v692_v25 = vpop.permute.xlu1 %691  ;;  %v697_v26 = vpop.permute.xlu0 %696 }
 0x125   : > { %v721_v27 = vmul.f32 %v692_v25, %v4437_v3  ;;  %v722_v28 = vmul.f32 %v697_v26, %v4439_v4 }
 0x127   : > { %739 = vrot.lane.b32.xlu1 %v721_v27, %s6727_s26  ;;  %741 = vrot.lane.b32.xlu0 %v722_v28, %s6727_s26 }
 0x128   : > { %v702_v29 = vpop.permute.xlu1 %701  ;;  %v707_v30 = vpop.permute.xlu0 %706 }
 0x129   : > { %v723_v31 = vmul.f32 %v702_v29, %v4445_v9  ;;  %v724_v32 = vmul.f32 %v707_v30, %v4447_v10 }
 0x12b   : > { %743 = vrot.lane.b32.xlu1 %v723_v31, %s6727_s26  ;;  %745 = vrot.lane.b32.xlu0 %v724_v32, %s6727_s26 }
 0x12c   : > { %v712_v33 = vpop.permute.xlu1 %711  ;;  %v717_v34 = vpop.permute.xlu0 %716 }
 0x12d   : > { %v725_v35 = vmul.f32 %v712_v33, %v4453_v15  ;;  %v726_v36 = vmul.f32 %v717_v34, %v4455_v16 }
 0x12f   : > { %747 = vrot.lane.b32.xlu1 %v725_v35, %s6727_s26  ;;  %749 = vrot.lane.b32.xlu0 %v726_v36, %s6727_s26  ;;  %s4735_s26 = sld [smem:[#allocation3 + $0x81]] }
 0x130   : > { %v786_v37 = vpop.permute.xlu1 %785  ;;  %v791_v40 = vpop.permute.xlu0 %790 }
 0x131   : > { %v823_v41 = vmul.f32 %v786_v37, %v767_v38  ;;  %v824_v42 = vmul.f32 %v791_v40, %v768_v39 }
 0x133   : > { %839 = vrot.lane.b32.xlu1 %v823_v41, %s6729_s25  ;;  %841 = vrot.lane.b32.xlu0 %v824_v42, %s6729_s25 }
 0x134   : > { %v796_v44 = vpop.permute.xlu1 %795  ;;  %v801_v46 = vpop.permute.xlu0 %800 }
 0x135   : > { %v825_v47 = vmul.f32 %v796_v44, %v769_v43  ;;  %v826_v48 = vmul.f32 %v801_v46, %v770_v45  ;;  %6935 = sst [smem:[#allocation28_spill]] %s4735_s26 }
 0x137   : > { %843 = vrot.lane.b32.xlu1 %v825_v47, %s6729_s25  ;;  %845 = vrot.lane.b32.xlu0 %v826_v48, %s6729_s25 }
 0x138   : > { %v806_v49 = vpop.permute.xlu1 %805  ;;  %v811_v52 = vpop.permute.xlu0 %810 }
 0x139   : > { %v827_v63 = vmul.f32 %v806_v49, %v771_v50  ;;  %v828_v0 = vmul.f32 %v811_v52, %v772_v51 }
 0x13b   : > { %847 = vrot.lane.b32.xlu1 %v827_v63, %s6729_s25  ;;  %849 = vrot.lane.b32.xlu0 %v828_v0, %s6729_s25 }
 0x13c   : > { %v816_v1 = vpop.permute.xlu1 %815  ;;  %v821_v6 = vpop.permute.xlu0 %820 }
 0x13d   : > { %v829_v7 = vmul.f32 %v816_v1, %v773_v2  ;;  %v830_v8 = vmul.f32 %v821_v6, %v774_v5  ;;  %v3410_v5 = vld [vmem:[%s6930_s2 + $0x80] sm:$0xff] }
 0x13f   : > { %851 = vrot.lane.b32.xlu1 %v829_v7, %s6729_s25  ;;  %853 = vrot.lane.b32.xlu0 %v830_v8, %s6729_s25  ;;  %v3412_v7 = vld [vmem:[%s6930_s2 + $0x90] sm:$0xff]  ;;  %v3411_v8 = vld [vmem:[%s6930_s2 + $0x88] sm:$0xff] }
 0x140   : > { %v883_v13 = vpop.permute.xlu1 %882  ;;  %v888_v20 = vpop.permute.xlu0 %887 }
 0x141   : > { %v920_v19 = vmul.f32 %v883_v13, %v4431_v62  ;;  %v921_v22 = vmul.f32 %v888_v20, %v4429_v61  ;;  %v3416_v13 = vld [vmem:[%s6930_s2 + $0xb0] sm:$0xff] }
 0x143   : > { %902 = vperm.xlu1 %3717, %v3406_v11   ;;  %897 = vperm.xlu0 %3716, %v3405_v12   ;;  %v3414_v11 = vld [vmem:[%s6930_s2 + $0xa0] sm:$0xff]  ;;  %v3413_v12 = vld [vmem:[%s6930_s2 + $0x98] sm:$0xff] }
 0x144   : > { %v893_v21 = vpop.permute.xlu1 %892 }
 0x145   : > { %v922_v23 = vmul.f32 %v893_v21, %v4437_v3 }
 0x147   : > { %912 = vperm.xlu1 %3717, %v3408_v14   ;;  %907 = vperm.xlu0 %3716, %v3407_v17   ;;  %v3415_v14 = vld [vmem:[%s6930_s2 + $0xa8] sm:$0xff]  ;;  %v3417_v17 = vld [vmem:[%s6930_s2 + $0xb8] sm:$0xff]  ;;  %s4757_s2 = sld [smem:[#allocation3 + $0x202]] }
 0x14b   : > { %936 = vrot.lane.b32.xlu1 %v920_v19, %s6729_s25  ;;  %917 = vperm.xlu0 %3716, %v3409_v18  }
 0x14f   : > { %940 = vrot.lane.b32.xlu1 %v922_v23, %s6729_s25  ;;  %938 = vrot.lane.b32.xlu0 %v921_v22, %s6729_s25 }
 0x185   : > { %v4506_v24 = vpop.permute.xlu1 %638  ;;  %v4508_v25 = vpop.permute.xlu0 %640 }
 0x189   : > { %v4510_v26 = vpop.permute.xlu1 %642  ;;  %v4512_v27 = vpop.permute.xlu0 %644 }
 0x18d   : > { %v4514_v28 = vpop.permute.xlu1 %646  ;;  %v4516_v29 = vpop.permute.xlu0 %648 }
 0x191   : > { %v4518_v30 = vpop.permute.xlu1 %650  ;;  %v4520_v31 = vpop.permute.xlu0 %652 }
 0x195   : > { %v4522_v32 = vpop.permute.xlu1 %735  ;;  %v4524_v33 = vpop.permute.xlu0 %737 }
 0x199   : > { %v4526_v34 = vpop.permute.xlu1 %739  ;;  %v4528_v35 = vpop.permute.xlu0 %741 }
 0x19d   : > { %v4530_v36 = vpop.permute.xlu1 %743  ;;  %v4532_v37 = vpop.permute.xlu0 %745 }
 0x1a1   : > { %v4534_v38 = vpop.permute.xlu1 %747  ;;  %v4536_v39 = vpop.permute.xlu0 %749 }
 0x1a5   : > { %v4538_v40 = vpop.permute.xlu1 %839  ;;  %v4540_v41 = vpop.permute.xlu0 %841 }
 0x1a9   : > { %v4542_v42 = vpop.permute.xlu1 %843  ;;  %v4544_v43 = vpop.permute.xlu0 %845 }
 0x1ad   : > { %v4546_v44 = vpop.permute.xlu1 %847  ;;  %v4548_v45 = vpop.permute.xlu0 %849 }
 0x1b1   : > { %v4550_v46 = vpop.permute.xlu1 %851  ;;  %v4552_v47 = vpop.permute.xlu0 %853 }
 0x1c2   : > { %v903_v48 = vpop.permute.xlu1 %902  ;;  %v898_v49 = vpop.permute.xlu0 %897 }
 0x1c3   : > { %v924_v50 = vmul.f32 %v903_v48, %v4445_v9  ;;  %v923_v51 = vmul.f32 %v898_v49, %v4439_v4 }
 0x1c5   : > { %944 = vrot.lane.b32.xlu1 %v924_v50, %s6729_s25  ;;  %942 = vrot.lane.b32.xlu0 %v923_v51, %s6729_s25  ;;  %v968_v50 = vld [vmem:[#allocation2 + $0x2] sm:$0xff] }
 0x1c6   : > { %v913_v52 = vpop.permute.xlu1 %912  ;;  %v908_v63 = vpop.permute.xlu0 %907 }
 0x1c7   : > { %v926_v0 = vmul.f32 %v913_v52, %v4453_v15  ;;  %v925_v1 = vmul.f32 %v908_v63, %v4447_v10  ;;  %v970_v63 = vld [vmem:[#allocation2 + $0x1a] sm:$0xff] }
 0x1c9   : > { %948 = vrot.lane.b32.xlu1 %v926_v0, %s6729_s25  ;;  %946 = vrot.lane.b32.xlu0 %v925_v1, %s6729_s25  ;;  %v969_v1 = vld [vmem:[#allocation2 + $0xa] sm:$0xff] }
 0x1ca   : > { %v918_v2 = vpop.permute.xlu0 %917  ;;  %v4588_v18 = vpop.permute.xlu1 %936 }
 0x1cb   : > { %v927_v6 = vmul.f32 %v918_v2, %v4455_v16 }
 0x1cd   : > { %987 = vperm.xlu1 %3717, %v3410_v5   ;;  %950 = vrot.lane.b32.xlu0 %v927_v6, %s6729_s25 }
 0x1ce   : > { %v4590_v19 = vpop.permute.xlu0 %938  ;;  %v4592_v20 = vpop.permute.xlu1 %940 }
 0x1d1   : > { %997 = vperm.xlu1 %3717, %v3412_v7   ;;  %992 = vperm.xlu0 %3716, %v3411_v8   ;;  %v972_v7 = vld [vmem:[#allocation2 + $0x32] sm:$0xff] }
 0x1d5   : > { %1007 = vperm.xlu1 %3717, %v3414_v11   ;;  %1002 = vperm.xlu0 %3716, %v3413_v12   ;;  %v971_v11 = vld [vmem:[#allocation2 + $0x22] sm:$0xff] }
 0x1d9   : > { %1017 = vperm.xlu1 %3717, %v3416_v13   ;;  %1012 = vperm.xlu0 %3716, %v3415_v14  }
 0x1dd   : > { %1022 = vperm.xlu0 %3716, %v3417_v17   ;;  %v974_v17 = vld [vmem:[#allocation2 + $0x4a] sm:$0xff] }
 0x237   : > { %v4594_v21 = vpop.permute.xlu0 %942  ;;  %v4596_v22 = vpop.permute.xlu1 %944 }
 0x23b   : > { %v4598_v23 = vpop.permute.xlu0 %946  ;;  %v4600_v48 = vpop.permute.xlu1 %948 }
 0x23f   : > { %v4602_v49 = vpop.permute.xlu0 %950 }
 0x24c   : > { %v988_v51 = vpop.permute.xlu1 %987 }
 0x24d   : > { %v1025_v52 = vmul.f32 %v988_v51, %v968_v50  ;;  %v973_v51 = vld [vmem:[#allocation2 + $0x3a] sm:$0xff] }
 0x24f   : > { %1041 = vrot.lane.b32.xlu1 %v1025_v52, %s6729_s25 }
 0x250   : > { %v998_v0 = vpop.permute.xlu1 %997  ;;  %v993_v2 = vpop.permute.xlu0 %992 }
 0x251   : > { %v1027_v5 = vmul.f32 %v998_v0, %v970_v63  ;;  %v1026_v6 = vmul.f32 %v993_v2, %v969_v1  ;;  %v975_v1 = vld [vmem:[#allocation2 + $0x52] sm:$0xff] }
 0x253   : > { %1045 = vrot.lane.b32.xlu1 %v1027_v5, %s6729_s25  ;;  %1043 = vrot.lane.b32.xlu0 %v1026_v6, %s6729_s25  ;;  %v1505_v5 = vld [vmem:[%s6931_s5] sm:$0xff] }
 0x254   : > { %v1008_v8 = vpop.permute.xlu1 %1007  ;;  %v1003_v12 = vpop.permute.xlu0 %1002 }
 0x255   : > { %v1029_v13 = vmul.f32 %v1008_v8, %v972_v7  ;;  %v1028_v14 = vmul.f32 %v1003_v12, %v971_v11  ;;  %v1507_v7 = vld [vmem:[%s6931_s5 + $0x10] sm:$0xff]  ;;  %v1506_v8 = vld [vmem:[%s6931_s5 + $0x8] sm:$0xff]  ;;  %v1509_v11 = vld [vmem:[%s6931_s5 + $0x20] sm:$0xff] }
 0x256   : > { %v1508_v12 = vld [vmem:[%s6931_s5 + $0x18] sm:$0xff] }
 0x257   : > { %1049 = vrot.lane.b32.xlu1 %v1029_v13, %s6729_s25  ;;  %1047 = vrot.lane.b32.xlu0 %v1028_v14, %s6729_s25  ;;  %v1511_v13 = vld [vmem:[%s6931_s5 + $0x30] sm:$0xff]  ;;  %v1510_v14 = vld [vmem:[%s6931_s5 + $0x28] sm:$0xff] }
 0x258   : > { %v1018_v50 = vpop.permute.xlu1 %1017  ;;  %v1013_v52 = vpop.permute.xlu0 %1012 }
 0x259   : > { %v1031_v63 = vmul.f32 %v1018_v50, %v974_v17  ;;  %v1030_v0 = vmul.f32 %v1013_v52, %v973_v51  ;;  %v1513_v17 = vld [vmem:[%s6931_s5 + $0x40] sm:$0xff]  ;;  %v1512_v50 = vld [vmem:[%s6931_s5 + $0x38] sm:$0xff]  ;;  %v1515_v51 = vld [vmem:[%s6931_s5 + $0x50] sm:$0xff] }
 0x25a   : > { %v1514_v52 = vld [vmem:[%s6931_s5 + $0x48] sm:$0xff] }
 0x25b   : > { %1053 = vrot.lane.b32.xlu1 %v1031_v63, %s6729_s25  ;;  %1051 = vrot.lane.b32.xlu0 %v1030_v0, %s6729_s25  ;;  %v1517_v63 = vld [vmem:[%s6931_s5 + $0x60] sm:$0xff]  ;;  %v1516_v0 = vld [vmem:[%s6931_s5 + $0x58] sm:$0xff] }
 0x25c   : > { %v1023_v2 = vpop.permute.xlu0 %1022 }
 0x25d   : > { %v1032_v6 = vmul.f32 %v1023_v2, %v975_v1  ;;  %v1519_v1 = vld [vmem:[%s6931_s5 + $0x70] sm:$0xff]  ;;  %v1518_v2 = vld [vmem:[%s6931_s5 + $0x68] sm:$0xff] }
 0x25f   : > { %1523 = vperm.xlu1 %3717, %v1505_v5   ;;  %1055 = vrot.lane.b32.xlu0 %v1032_v6, %s6729_s25  ;;  %v3472_v5 = vld [vmem:[%s6931_s5 + $0x80] sm:$0xff]  ;;  %v1520_v6 = vld [vmem:[%s6931_s5 + $0x78] sm:$0xff]  ;;  %s4743_s25 = sld [smem:[#allocation3 + $0x2]] }
 0x263   : > { %1533 = vperm.xlu1 %3717, %v1507_v7   ;;  %1528 = vperm.xlu0 %3716, %v1506_v8   ;;  %v3474_v7 = vld [vmem:[%s6931_s5 + $0x90] sm:$0xff]  ;;  %v3473_v8 = vld [vmem:[%s6931_s5 + $0x88] sm:$0xff] }
 0x265   : > { %6939 = sst [smem:[#allocation32_spill]] %s4743_s25 }
 0x267   : > { %1543 = vperm.xlu1 %3717, %v1509_v11   ;;  %1538 = vperm.xlu0 %3716, %v1508_v12   ;;  %v3476_v11 = vld [vmem:[%s6931_s5 + $0xa0] sm:$0xff]  ;;  %v3475_v12 = vld [vmem:[%s6931_s5 + $0x98] sm:$0xff] }
 0x26b   : > { %1553 = vperm.xlu1 %3717, %v1511_v13   ;;  %1548 = vperm.xlu0 %3716, %v1510_v14   ;;  %v3478_v13 = vld [vmem:[%s6931_s5 + $0xb0] sm:$0xff]  ;;  %v3477_v14 = vld [vmem:[%s6931_s5 + $0xa8] sm:$0xff] }
 0x26f   : > { %1563 = vperm.xlu1 %3717, %v1513_v17   ;;  %1558 = vperm.xlu0 %3716, %v1512_v50   ;;  %v3480_v17 = vld [vmem:[%s6931_s5 + $0xc0] sm:$0xff]  ;;  %v3479_v50 = vld [vmem:[%s6931_s5 + $0xb8] sm:$0xff] }
 0x273   : > { %1573 = vperm.xlu1 %3717, %v1515_v51   ;;  %1568 = vperm.xlu0 %3716, %v1514_v52   ;;  %v3482_v51 = vld [vmem:[%s6931_s5 + $0xd0] sm:$0xff]  ;;  %v3481_v52 = vld [vmem:[%s6931_s5 + $0xc8] sm:$0xff] }
 0x277   : > { %1583 = vperm.xlu1 %3717, %v1517_v63   ;;  %1578 = vperm.xlu0 %3716, %v1516_v0   ;;  %v3484_v63 = vld [vmem:[%s6931_s5 + $0xe0] sm:$0xff]  ;;  %v3483_v0 = vld [vmem:[%s6931_s5 + $0xd8] sm:$0xff] }
 0x27b   : > { %1593 = vperm.xlu1 %3717, %v1519_v1   ;;  %1588 = vperm.xlu0 %3716, %v1518_v2   ;;  %v3486_v1 = vld [vmem:[%s6931_s5 + $0xf0] sm:$0xff]  ;;  %v3485_v2 = vld [vmem:[%s6931_s5 + $0xe8] sm:$0xff] }
 0x27f   : > { %1652 = vperm.xlu1 %3717, %v3472_v5   ;;  %1598 = vperm.xlu0 %3716, %v1520_v6   ;;  %v3488_v5 = vld [vmem:[%s6931_s5 + $0x100] sm:$0xff]  ;;  %v3487_v6 = vld [vmem:[%s6931_s5 + $0xf8] sm:$0xff] }
 0x283   : > { %1662 = vperm.xlu1 %3717, %v3474_v7   ;;  %1657 = vperm.xlu0 %3716, %v3473_v8   ;;  %v3490_v7 = vld [vmem:[%s6931_s5 + $0x110] sm:$0xff]  ;;  %v3489_v8 = vld [vmem:[%s6931_s5 + $0x108] sm:$0xff] }
 0x287   : > { %1672 = vperm.xlu1 %3717, %v3476_v11   ;;  %1667 = vperm.xlu0 %3716, %v3475_v12   ;;  %v3492_v11 = vld [vmem:[%s6931_s5 + $0x120] sm:$0xff]  ;;  %v3491_v12 = vld [vmem:[%s6931_s5 + $0x118] sm:$0xff]  ;;  %s4830_s5 = sld [smem:[#allocation3 + $0x282]] }
 0x28b   : > { %1682 = vperm.xlu1 %3717, %v3478_v13   ;;  %1677 = vperm.xlu0 %3716, %v3477_v14   ;;  %v558_v13 = vmul.f32 %v4413_v53, %v4429_v61  ;;  %v557_v14 = vmul.f32 %v4415_v54, %v4431_v62  ;;  %v563_v53 = vmul.f32 %v4425_v59, %v4453_v15 }
 0x28c   : > { %v564_v54 = vmul.f32 %v4427_v60, %v4455_v16 }
 0x28d   : > { %v668_v62 = vadd.f32 %v4518_v30, %v563_v53  ;;  %6947 = sst [smem:[#allocation40_spill]] %s4830_s5  ;;  %s4848_s5 = sld [smem:[#allocation3 + $0x302]] }
 0x28e   : > { %v669_v60 = vadd.f32 %v4520_v31, %v564_v54 }
 0x28f   : > { %1692 = vperm.xlu1 %3717, %v3480_v17   ;;  %1687 = vperm.xlu0 %3716, %v3479_v50   ;;  %v559_v17 = vmul.f32 %v4417_v55, %v4437_v3  ;;  %v560_v50 = vmul.f32 %v4419_v56, %v4439_v4  ;;  %v662_v55 = vadd.f32 %v4506_v24, %v557_v14  ;;  %v1174_v14 = vstv %s4802_s12  ;;  %s5838_s12 = sld [smem:[#allocation8 + $0x182]] }
 0x290   : > { %v663_v56 = vadd.f32 %v4508_v25, %v558_v13  ;;  %v765_v24 = vadd.f32 %v4534_v38, %v668_v62  ;;  %v766_v25 = vadd.f32 %v4536_v39, %v669_v60  ;;  %v1148_v13 = vstv %s4796_s30  ;;  %s5886_s30 = sld [smem:[#allocation8 + $0x7]] }
 0x291   : > { %v664_v61 = vadd.f32 %v4510_v26, %v559_v17  ;;  %v759_v3 = vadd.f32 %v4522_v32, %v662_v55  ;;  %v1194_v17 = vstv %s4804_s9  ;;  %s5836_s9 = sld [smem:[#allocation8 + $0x102]] }
 0x292   : > { %v760_v4 = vadd.f32 %v4524_v33, %v663_v56  ;;  %v869_v32 = vadd.f32 %v4550_v46, %v765_v24  ;;  %v870_v33 = vadd.f32 %v4552_v47, %v766_v25  ;;  %v1104_v46 = vstv %s4735_s26  ;;  %s4874_s26 = sld [smem:[#allocation6 + $0x7]] }
 0x293   : > { %1702 = vperm.xlu1 %3717, %v3482_v51   ;;  %1697 = vperm.xlu0 %3716, %v3481_v52   ;;  %v561_v51 = vmul.f32 %v4421_v57, %v4445_v9  ;;  %v562_v52 = vmul.f32 %v4423_v58, %v4447_v10  ;;  %v665_v57 = vadd.f32 %v4512_v27, %v560_v50  ;;  %6949 = sst [smem:[#allocation42_spill]] %s4848_s5  ;;  %v1152_v47 = vstv %s4729_s29  ;;  %s4864_s5 = sld [smem:[#allocation6 + $0x6]] }
 0x294   : > { %v761_v9 = vadd.f32 %v4526_v34, %v664_v61  ;;  %v863_v26 = vadd.f32 %v4538_v40, %v759_v3  ;;  %v864_v27 = vadd.f32 %v4540_v41, %v760_v4  ;;  %v4841_v39 = vadd.f32 %v4600_v48, %v869_v32  ;;  %s6953_s29 = sld [smem:[#allocation38_spill]] }
 0x295   : > { %v666_v58 = vadd.f32 %v4514_v28, %v561_v51  ;;  %v667_v59 = vadd.f32 %v4516_v29, %v562_v52  ;;  %v762_v10 = vadd.f32 %v4528_v35, %v665_v57  ;;  %v4851_v41 = vadd.f32 %v4602_v49, %v870_v33 }
 0x296   : > { %v865_v28 = vadd.f32 %v4542_v42, %v761_v9  ;;  %v960_v34 = vadd.f32 %v4588_v18, %v863_v26  ;;  %v1074_v42 = vstv %s4723_s28  ;;  %v1178_v18 = vstv %s4733_s17  ;;  %s4866_s28 = sld [smem:[#allocation3 + $0x382]]  ;;  %s6952_s17 = sld [smem:[#allocation37_spill]] }
 0x297   : > { %1712 = vperm.xlu1 %3717, %v3484_v63   ;;  %1707 = vperm.xlu0 %3716, %v3483_v0   ;;  %v763_v15 = vadd.f32 %v4530_v36, %v666_v58  ;;  %v764_v16 = vadd.f32 %v4532_v37, %v667_v59  ;;  %v866_v29 = vadd.f32 %v4544_v43, %v762_v10  ;;  %v1100_v43 = vstv %s4725_s16  ;;  %s5814_s16 = sld [smem:[#allocation8 + $0x81]]  ;;  %7051 = sst [smem:[#allocation83_spill]] %s5886_s30 }
 0x298   : > { %v4825_v35 = vadd.f32 %v4592_v20, %v865_v28  ;;  %v4828_v36 = vadd.f32 %v4590_v19, %v864_v27  ;;  %v1084_v19 = vstv %s4743_s25  ;;  %v1130_v20 = vstv %s4737_s22  ;;  %6951 = sst [smem:[#allocation44_spill]] %s4874_s26  ;;  %s6954_s25 = sld [smem:[#allocation39_spill]] }
 0x299   : > { %v867_v30 = vadd.f32 %v4546_v44, %v763_v15  ;;  %v868_v31 = vadd.f32 %v4548_v45, %v764_v16  ;;  %v4838_v38 = vadd.f32 %v4594_v21, %v866_v29  ;;  %v1126_v44 = vstv %s4727_s23  ;;  %s6955_s22 = sld [smem:[#allocation40_spill]]  ;;  %s5816_s23 = sld [smem:[#allocation8 + $0x101]] }
 0x29a   : > { %v1078_v45 = vstv %s4731_s24  ;;  %v1156_v21 = vstv %s4739_s27  ;;  %s4872_s24 = sld [smem:[#allocation3 + $0x383]]  ;;  %v1136_v48 = vstv %s4747_s0  ;;  %v1162_v49 = vstv %s4749_s1  ;;  %s6991_s1 = smov 126  }
 0x29b   : > { %1722 = vperm.xlu1 %3717, %v3486_v1   ;;  %1717 = vperm.xlu0 %3716, %v3485_v2   ;;  %v4835_v37 = vadd.f32 %v4596_v22, %v867_v30  ;;  %v4844_v40 = vadd.f32 %v4598_v23, %v868_v31  ;;  %v1182_v22 = vstv %s4741_s21  ;;  %v1110_v23 = vstv %s4745_s14  ;;  %s6956_s21 = sld [smem:[#allocation42_spill]]  ;;  %s5808_s14 = sld [smem:[#allocation8 + $0x1]] }
 0x29c   : > { %6950 = sst [smem:[#allocation43_spill]] %s4866_s28  ;;  %v1188_v63 = vstv %s4757_s2  ;;  %v1090_v0 = vstv %s4769_s4  ;;  %v1116_v1 = vstv %s4771_s7  ;;  %v1142_v2 = vstv %s4778_s8  ;;  %s6972_s2 = sld [smem:[#allocation41_spill]] }
 0x29d   : > { %v6782_v50 = vstv %s4812_s13  ;;  %v1200_v52 = vstv %s6952_s17  ;;  %v1234_v53 = vstv %s6953_s29  ;;  %v1220_v56 = vstv %s4846_s6  ;;  %s6981_s4 = sld [smem:[#allocation44_spill]]  ;;  %s6986_s6 = smov 2  }
 0x29e   : > { %v6781_v54 = vstv %s6954_s25  ;;  %v1246_v59 = vstv %s4858_s19  ;;  %s6989_s8 = sld [smem:[#allocation120_spill]]  ;;  %s6990_s28 = sld [smem:[#allocation121_spill]] }
 0x29f   : > { %1845 = vperm.xlu1 %3717, %v3488_v5   ;;  %1727 = vperm.xlu0 %3716, %v3487_v6   ;;  %v1204_v5 = vstv %s4759_s3  ;;  %v1096_v6 = vstv %s4786_s11  ;;  %v1214_v55 = vstv %s6955_s22  ;;  %s6974_s3 = sld [smem:[#allocation43_spill]]  ;;  %s5796_s11 = sld [smem:[#allocation8 + $0x100]] }
 0x2a0   : > { %s5806_s19 = sld [smem:[#allocation8 + $0x300]]  ;;  %7032 = sst [smem:[#allocation30_spill]] %s5814_s16 }
 0x2a1   : > { %v1240_v61 = vstv %s6956_s21  ;;  %7030 = sst [smem:[#allocation28_spill]] %s5808_s14  ;;  %s5820_s29 = sld [smem:[#allocation8 + $0x181]] }
 0x2a2   : > { %7033 = sst [smem:[#allocation31_spill]] %s5816_s23  ;;  %s5824_s17 = sld [smem:[#allocation8 + $0x281]] }
 0x2a3   : > { %1855 = vperm.xlu1 %3717, %v3490_v7   ;;  %1850 = vperm.xlu0 %3716, %v3489_v8   ;;  %v1122_v7 = vstv %s4794_s20  ;;  %v1168_v8 = vstv %s4780_s18  ;;  %s5804_s18 = sld [smem:[#allocation8 + $0x280]]  ;;  %s5826_s26 = sld [smem:[#allocation8 + $0x301]] }
 0x2a4   : > { %s5828_s22 = sld [smem:[#allocation8 + $0x2]]  ;;  %s5830_s27 = sld [smem:[#allocation8 + $0x381]] }
 0x2a5   : > { %7025 = sst [smem:[#allocation40_spill]] %s5796_s11  ;;  %s5834_s21 = sld [smem:[#allocation8 + $0x82]] }
 0x2a6   : > { %7029 = sst [smem:[#allocation26_spill]] %s5806_s19  ;;  %s5884_s7 = sld [smem:[#allocation8 + $0x6]] }
 0x2a7   : > { %1865 = vperm.xlu1 %3717, %v3492_v11   ;;  %1860 = vperm.xlu0 %3716, %v3491_v12   ;;  %v1208_v11 = vstv %s4788_s15  ;;  %s5802_s15 = sld [smem:[#allocation8 + $0x200]]  ;;  %7041 = sst [smem:[#allocation43_spill]] %s5836_s9 }
 0x2a8   : > { %7034 = sst [smem:[#allocation32_spill]] %s5820_s29  ;;  %s5840_s20 = sld [smem:[#allocation8 + $0x202]] }
 0x2a9   : > { %7028 = sst [smem:[#allocation27_spill]] %s5804_s18  ;;  %s5846_s0 = sld [smem:[#allocation8 + $0x282]] }
 0x2aa   : > { %7036 = sst [smem:[#allocation35_spill]] %s5824_s17 }
 0x2ab   : > { %7037 = sst [smem:[#allocation36_spill]] %s5826_s26  ;;  %s5900_s30 = sld [smem:[#allocation8 + $0x103]] }
 0x2ac   : > { %7038 = sst [smem:[#allocation33_spill]] %s5828_s22 }
 0x2ad   : > { %7027 = sst [smem:[#allocation25_spill]] %s5802_s15 }
 0x2ae   : > { %7039 = sst [smem:[#allocation38_spill]] %s5830_s27 }
 0x2af   : > { %7040 = sst [smem:[#allocation41_spill]] %s5834_s21 }
 0x2b0   : > { %7042 = sst [smem:[#allocation44_spill]] %s5838_s12 }
 0x2b1   : > { %7043 = sst [smem:[#allocation75_spill]] %s5840_s20 }
 0x2b2   : > { %7044 = sst [smem:[#allocation76_spill]] %s5846_s0 }
 0x2b3   : > { %7050 = sst [smem:[#allocation82_spill]] %s5884_s7  ;;  %s5902_s7 = sld [smem:[#allocation8 + $0x183]] }
 0x2b4   : > { %7054 = sst [smem:[#allocation86_spill]] %s5900_s30  ;;  %s5918_s30 = sld [smem:[#allocation8 + $0x383]] }
 0x2b9   : > { %7055 = sst [smem:[#allocation87_spill]] %s5902_s7  ;;  %s5916_s7 = sld [smem:[#allocation8 + $0x303]] }
 0x2ba   : > { %7061 = sst [smem:[#allocation91_spill]] %s5918_s30  ;;  %s5932_s30 = sld [smem:[#allocation8 + $0x184]] }
 0x2bf   : > { %7060 = sst [smem:[#allocation90_spill]] %s5916_s7 }
 0x2c0   : > { %7072 = sst [smem:[#allocation94_spill]] %s5932_s30  ;;  %s5934_s7 = sld [smem:[#allocation8 + $0x204]] }
 0x2c1   : > { %v1042_v12 = vpop.permute.xlu1 %1041  ;;  %s5958_s30 = sld [smem:[#allocation8 + $0x384]] }
 0x2c2   : > { %v1065_v51 = vadd.f32 %v1042_v12, %v960_v34 }
 0x2c4   : > { %v1075_v9 = vmul.f32 %v1074_v42, %v1065_v51  ;;  %v1101_v10 = vmul.f32 %v1100_v43, %v1065_v51  ;;  %v1127_v26 = vmul.f32 %v1126_v44, %v1065_v51  ;;  %v1153_v27 = vmul.f32 %v1152_v47, %v1065_v51 }
 0x2c5   : > { %v1046_v3 = vpop.permute.xlu1 %1045  ;;  %v1044_v4 = vpop.permute.xlu0 %1043  ;;  %v1179_v28 = vmul.f32 %v1178_v18, %v1065_v51  ;;  %v4921_v29 = vmul.f32 %v1204_v5, %v1065_v51  ;;  %v4925_v30 = vmul.f32 %v6782_v50, %v1065_v51  ;;  %v4929_v31 = vmul.f32 %v6781_v54, %v1065_v51 }
 0x2c6   : > { %v4908_v24 = vadd.f32 %v1046_v3, %v4825_v35  ;;  %v4911_v25 = vadd.f32 %v1044_v4, %v4828_v36  ;;  %7073 = sst [smem:[#allocation95_spill]] %s5934_s7  ;;  %s5956_s7 = sld [smem:[#allocation8 + $0x85]] }
 0x2c7   : > { %7085 = sst [smem:[#allocation99_spill]] %s5958_s30 }
 0x2c8   : > { %v1079_v32 = vmul.f32 %v1078_v45, %v4908_v24  ;;  %v1105_v33 = vmul.f32 %v1104_v46, %v4908_v24  ;;  %v1076_v34 = vmul.f32 %v1074_v42, %v4911_v25  ;;  %v1131_v35 = vmul.f32 %v1130_v20, %v4908_v24  ;;  %s5992_s30 = sld [smem:[#allocation8 + $0x285]] }
 0x2c9   : > { %v1050_v36 = vpop.permute.xlu1 %1049  ;;  %v1048_v12 = vpop.permute.xlu0 %1047  ;;  %v1102_v51 = vmul.f32 %v1100_v43, %v4911_v25  ;;  %v1157_v3 = vmul.f32 %v1156_v21, %v4908_v24  ;;  %v1128_v4 = vmul.f32 %v1126_v44, %v4911_v25  ;;  %v1183_v42 = vmul.f32 %v1182_v22, %v4908_v24 }
 0x2ca   : > { %v4954_v16 = vadd.f32 %v1050_v36, %v4835_v37  ;;  %v4957_v54 = vadd.f32 %v1048_v12, %v4838_v38  ;;  %v1081_v43 = vadd.f32 %v1079_v32, %v1075_v9  ;;  %v1107_v50 = vadd.f32 %v1105_v33, %v1101_v10 }
 0x2cb   : > { %v1133_v15 = vadd.f32 %v1131_v35, %v1127_v26  ;;  %v1159_v60 = vadd.f32 %v1157_v3, %v1153_v27  ;;  %v1185_v57 = vadd.f32 %v1183_v42, %v1179_v28  ;;  %v4962_v44 = vmul.f32 %v1152_v47, %v4911_v25 }
 0x2cc   : > { %v1085_v62 = vmul.f32 %v1084_v19, %v4954_v16  ;;  %v1111_v37 = vmul.f32 %v1110_v23, %v4954_v16  ;;  %v1080_v38 = vmul.f32 %v1078_v45, %v4957_v54  ;;  %v1137_v9 = vmul.f32 %v1136_v48, %v4954_v16  ;;  %7084 = sst [smem:[#allocation98_spill]] %s5956_s7  ;;  %s5974_s7 = sld [smem:[#allocation8 + $0x185]] }
 0x2cd   : > { %v1054_v10 = vpop.permute.xlu1 %1053  ;;  %v1052_v26 = vpop.permute.xlu0 %1051  ;;  %v1106_v47 = vmul.f32 %v1104_v46, %v4957_v54  ;;  %v1163_v27 = vmul.f32 %v1162_v49, %v4954_v16  ;;  %v1132_v28 = vmul.f32 %v1130_v20, %v4957_v54  ;;  %v1189_v45 = vmul.f32 %v1188_v63, %v4954_v16 }
 0x2ce   : > { %v4989_v32 = vadd.f32 %v1054_v10, %v4841_v39  ;;  %v4992_v33 = vadd.f32 %v1052_v26, %v4844_v40  ;;  %v1087_v35 = vadd.f32 %v1085_v62, %v1081_v43  ;;  %v1113_v46 = vadd.f32 %v1111_v37, %v1107_v50  ;;  %7097 = sst [smem:[#allocation103_spill]] %s5992_s30  ;;  %s6009_s30 = sld [smem:[#allocation8 + $0x106]] }
 0x2cf   : > { %v1082_v36 = vadd.f32 %v1080_v38, %v1076_v34  ;;  %v1139_v12 = vadd.f32 %v1137_v9, %v1133_v15  ;;  %v1108_v3 = vadd.f32 %v1106_v47, %v1102_v51  ;;  %v1165_v42 = vadd.f32 %v1163_v27, %v1159_v60 }
 0x2d0   : > { %v1091_v20 = vmul.f32 %v1090_v0, %v4989_v32  ;;  %v1117_v58 = vmul.f32 %v1116_v1, %v4989_v32  ;;  %v1086_v39 = vmul.f32 %v1084_v19, %v4992_v33  ;;  %v1143_v40 = vmul.f32 %v1142_v2, %v4989_v32 }
 0x2d1   : > { %v1056_v50 = vpop.permute.xlu0 %1055  ;;  %v1112_v62 = vmul.f32 %v1110_v23, %v4992_v33  ;;  %v1169_v60 = vmul.f32 %v1168_v8, %v4989_v32  ;;  %v1134_v15 = vadd.f32 %v1132_v28, %v1128_v4  ;;  %v1138_v19 = vmul.f32 %v1136_v48, %v4992_v33 }
 0x2d2   : > { %v5016_v34 = vadd.f32 %v1056_v50, %v4851_v41  ;;  %v1093_v51 = vadd.f32 %v1091_v20, %v1087_v35  ;;  %v1119_v43 = vadd.f32 %v1117_v58, %v1113_v46  ;;  %v1088_v37 = vadd.f32 %v1086_v39, %v1082_v36  ;;  %7091 = sst [smem:[#allocation101_spill]] %s5974_s7  ;;  %s5990_s7 = sld [smem:[#allocation8 + $0x205]] }
 0x2d3   : > { %v1145_v38 = vadd.f32 %v1143_v40, %v1139_v12  ;;  %v1114_v9 = vadd.f32 %v1112_v62, %v1108_v3  ;;  %v1171_v10 = vadd.f32 %v1169_v60, %v1165_v42  ;;  %v1140_v23 = vadd.f32 %v1138_v19, %v1134_v15 }
 0x2d4   : > { %v5020_v26 = vadd.f32 %v1096_v6, %v1093_v51  ;;  %v5024_v4 = vadd.f32 %v1122_v7, %v1119_v43  ;;  %v1092_v48 = vmul.f32 %v1090_v0, %v5016_v34  ;;  %v1118_v41 = vmul.f32 %v1116_v1, %v5016_v34 }
 0x2d5   : > { %v5034_v58 = vadd.f32 %v1148_v13, %v1145_v38  ;;  %v5038_v47 = vadd.f32 %v1174_v14, %v1171_v10  ;;  %v1144_v27 = vmul.f32 %v1142_v2, %v5016_v34  ;;  %v1191_v28 = vadd.f32 %v1189_v45, %v1185_v57 }
 0x2d6   : > { %v3456_v35 = vmul.f32 -1.442695, %v5020_v26  ;;  %v3458_v0 = vmul.f32 -1.442695, %v5024_v4  ;;  %v1094_v46 = vadd.f32 %v1092_v48, %v1088_v37  ;;  %v1120_v36 = vadd.f32 %v1118_v41, %v1114_v9 }
 0x2d7   : > { %v3460_v1 = vmul.f32 -1.442695, %v5034_v58  ;;  %v3462_v12 = vmul.f32 -1.442695, %v5038_v47  ;;  %v1146_v3 = vadd.f32 %v1144_v27, %v1140_v23  ;;  %v1195_v42 = vmul.f32 %v1194_v17, %v4989_v32 }
 0x2d8   : > { %3718 = vpow2.f32 %v3456_v35  ;;  %v5052_v2 = vadd.f32 %v1096_v6, %v1094_v46  ;;  %v5056_v57 = vadd.f32 %v1122_v7, %v1120_v36  ;;  %v1158_v45 = vmul.f32 %v1156_v21, %v4957_v54  ;;  %7096 = sst [smem:[#allocation102_spill]] %s5990_s7  ;;  %s6006_s7 = sld [smem:[#allocation8 + $0x86]] }
 0x2d9   : > { %3720 = vpow2.f32 %v3458_v0  ;;  %v5063_v20 = vadd.f32 %v1148_v13, %v1146_v3  ;;  %v1197_v39 = vadd.f32 %v1195_v42, %v1191_v28  ;;  %v1164_v40 = vmul.f32 %v1162_v49, %v4992_v33 }
 0x2da   : > { %v3457_v6 = vmul.f32 -1.442695, %v5052_v2  ;;  %3722 = vpow2.f32 %v3460_v1  ;;  %v3459_v7 = vmul.f32 -1.442695, %v5056_v57  ;;  %v1160_v50 = vadd.f32 %v1158_v45, %v4962_v44 }
 0x2db   : > { %3724 = vpow2.f32 %v3462_v12  ;;  %v3461_v21 = vmul.f32 -1.442695, %v5063_v20  ;;  %v5074_v13 = vadd.f32 %v1200_v52, %v1197_v39  ;;  %v1170_v49 = vmul.f32 %v1168_v8, %v5016_v34 }
 0x2dc   : > { %3726 = vpow2.f32 %v3457_v6  ;;  %v1166_v62 = vadd.f32 %v1164_v40, %v1160_v50  ;;  %v1209_v60 = vmul.f32 %v1208_v11, %v4908_v24  ;;  %v1215_v44 = vmul.f32 %v1214_v55, %v4954_v16 }
 0x2dd   : > { %3728 = vpow2.f32 %v3459_v7  ;;  %v3464_v15 = vmul.f32 -1.442695, %v5074_v13  ;;  %v1221_v19 = vmul.f32 %v1220_v56, %v4989_v32  ;;  %v1180_v8 = vmul.f32 %v1178_v18, %v4911_v25 }
 0x2de   : > { %3730 = vpow2.f32 %v3461_v21  ;;  %v1172_v51 = vadd.f32 %v1170_v49, %v1166_v62  ;;  %v1211_v43 = vadd.f32 %v1209_v60, %v4921_v29  ;;  %v1184_v37 = vmul.f32 %v1182_v22, %v4957_v54 }
 0x2df   : > { %3732 = vpow2.f32 %v3464_v15  ;;  %v1190_v38 = vmul.f32 %v1188_v63, %v4992_v33  ;;  %v1196_v9 = vmul.f32 %v1194_v17, %v5016_v34  ;;  %v1235_v10 = vmul.f32 %v1234_v53, %v4908_v24 }
 0x2e0   : > { %v5107_v18 = vadd.f32 %v1174_v14, %v1172_v51  ;;  %v1217_v23 = vadd.f32 %v1215_v44, %v1211_v43  ;;  %v1186_v29 = vadd.f32 %v1184_v37, %v1180_v8  ;;  %v1241_v22 = vmul.f32 %v1240_v61, %v4954_v16 }
 0x2e1   : > { %v1237_v48 = vadd.f32 %v1235_v10, %v4925_v30  ;;  %v1247_v63 = vmul.f32 %v1246_v59, %v4989_v32  ;;  %v1206_v17 = vmul.f32 %v1204_v5, %v4911_v25  ;;  %v1210_v41 = vmul.f32 %v1208_v11, %v4957_v54 }
 0x2e2   : > { %v3719_v14 = vpop.eup %3718  ;;  %v3463_v27 = vmul.f32 -1.442695, %v5107_v18  ;;  %v1223_v28 = vadd.f32 %v1221_v19, %v1217_v23  ;;  %v1192_v35 = vadd.f32 %v1190_v38, %v1186_v29  ;;  %v1216_v0 = vmul.f32 %v1214_v55, %v4992_v33 }
 0x2e3   : > { %v3721_v46 = vpop.eup %3720  ;;  %v1329_v30 = vadd.f32 1.0, %v3719_v14  ;;  %v1243_v36 = vadd.f32 %v1241_v22, %v1237_v48  ;;  %v1212_v1 = vadd.f32 %v1210_v41, %v1206_v17  ;;  %v1222_v12 = vmul.f32 %v1220_v56, %v5016_v34 }
 0x2e4   : > { %v3723_v5 = vpop.eup %3722  ;;  %v1331_v3 = vadd.f32 1.0, %v3721_v46  ;;  %3734 = vpow2.f32 %v3463_v27  ;;  %v6971_v11 = vstv %s4856_s10  ;;  %v1198_v45 = vadd.f32 %v1196_v9, %v1192_v35  ;;  %s5794_s10 = sld [smem:[#allocation8 + $0x80]] }
 0x2e5   : > { %v5131_v42 = vadd.f32 %v6971_v11, %v1223_v28  ;;  %v3725_v39 = vpop.eup %3724  ;;  %3736 = vrcp.f32 %v1329_v30  ;;  %v1333_v40 = vadd.f32 1.0, %v3723_v5  ;;  %v1249_v55 = vadd.f32 %v1247_v63, %v1243_v36 }
 0x2e6   : > { %v1218_v6 = vadd.f32 %v1216_v0, %v1212_v1  ;;  %v3727_v7 = vpop.eup %3726  ;;  %3738 = vrcp.f32 %v1331_v3  ;;  %v1335_v50 = vadd.f32 1.0, %v3725_v39  ;;  %v5136_v56 = vadd.f32 %v1200_v52, %v1198_v45 }
 0x2e7   : > { %v3466_v21 = vmul.f32 -1.442695, %v5131_v42  ;;  %v3729_v49 = vpop.eup %3728  ;;  %v1330_v62 = vadd.f32 1.0, %v3727_v7  ;;  %3740 = vrcp.f32 %v1333_v40  ;;  %v6973_v60 = vstv %s4864_s5 }
 0x2e8   : > { %v5140_v44 = vadd.f32 %v6973_v60, %v1249_v55  ;;  %v1224_v15 = vadd.f32 %v1222_v12, %v1218_v6  ;;  %v3731_v19 = vpop.eup %3730  ;;  %v1332_v8 = vadd.f32 1.0, %v3729_v49  ;;  %3742 = vrcp.f32 %v1335_v50 }
 0x2e9   : > { %v3465_v51 = vmul.f32 -1.442695, %v5136_v56  ;;  %v6975_v43 = vstv %s6972_s2  ;;  %v3733_v52 = vpop.eup %3732  ;;  %3744 = vrcp.f32 %v1330_v62  ;;  %v1334_v38 = vadd.f32 1.0, %v3731_v19  ;;  %s6992_s2 = smov 124  }
 0x2ea   : > { %v1261_v37 = vmul.f32 %v6975_v43, %v4908_v24  ;;  %v3468_v9 = vmul.f32 -1.442695, %v5140_v44  ;;  %v6976_v10 = vmov %v6971_v11  ;;  %3746 = vrcp.f32 %v1332_v8  ;;  %7024 = sst [smem:[#allocation39_spill]] %s5794_s10 }
 0x2eb   : > { %v5149_v23 = vadd.f32 %v6976_v10, %v1224_v15  ;;  %v1337_v29 = vadd.f32 1.0, %v3733_v52  ;;  %v6977_v48 = vstv %s6974_s3  ;;  %3748 = vrcp.f32 %v1334_v38  ;;  %v5201_v38 = vpop.permute.xlu1 %1523  ;;  %s5858_s3 = sld [smem:[#allocation8 + $0x3]] }
 0x2ec   : > { %v1263_v22 = vadd.f32 %v1261_v37, %v4929_v31  ;;  %v1267_v24 = vmul.f32 %v6977_v48, %v4954_v16  ;;  %v6978_v17 = vstv %s4872_s24  ;;  %v6979_v14 = vstv %s4812_s13  ;;  %s5800_s13 = sld [smem:[#allocation8 + $0x180]]  ;;  %s5822_s24 = sld [smem:[#allocation8 + $0x201]] }
 0x2ed   : > { %v3467_v63 = vmul.f32 -1.442695, %v5149_v23  ;;  %v1273_v41 = vmul.f32 %v6978_v17, %v4989_v32  ;;  %v1232_v27 = vmul.f32 %v6979_v14, %v4911_v25  ;;  %3750 = vrcp.f32 %v1337_v29 }
 0x2ee   : > { %v1269_v28 = vadd.f32 %v1267_v24, %v1263_v22  ;;  %v1236_v35 = vmul.f32 %v1234_v53, %v4957_v54  ;;  %v1242_v31 = vmul.f32 %v1240_v61, %v4992_v33  ;;  %3752 = vpow2.f32 %v3466_v21  ;;  %v3735_v36 = vpop.eup %3734 }
 0x2ef   : > { %v1248_v16 = vmul.f32 %v1246_v59, %v5016_v34  ;;  %v6980_v0 = vstv %s6954_s25  ;;  %v6982_v46 = vmov %v6975_v43  ;;  %3754 = vpow2.f32 %v3465_v51  ;;  %v3737_v3 = vpop.eup %3736  ;;  %s5810_s25 = sld [smem:[#allocation8 + $0x380]] }
 0x2f0   : > { %v1258_v32 = vmul.f32 %v6980_v0, %v4911_v25  ;;  %v1262_v30 = vmul.f32 %v6982_v46, %v4957_v54  ;;  %v1275_v1 = vadd.f32 %v1273_v41, %v1269_v28  ;;  %v1238_v12 = vadd.f32 %v1236_v35, %v1232_v27  ;;  %v3739_v39 = vpop.eup %3738  ;;  %v5210_v0 = vpop.permute.xlu1 %1533 }
 0x2f1   : > { %v6983_v53 = vmov %v6977_v48  ;;  %v1336_v61 = vadd.f32 1.0, %v3735_v36  ;;  %3756 = vpow2.f32 %v3468_v9  ;;  %v6984_v59 = vmov %v6978_v17  ;;  %v3741_v6 = vpop.eup %3740  ;;  %7046 = sst [smem:[#allocation78_spill]] %s5858_s3 }
 0x2f2   : > { %v1268_v5 = vmul.f32 %v6983_v53, %v4992_v33  ;;  %v1264_v11 = vadd.f32 %v1262_v30, %v1258_v32  ;;  %v1274_v45 = vmul.f32 %v6984_v59, %v5016_v34  ;;  %v1377_v25 = vmul.f32 %v3737_v3, %v5020_v26  ;;  %v3743_v7 = vpop.eup %3742  ;;  %7026 = sst [smem:[#allocation42_spill]] %s5800_s13 }
 0x2f3   : > { %3758 = vpow2.f32 %v3467_v63  ;;  %v6985_v40 = vstv %s6981_s4  ;;  %v1244_v55 = vadd.f32 %v1242_v31, %v1238_v12  ;;  %v1379_v21 = vmul.f32 %v3739_v39, %v5024_v4  ;;  %v3745_v62 = vpop.eup %3744  ;;  %7035 = sst [smem:[#allocation34_spill]] %s5822_s24 }
 0x2f4   : > { %v5186_v54 = vadd.f32 %v6985_v40, %v1275_v1  ;;  %3760 = vrcp.f32 %v1336_v61  ;;  %v1270_v33 = vadd.f32 %v1268_v5, %v1264_v11  ;;  %v1393_v50 = vmax.f32 %v1377_v25, 0.0  ;;  %v3747_v26 = vpop.eup %3746  ;;  %v5216_v1 = vpop.permute.xlu0 %1528  ;;  %s5860_s4 = sld [smem:[#allocation8 + $0x382]] }
 0x2f5   : > { %v1250_v34 = vadd.f32 %v1248_v16, %v1244_v55  ;;  %v1378_v15 = vmul.f32 %v3745_v62, %v5052_v2  ;;  %v6987_v19 = vstv %s4864_s5  ;;  %v3749_v51 = vpop.eup %3748  ;;  %v1381_v43 = vmul.f32 %v3741_v6, %v5034_v58  ;;  %v5220_v53 = vpop.permute.xlu1 %1543  ;;  %7031 = sst [smem:[#allocation29_spill]] %s5810_s25 }
 0x2f6   : > { %v3470_v49 = vmul.f32 -1.442695, %v5186_v54  ;;  %v1276_v60 = vadd.f32 %v1274_v45, %v1270_v33  ;;  %1425 = vrot.lane.b32.xlu1 %v1393_v50, %s6986_s6  ;;  %v6988_v37 = vmov %v6985_v40  ;;  %v1395_v9 = vmax.f32 %v1379_v21, 0.0  ;;  %s5874_s5 = sld [smem:[#allocation8 + $0x5]] }
 0x2f7   : > { %v5194_v8 = vadd.f32 %v6987_v19, %v1250_v34  ;;  %v3751_v4 = vpop.eup %3750  ;;  %v1394_v10 = vmax.f32 %v1378_v15, 0.0  ;;  %v1380_v29 = vmul.f32 %v3747_v26, %v5056_v57  ;;  %v1397_v17 = vmax.f32 %v1381_v43, 0.0 }
 0x2f8   : > { %3762 = vpow2.f32 %v3470_v49  ;;  %v5199_v52 = vadd.f32 %v6988_v37, %v1276_v60  ;;  %v3753_v2 = vpop.eup %3752  ;;  %v1383_v41 = vmul.f32 %v3743_v7, %v5038_v47  ;;  %v1382_v28 = vmul.f32 %v3749_v51, %v5063_v20  ;;  %v5225_v25 = vpop.permute.xlu0 %1538 }
 0x2f9   : > { %v3469_v22 = vmul.f32 -1.442695, %v5194_v8  ;;  %v3755_v24 = vpop.eup %3754  ;;  %1427 = vrot.lane.b32.xlu0 %v1394_v10, %s6986_s6  ;;  %v1339_v58 = vadd.f32 1.0, %v3753_v2  ;;  %v1396_v57 = vmax.f32 %v1380_v29, 0.0  ;;  %v1385_v30 = vmul.f32 %v3751_v4, %v5074_v13  ;;  %v5229_v7 = vpop.permute.xlu1 %1553  ;;  %v3493_v10 = vld [vmem:[%s6989_s8 + $0x128] sm:$0xff]  ;;  %v3498_v29 = vld [vmem:[%s6989_s8 + $0x150] sm:$0xff] }
 0x2fa   : > { %v3471_v48 = vmul.f32 -1.442695, %v5199_v52  ;;  %1429 = vrot.lane.b32.xlu1 %v1395_v9, %s6986_s6  ;;  %v1338_v14 = vadd.f32 1.0, %v3755_v24  ;;  %v1399_v32 = vmax.f32 %v1383_v41, 0.0  ;;  %v1398_v46 = vmax.f32 %v1382_v28, 0.0  ;;  %v3499_v41 = vld [vmem:[%s6989_s8 + $0x158] sm:$0xff] }
 0x2fb   : > { %3764 = vpow2.f32 %v3469_v22  ;;  %v3757_v63 = vpop.eup %3756  ;;  %v1401_v5 = vmax.f32 %v1385_v30, 0.0  ;;  %v3495_v22 = vld [vmem:[%s6989_s8 + $0x138] sm:$0xff]  ;;  %7047 = sst [smem:[#allocation79_spill]] %s5860_s4 }
 0x2fc   : > { %3766 = vpow2.f32 %v3471_v48  ;;  %v1341_v35 = vadd.f32 1.0, %v3757_v63  ;;  %v5234_v34 = vpop.permute.xlu0 %1548  ;;  %v3500_v48 = vld [vmem:[%s6989_s8 + $0x160] sm:$0xff]  ;;  %v3502_v63 = vld [vmem:[%s6989_s8 + $0x170] sm:$0xff]  ;;  %7049 = sst [smem:[#allocation81_spill]] %s5874_s5 }
 0x2fd   : > { %v3759_v27 = vpop.eup %3758  ;;  %3768 = vrcp.f32 %v1339_v58  ;;  %1431 = vrot.lane.b32.xlu0 %v1396_v57, %s6986_s6  ;;  %v5238_v60 = vpop.permute.xlu1 %1563  ;;  %v3497_v58 = vld [vmem:[%s6989_s8 + $0x148] sm:$0xff] }
 0x2fe   : > { %v3761_v31 = vpop.eup %3760  ;;  %3770 = vrcp.f32 %v1338_v14  ;;  %v1340_v16 = vadd.f32 1.0, %v3759_v27  ;;  %1433 = vrot.lane.b32.xlu1 %v1397_v17, %s6986_s6  ;;  %v2035_v27 = vld [vmem:[%s6990_s28] sm:$0xff]  ;;  %v3501_v57 = vld [vmem:[%s6989_s8 + $0x168] sm:$0xff] }
 0x2ff   : > { %3772 = vrcp.f32 %v1341_v35  ;;  %v1384_v20 = vmul.f32 %v3761_v31, %v5107_v18  ;;  %v2037_v35 = vld [vmem:[%s6990_s28 + $0x10] sm:$0xff] }
 0x300   : > { %3774 = vrcp.f32 %v1340_v16  ;;  %v5243_v19 = vpop.permute.xlu0 %1558  ;;  %v3503_v16 = vld [vmem:[%s6989_s8 + $0x178] sm:$0xff] }
 0x301   : > { %1435 = vrot.lane.b32.xlu0 %v1398_v46, %s6986_s6  ;;  %v1400_v3 = vmax.f32 %v1384_v20, 0.0  ;;  %v5249_v37 = vpop.permute.xlu1 %1573  ;;  %v2036_v46 = vld [vmem:[%s6990_s28 + $0x8] sm:$0xff]  ;;  %v2041_v20 = vld [vmem:[%s6990_s28 + $0x30] sm:$0xff] }
 0x302   : > { %v3763_v47 = vpop.eup %3762  ;;  %1437 = vrot.lane.b32.xlu1 %v1399_v32, %s6986_s6 }
 0x303   : > { %v1343_v36 = vadd.f32 1.0, %v3763_v47  ;;  %v2039_v47 = vld [vmem:[%s6990_s28 + $0x20] sm:$0xff] }
 0x304   : > { %v5255_v9 = vpop.permute.xlu0 %1568 }
 0x305   : > { %3776 = vrcp.f32 %v1343_v36  ;;  %v3765_v12 = vpop.eup %3764  ;;  %1439 = vrot.lane.b32.xlu0 %v1400_v3, %s6986_s6  ;;  %v2038_v36 = vld [vmem:[%s6990_s28 + $0x18] sm:$0xff] }
 0x306   : > { %v3767_v61 = vpop.eup %3766  ;;  %v1342_v11 = vadd.f32 1.0, %v3765_v12  ;;  %1441 = vrot.lane.b32.xlu1 %v1401_v5, %s6986_s6  ;;  %v2043_v5 = vld [vmem:[%s6990_s28 + $0x40] sm:$0xff] }
 0x307   : > { %v3769_v59 = vpop.eup %3768  ;;  %v1344_v13 = vadd.f32 1.0, %v3767_v61  ;;  %v2040_v61 = vld [vmem:[%s6990_s28 + $0x28] sm:$0xff] }
 0x308   : > { %v3771_v18 = vpop.eup %3770  ;;  %v1387_v45 = vmul.f32 %v3769_v59, %v5131_v42  ;;  %3778 = vrcp.f32 %v1342_v11  ;;  %v5269_v2 = vpop.permute.xlu0 %1578  ;;  %v2045_v11 = vld [vmem:[%s6990_s28 + $0x50] sm:$0xff] }
 0x309   : > { %v3773_v39 = vpop.eup %3772  ;;  %v1386_v40 = vmul.f32 %v3771_v18, %v5136_v56  ;;  %3780 = vrcp.f32 %v1344_v13  ;;  %v2042_v13 = vld [vmem:[%s6990_s28 + $0x38] sm:$0xff] }
 0x30a   : > { %v3775_v55 = vpop.eup %3774  ;;  %v1403_v6 = vmax.f32 %v1387_v45, 0.0  ;;  %v1389_v33 = vmul.f32 %v3773_v39, %v5140_v44  ;;  %v2047_v45 = vld [vmem:[%s6990_s28 + $0x60] sm:$0xff]  ;;  %v2044_v39 = vld [vmem:[%s6990_s28 + $0x48] sm:$0xff] }
 0x30b   : > { %v1402_v50 = vmax.f32 %v1386_v40, 0.0  ;;  %v1388_v21 = vmul.f32 %v3775_v55, %v5149_v23  ;;  %v2049_v55 = vld [vmem:[%s6990_s28 + $0x70] sm:$0xff] }
 0x30c   : > { %1445 = vrot.lane.b32.xlu1 %v1403_v6, %s6986_s6  ;;  %v1405_v49 = vmax.f32 %v1389_v33, 0.0  ;;  %v5282_v17 = vpop.permute.xlu0 %1588  ;;  %v2046_v33 = vld [vmem:[%s6990_s28 + $0x58] sm:$0xff] }
 0x30d   : > { %1443 = vrot.lane.b32.xlu0 %v1402_v50, %s6986_s6  ;;  %v1404_v62 = vmax.f32 %v1388_v21, 0.0  ;;  %v2048_v21 = vld [vmem:[%s6990_s28 + $0x68] sm:$0xff] }
 0x30f   : > { %v3777_v42 = vpop.eup %3776 }
 0x310   : > { %v1391_v56 = vmul.f32 %v3777_v42, %v5186_v54  ;;  %1449 = vrot.lane.b32.xlu1 %v1405_v49, %s6986_s6  ;;  %v3494_v54 = vld [vmem:[%s6989_s8 + $0x130] sm:$0xff]  ;;  %v5295_v28 = vpop.permute.xlu0 %1598  ;;  %v2050_v49 = vld [vmem:[%s6990_s28 + $0x78] sm:$0xff] }
 0x311   : > { %1447 = vrot.lane.b32.xlu0 %v1404_v62, %s6986_s6 }
 0x312   : > { %v3779_v44 = vpop.eup %3778  ;;  %v1407_v26 = vmax.f32 %v1391_v56, 0.0 }
 0x313   : > { %v3781_v23 = vpop.eup %3780  ;;  %v1390_v15 = vmul.f32 %v3779_v44, %v5194_v8  ;;  %v3496_v8 = vld [vmem:[%s6989_s8 + $0x140] sm:$0xff]  ;;  %s5790_s8 = sld [smem:[#allocation8]] }
 0x314   : > { %1453 = vrot.lane.b32.xlu1 %v1407_v26, %s6986_s6  ;;  %v1392_v43 = vmul.f32 %v3781_v23, %v5199_v52  ;;  %v5261_v52 = vpop.permute.xlu1 %1583  ;;  %v5308_v32 = vpop.permute.xlu0 %1657 }
 0x315   : > { %v1406_v51 = vmax.f32 %v1390_v15, 0.0 }
 0x316   : > { %v1408_v4 = vmax.f32 %v1392_v43, 0.0 }
 0x317   : > { %1451 = vrot.lane.b32.xlu0 %v1406_v51, %s6986_s6 }
 0x318   : > { %1875 = vperm.xlu1 %3717, %v3494_v54   ;;  %v5274_v24 = vpop.permute.xlu1 %1593  ;;  %v5321_v12 = vpop.permute.xlu0 %1667 }
 0x319   : > { %7023 = sst [smem:[#allocation37_spill]] %s5790_s8 }
 0x31b   : > { %1455 = vrot.lane.b32.xlu0 %v1408_v4, %s6986_s6  ;;  %s5872_s6 = sld [smem:[#allocation8 + $0x4]] }
 0x31c   : > { %1885 = vperm.xlu1 %3717, %v3496_v8   ;;  %v5287_v14 = vpop.permute.xlu1 %1652  ;;  %v5334_v59 = vpop.permute.xlu0 %1677 }
 0x31f   : > { %1870 = vperm.xlu0 %3716, %v3493_v10  }
 0x320   : > { %1895 = vperm.xlu1 %3717, %v3498_v29   ;;  %v5300_v31 = vpop.permute.xlu1 %1662  ;;  %v5347_v40 = vpop.permute.xlu0 %1687 }
 0x321   : > { %7048 = sst [smem:[#allocation80_spill]] %s5872_s6  ;;  %s6094_s6 = sld [smem:[#allocation9 + $0x7]] }
 0x323   : > { %1880 = vperm.xlu0 %3716, %v3495_v22  }
 0x324   : > { %1905 = vperm.xlu1 %3717, %v3500_v48   ;;  %v5313_v30 = vpop.permute.xlu1 %1672  ;;  %v5357_v50 = vpop.permute.xlu0 %1697 }
 0x327   : > { %1890 = vperm.xlu0 %3716, %v3497_v58  }
 0x328   : > { %1915 = vperm.xlu1 %3717, %v3502_v63   ;;  %v5326_v3 = vpop.permute.xlu1 %1682  ;;  %v5367_v62 = vpop.permute.xlu0 %1707 }
 0x32b   : > { %1900 = vperm.xlu0 %3716, %v3499_v41  }
 0x32c   : > { %2053 = vperm.xlu1 %3717, %v2035_v27   ;;  %v5339_v18 = vpop.permute.xlu1 %1692  ;;  %v5371_v44 = vpop.permute.xlu0 %1717 }
 0x32f   : > { %1910 = vperm.xlu0 %3716, %v3501_v57  }
 0x330   : > { %2063 = vperm.xlu1 %3717, %v2037_v35   ;;  %v5352_v6 = vpop.permute.xlu1 %1702  ;;  %v5375_v23 = vpop.permute.xlu0 %1727 }
 0x333   : > { %1920 = vperm.xlu0 %3716, %v3503_v16  }
 0x334   : > { %2073 = vperm.xlu1 %3717, %v2039_v47   ;;  %v5362_v42 = vpop.permute.xlu1 %1712  ;;  %v5379_v51 = vpop.permute.xlu0 %1850 }
 0x337   : > { %2058 = vperm.xlu0 %3716, %v2036_v46  }
 0x338   : > { %2083 = vperm.xlu1 %3717, %v2041_v20   ;;  %v5369_v56 = vpop.permute.xlu1 %1722  ;;  %v5383_v43 = vpop.permute.xlu0 %1860 }
 0x33b   : > { %2068 = vperm.xlu0 %3716, %v2038_v36  }
 0x33c   : > { %2093 = vperm.xlu1 %3717, %v2043_v5   ;;  %v5373_v26 = vpop.permute.xlu1 %1845 }
 0x33f   : > { %2078 = vperm.xlu0 %3716, %v2040_v61  }
 0x340   : > { %2103 = vperm.xlu1 %3717, %v2045_v11   ;;  %v5377_v15 = vpop.permute.xlu1 %1855 }
 0x343   : > { %2088 = vperm.xlu0 %3716, %v2042_v13  }
 0x344   : > { %2113 = vperm.xlu1 %3717, %v2047_v45   ;;  %v5381_v54 = vpop.permute.xlu1 %1865 }
 0x347   : > { %2098 = vperm.xlu0 %3716, %v2044_v39  }
 0x348   : > { %2123 = vperm.xlu1 %3717, %v2049_v55  }
 0x34b   : > { %2108 = vperm.xlu0 %3716, %v2046_v33  }
 0x34f   : > { %2118 = vperm.xlu0 %3716, %v2048_v21  }
 0x353   : > { %2128 = vperm.xlu0 %3716, %v2050_v49  }
 0x368   : > { %v1426_v4 = vpop.permute.xlu1 %1425 }
 0x369   : > { %1473 = vst.msk [vmem:[#allocation2 + $0x1] sm:$0xff] %vm492_vm5, %v1426_v4 }
 0x36b   : > { %v1428_v10 = vpop.permute.xlu0 %1427 }
 0x36c   : > { %v1430_v8 = vpop.permute.xlu1 %1429  ;;  %1474 = vst.msk [vmem:[#allocation2 + $0x9] sm:$0xff] %vm492_vm5, %v1428_v10 }
 0x36d   : > { %1475 = vst.msk [vmem:[#allocation2 + $0x19] sm:$0xff] %vm492_vm5, %v1430_v8 }
 0x36f   : > { %v1432_v22 = vpop.permute.xlu0 %1431 }
 0x370   : > { %v1434_v29 = vpop.permute.xlu1 %1433  ;;  %v5388_v48 = vld [vmem:[#allocation2 + $0x1] sm:$0xff]  ;;  %1476 = vst.msk [vmem:[#allocation2 + $0x21] sm:$0xff] %vm492_vm5, %v1432_v22 }
 0x371   : > { %1477 = vst.msk [vmem:[#allocation2 + $0x31] sm:$0xff] %vm492_vm5, %v1434_v29  ;;  %v1730_v58 = vmul.f32 %v5287_v14, %v5388_v48 }
 0x373   : > { %1762 = vrot.lane.b32.xlu1 %v1730_v58, %s6991_s1  ;;  %v1436_v41 = vpop.permute.xlu0 %1435  ;;  %v5397_v57 = vld [vmem:[#allocation2 + $0x9] sm:$0xff] }
 0x374   : > { %v1438_v63 = vpop.permute.xlu1 %1437  ;;  %v5395_v27 = vld [vmem:[#allocation2 + $0x19] sm:$0xff]  ;;  %1478 = vst.msk [vmem:[#allocation2 + $0x39] sm:$0xff] %vm492_vm5, %v1436_v41  ;;  %v1731_v16 = vmul.f32 %v5308_v32, %v5397_v57 }
 0x375   : > { %1479 = vst.msk [vmem:[#allocation2 + $0x49] sm:$0xff] %vm492_vm5, %v1438_v63  ;;  %v1732_v35 = vmul.f32 %v5300_v31, %v5395_v27 }
 0x376   : > { %1764 = vrot.lane.b32.xlu0 %v1731_v16, %s6991_s1  ;;  %v1925_v16 = vmul.f32 %v5377_v15, %v5395_v27 }
 0x377   : > { %1766 = vrot.lane.b32.xlu1 %v1732_v35, %s6991_s1  ;;  %v1440_v47 = vpop.permute.xlu0 %1439  ;;  %v5409_v20 = vld [vmem:[#allocation2 + $0x21] sm:$0xff] }
 0x378   : > { %v1442_v14 = vpop.permute.xlu1 %1441  ;;  %v5407_v46 = vld [vmem:[#allocation2 + $0x31] sm:$0xff]  ;;  %1480 = vst.msk [vmem:[#allocation2 + $0x51] sm:$0xff] %vm492_vm5, %v1440_v47  ;;  %v1733_v32 = vmul.f32 %v5321_v12, %v5409_v20  ;;  %v1926_v47 = vmul.f32 %v5383_v43, %v5409_v20 }
 0x379   : > { %1481 = vst.msk [vmem:[#allocation2 + $0x61] sm:$0xff] %vm492_vm5, %v1442_v14  ;;  %v1734_v31 = vmul.f32 %v5313_v30, %v5407_v46  ;;  %v1927_v14 = vmul.f32 %v5381_v54, %v5407_v46 }
 0x37a   : > { %1768 = vrot.lane.b32.xlu0 %v1733_v32, %s6991_s1 }
 0x37b   : > { %1770 = vrot.lane.b32.xlu1 %v1734_v31, %s6991_s1  ;;  %v5421_v5 = vld [vmem:[#allocation2 + $0x39] sm:$0xff] }
 0x37c   : > { %v5419_v36 = vld [vmem:[#allocation2 + $0x49] sm:$0xff]  ;;  %v1735_v13 = vmul.f32 %v5334_v59, %v5421_v5 }
 0x37d   : > { %v1736_v11 = vmul.f32 %v5326_v3, %v5419_v36 }
 0x37e   : > { %v1446_v61 = vpop.permute.xlu1 %1445  ;;  %1772 = vrot.lane.b32.xlu0 %v1735_v13, %s6991_s1 }
 0x37f   : > { %1483 = vst.msk [vmem:[#allocation2 + $0x79] sm:$0xff] %vm492_vm5, %v1446_v61  ;;  %v1444_v30 = vpop.permute.xlu0 %1443  ;;  %1774 = vrot.lane.b32.xlu1 %v1736_v11, %s6991_s1  ;;  %v5433_v45 = vld [vmem:[#allocation2 + $0x51] sm:$0xff] }
 0x380   : > { %1482 = vst.msk [vmem:[#allocation2 + $0x69] sm:$0xff] %vm492_vm5, %v1444_v30  ;;  %v5431_v12 = vld [vmem:[#allocation2 + $0x61] sm:$0xff]  ;;  %v1737_v59 = vmul.f32 %v5347_v40, %v5433_v45 }
 0x381   : > { %v1738_v3 = vmul.f32 %v5339_v18, %v5431_v12 }
 0x382   : > { %v1450_v39 = vpop.permute.xlu1 %1449  ;;  %1776 = vrot.lane.b32.xlu0 %v1737_v59, %s6991_s1 }
 0x383   : > { %1485 = vst.msk [vmem:[#allocation2 + $0x91] sm:$0xff] %vm492_vm5, %v1450_v39  ;;  %v1448_v55 = vpop.permute.xlu0 %1447  ;;  %1778 = vrot.lane.b32.xlu1 %v1738_v3, %s6991_s1 }
 0x384   : > { %1484 = vst.msk [vmem:[#allocation2 + $0x81] sm:$0xff] %vm492_vm5, %v1448_v55 }
 0x386   : > { %v1454_v33 = vpop.permute.xlu1 %1453  ;;  %v5443_v21 = vld [vmem:[#allocation2 + $0x79] sm:$0xff] }
 0x387   : > { %1487 = vst.msk [vmem:[#allocation2 + $0xa9] sm:$0xff] %vm492_vm5, %v1454_v33  ;;  %v1740_v18 = vmul.f32 %v5352_v6, %v5443_v21  ;;  %v5448_v49 = vld [vmem:[#allocation2 + $0x69] sm:$0xff] }
 0x388   : > { %v1739_v40 = vmul.f32 %v5357_v50, %v5448_v49 }
 0x389   : > { %v1452_v4 = vpop.permute.xlu0 %1451  ;;  %1782 = vrot.lane.b32.xlu1 %v1740_v18, %s6991_s1 }
 0x38a   : > { %1486 = vst.msk [vmem:[#allocation2 + $0x99] sm:$0xff] %vm492_vm5, %v1452_v4  ;;  %1780 = vrot.lane.b32.xlu0 %v1739_v40, %s6991_s1  ;;  %v5455_v8 = vld [vmem:[#allocation2 + $0x91] sm:$0xff] }
 0x38b   : > { %v1742_v10 = vmul.f32 %v5362_v42, %v5455_v8  ;;  %v5459_v29 = vld [vmem:[#allocation2 + $0x81] sm:$0xff] }
 0x38c   : > { %v1741_v6 = vmul.f32 %v5367_v62, %v5459_v29  ;;  %v1923_v62 = vmul.f32 %v5373_v26, %v5388_v48 }
 0x38d   : > { %v1456_v22 = vpop.permute.xlu0 %1455  ;;  %1786 = vrot.lane.b32.xlu1 %v1742_v10, %s6991_s1  ;;  %v2019_v10 = vld [vmem:[#allocation2] sm:$0xff] }
 0x38e   : > { %1488 = vst.msk [vmem:[#allocation2 + $0xb1] sm:$0xff] %vm492_vm5, %v1456_v22  ;;  %1784 = vrot.lane.b32.xlu0 %v1741_v6, %s6991_s1  ;;  %v5466_v50 = vld [vmem:[#allocation2 + $0xa9] sm:$0xff] }
 0x38f   : > { %v1744_v58 = vmul.f32 %v5369_v56, %v5466_v50 }
 0x391   : > { %1790 = vrot.lane.b32.xlu1 %v1744_v58, %s6991_s1  ;;  %v5471_v42 = vld [vmem:[#allocation2 + $0x99] sm:$0xff] }
 0x392   : > { %v1743_v63 = vmul.f32 %v5371_v44, %v5471_v42  ;;  %v1924_v44 = vmul.f32 %v5379_v51, %v5397_v57 }
 0x394   : > { %1788 = vrot.lane.b32.xlu0 %v1743_v63, %s6991_s1 }
 0x395   : > { %1955 = vrot.lane.b32.xlu1 %v1923_v62, %s6992_s2  ;;  %v5479_v41 = vld [vmem:[#allocation2 + $0xb1] sm:$0xff] }
 0x396   : > { %v1745_v35 = vmul.f32 %v5375_v23, %v5479_v41  ;;  %v2021_v62 = vld [vmem:[#allocation2 + $0x18] sm:$0xff] }
 0x397   : > { %v1876_v56 = vpop.permute.xlu1 %1875 }
 0x398   : > { %1792 = vrot.lane.b32.xlu0 %v1745_v35, %s6991_s1  ;;  %v1929_v15 = vmul.f32 %v1876_v56, %v5419_v36 }
 0x399   : > { %1959 = vrot.lane.b32.xlu1 %v1925_v16, %s6992_s2 }
 0x39b   : > { %v1886_v26 = vpop.permute.xlu1 %1885 }
 0x39c   : > { %1957 = vrot.lane.b32.xlu0 %v1924_v44, %s6992_s2  ;;  %v1931_v54 = vmul.f32 %v1886_v26, %v5431_v12  ;;  %v2020_v26 = vld [vmem:[#allocation2 + $0x8] sm:$0xff] }
 0x39d   : > { %1963 = vrot.lane.b32.xlu1 %v1927_v14, %s6992_s2  ;;  %v2023_v14 = vld [vmem:[#allocation2 + $0x30] sm:$0xff] }
 0x39e   : > { %v1871_v23 = vpop.permute.xlu0 %1870 }
 0x39f   : > { %v1896_v31 = vpop.permute.xlu1 %1895  ;;  %v1928_v51 = vmul.f32 %v1871_v23, %v5421_v5 }
 0x3a0   : > { %1961 = vrot.lane.b32.xlu0 %v1926_v47, %s6992_s2  ;;  %v1933_v13 = vmul.f32 %v1896_v31, %v5443_v21 }
 0x3a1   : > { %1967 = vrot.lane.b32.xlu1 %v1929_v15, %s6992_s2 }
 0x3a2   : > { %v1881_v32 = vpop.permute.xlu0 %1880 }
 0x3a3   : > { %v1906_v61 = vpop.permute.xlu1 %1905  ;;  %v1930_v11 = vmul.f32 %v1881_v32, %v5433_v45  ;;  %v2025_v32 = vld [vmem:[#allocation2 + $0x48] sm:$0xff] }
 0x3a4   : > { %1965 = vrot.lane.b32.xlu0 %v1928_v51, %s6992_s2  ;;  %v1935_v59 = vmul.f32 %v1906_v61, %v5455_v8  ;;  %v2022_v51 = vld [vmem:[#allocation2 + $0x20] sm:$0xff] }
 0x3a5   : > { %1971 = vrot.lane.b32.xlu1 %v1931_v54, %s6992_s2 }
 0x3a6   : > { %v1891_v43 = vpop.permute.xlu0 %1890 }
 0x3a7   : > { %v1916_v30 = vpop.permute.xlu1 %1915  ;;  %v1932_v39 = vmul.f32 %v1891_v43, %v5448_v49 }
 0x3a8   : > { %1969 = vrot.lane.b32.xlu0 %v1930_v11, %s6992_s2  ;;  %v1937_v40 = vmul.f32 %v1916_v30, %v5466_v50  ;;  %v2027_v30 = vld [vmem:[#allocation2 + $0x60] sm:$0xff] }
 0x3a9   : > { %1975 = vrot.lane.b32.xlu1 %v1933_v13, %s6992_s2  ;;  %v2024_v13 = vld [vmem:[#allocation2 + $0x38] sm:$0xff] }
 0x3aa   : > { %v1901_v3 = vpop.permute.xlu0 %1900 }
 0x3ab   : > { %v2054_v55 = vpop.permute.xlu1 %2053  ;;  %v1934_v33 = vmul.f32 %v1901_v3, %v5459_v29 }
 0x3ac   : > { %1973 = vrot.lane.b32.xlu0 %v1932_v39, %s6992_s2  ;;  %v2131_v58 = vmul.f32 %v2054_v55, %v2019_v10  ;;  %v2026_v55 = vld [vmem:[#allocation2 + $0x50] sm:$0xff] }
 0x3ad   : > { %1979 = vrot.lane.b32.xlu1 %v1935_v59, %s6992_s2 }
 0x3ae   : > { %v1911_v18 = vpop.permute.xlu0 %1910 }
 0x3af   : > { %v2064_v4 = vpop.permute.xlu1 %2063  ;;  %v1936_v6 = vmul.f32 %v1911_v18, %v5471_v42 }
 0x3b0   : > { %1977 = vrot.lane.b32.xlu0 %v1934_v33, %s6992_s2  ;;  %v2133_v16 = vmul.f32 %v2064_v4, %v2021_v62  ;;  %v2029_v33 = vld [vmem:[#allocation2 + $0x78] sm:$0xff] }
 0x3b1   : > { %1983 = vrot.lane.b32.xlu1 %v1937_v40, %s6992_s2 }
 0x3b2   : > { %v1921_v22 = vpop.permute.xlu0 %1920 }
 0x3b3   : > { %v2074_v63 = vpop.permute.xlu1 %2073  ;;  %v1938_v35 = vmul.f32 %v1921_v22, %v5479_v41  ;;  %v2031_v22 = vld [vmem:[#allocation2 + $0x90] sm:$0xff] }
 0x3b4   : > { %1981 = vrot.lane.b32.xlu0 %v1936_v6, %s6992_s2  ;;  %v2135_v15 = vmul.f32 %v2074_v63, %v2023_v14  ;;  %v2028_v6 = vld [vmem:[#allocation2 + $0x68] sm:$0xff] }
 0x3b5   : > { %2163 = vrot.lane.b32.xlu1 %v2131_v58, %s6991_s1 }
 0x3b6   : > { %v2059_v56 = vpop.permute.xlu0 %2058 }
 0x3b7   : > { %v2084_v44 = vpop.permute.xlu1 %2083  ;;  %v2132_v23 = vmul.f32 %v2059_v56, %v2020_v26  ;;  %v2030_v56 = vld [vmem:[#allocation2 + $0x80] sm:$0xff] }
 0x3b8   : > { %1985 = vrot.lane.b32.xlu0 %v1938_v35, %s6992_s2  ;;  %v2137_v11 = vmul.f32 %v2084_v44, %v2025_v32  ;;  %s5848_s2 = sld [smem:[#allocation8 + $0x302]] }
 0x3b9   : > { %2167 = vrot.lane.b32.xlu1 %v2133_v16, %s6991_s1  ;;  %v2033_v16 = vld [vmem:[#allocation2 + $0xa8] sm:$0xff] }
 0x3ba   : > { %v2069_v47 = vpop.permute.xlu0 %2068 }
 0x3bb   : > { %v2094_v31 = vpop.permute.xlu1 %2093  ;;  %v2134_v54 = vmul.f32 %v2069_v47, %v2022_v51  ;;  %v2034_v51 = vld [vmem:[#allocation2 + $0xb0] sm:$0xff] }
 0x3bc   : > { %2165 = vrot.lane.b32.xlu0 %v2132_v23, %s6991_s1  ;;  %v2139_v59 = vmul.f32 %v2094_v31, %v2027_v30  ;;  %v2032_v23 = vld [vmem:[#allocation2 + $0x98] sm:$0xff]  ;;  %v3509_v30 = vld [vmem:[%s6990_s28 + $0xa8] sm:$0xff] }
 0x3bd   : > { %2171 = vrot.lane.b32.xlu1 %v2135_v15, %s6991_s1  ;;  %v3504_v15 = vld [vmem:[%s6990_s28 + $0x80] sm:$0xff] }
 0x3be   : > { %v2079_v61 = vpop.permute.xlu0 %2078  ;;  %7045 = sst [smem:[#allocation77_spill]] %s5848_s2 }
 0x3bf   : > { %v2104_v43 = vpop.permute.xlu1 %2103  ;;  %v2136_v39 = vmul.f32 %v2079_v61, %v2024_v13  ;;  %v3505_v61 = vld [vmem:[%s6990_s28 + $0x88] sm:$0xff]  ;;  %v3510_v13 = vld [vmem:[%s6990_s28 + $0xb0] sm:$0xff] }
 0x3c0   : > { %2169 = vrot.lane.b32.xlu0 %v2134_v54, %s6991_s1  ;;  %v2141_v10 = vmul.f32 %v2104_v43, %v2029_v33  ;;  %v3506_v54 = vld [vmem:[%s6990_s28 + $0x90] sm:$0xff]  ;;  %v3507_v43 = vld [vmem:[%s6990_s28 + $0x98] sm:$0xff]  ;;  %v3513_v33 = vld [vmem:[%s6990_s28 + $0xc8] sm:$0xff] }
 0x3c1   : > { %2175 = vrot.lane.b32.xlu1 %v2137_v11, %s6991_s1  ;;  %v3508_v11 = vld [vmem:[%s6990_s28 + $0xa0] sm:$0xff] }
 0x3c2   : > { %v2089_v3 = vpop.permute.xlu0 %2088 }
 0x3c3   : > { %v2138_v18 = vmul.f32 %v2089_v3, %v2026_v55  ;;  %v2114_v40 = vpop.permute.xlu1 %2113  ;;  %v3511_v3 = vld [vmem:[%s6990_s28 + $0xb8] sm:$0xff]  ;;  %v3514_v55 = vld [vmem:[%s6990_s28 + $0xd0] sm:$0xff] }
 0x3c4   : > { %2173 = vrot.lane.b32.xlu0 %v2136_v39, %s6991_s1  ;;  %v2143_v62 = vmul.f32 %v2114_v40, %v2031_v22  ;;  %v3512_v39 = vld [vmem:[%s6990_s28 + $0xc0] sm:$0xff] }
 0x3c5   : > { %2179 = vrot.lane.b32.xlu1 %v2139_v59, %s6991_s1 }
 0x3c6   : > { %v2099_v4 = vpop.permute.xlu0 %2098 }
 0x3c7   : > { %v2140_v58 = vmul.f32 %v2099_v4, %v2028_v6  ;;  %v2124_v35 = vpop.permute.xlu1 %2123  ;;  %v3520_v4 = vld [vmem:[%s6990_s28 + $0x100] sm:$0xff] }
 0x3c8   : > { %2177 = vrot.lane.b32.xlu0 %v2138_v18, %s6991_s1  ;;  %v2145_v14 = vmul.f32 %v2124_v35, %v2033_v16  ;;  %v3523_v16 = vld [vmem:[%s6990_s28 + $0x118] sm:$0xff] }
 0x3c9   : > { %2183 = vrot.lane.b32.xlu1 %v2141_v10, %s6991_s1  ;;  %v3515_v10 = vld [vmem:[%s6990_s28 + $0xd8] sm:$0xff] }
 0x3ca   : > { %v2109_v63 = vpop.permute.xlu0 %2108 }
 0x3cb   : > { %v2142_v44 = vmul.f32 %v2109_v63, %v2030_v56  ;;  %v3521_v63 = vld [vmem:[%s6990_s28 + $0x108] sm:$0xff]  ;;  %v3524_v56 = vld [vmem:[%s6990_s28 + $0x120] sm:$0xff] }
 0x3cc   : > { %2181 = vrot.lane.b32.xlu0 %v2140_v58, %s6991_s1  ;;  %v3522_v58 = vld [vmem:[%s6990_s28 + $0x110] sm:$0xff] }
 0x3cd   : > { %2187 = vrot.lane.b32.xlu1 %v2143_v62, %s6991_s1 }
 0x3ce   : > { %v2119_v26 = vpop.permute.xlu0 %2118 }
 0x3cf   : > { %v2144_v47 = vmul.f32 %v2119_v26, %v2032_v23  ;;  %v3525_v23 = vld [vmem:[%s6990_s28 + $0x128] sm:$0xff] }
 0x3d0   : > { %2185 = vrot.lane.b32.xlu0 %v2142_v44, %s6991_s1 }
 0x3d1   : > { %2191 = vrot.lane.b32.xlu1 %v2145_v14, %s6991_s1  ;;  %v3526_v14 = vld [vmem:[%s6990_s28 + $0x130] sm:$0xff] }
 0x3d2   : > { %v2129_v31 = vpop.permute.xlu0 %2128 }
 0x3d3   : > { %v2146_v32 = vmul.f32 %v2129_v31, %v2034_v51  ;;  %v3527_v51 = vld [vmem:[%s6990_s28 + $0x138] sm:$0xff] }
 0x3d4   : > { %2189 = vrot.lane.b32.xlu0 %v2144_v47, %s6991_s1  ;;  %v3528_v47 = vld [vmem:[%s6990_s28 + $0x140] sm:$0xff] }
 0x3d5   : > { %2246 = vperm.xlu1 %3717, %v3504_v15  }
 0x3d8   : > { %2193 = vrot.lane.b32.xlu0 %v2146_v32, %s6991_s1  ;;  %v3516_v32 = vld [vmem:[%s6990_s28 + $0xe0] sm:$0xff] }
 0x3d9   : > { %2256 = vperm.xlu1 %3717, %v3506_v54  }
 0x3dc   : > { %2251 = vperm.xlu0 %3716, %v3505_v61  }
 0x3dd   : > { %2266 = vperm.xlu1 %3717, %v3508_v11   ;;  %v3529_v11 = vld [vmem:[%s6990_s28 + $0x148] sm:$0xff] }
 0x3e0   : > { %2261 = vperm.xlu0 %3716, %v3507_v43   ;;  %v3530_v43 = vld [vmem:[%s6990_s28 + $0x150] sm:$0xff] }
 0x3e1   : > { %2276 = vperm.xlu1 %3717, %v3510_v13  }
 0x3e4   : > { %2271 = vperm.xlu0 %3716, %v3509_v30   ;;  %v3517_v30 = vld [vmem:[%s6990_s28 + $0xe8] sm:$0xff] }
 0x3e5   : > { %2286 = vperm.xlu1 %3717, %v3512_v39   ;;  %v5561_v59 = vpop.permute.xlu1 %1762 }
 0x3e8   : > { %2281 = vperm.xlu0 %3716, %v3511_v3   ;;  %v5571_v40 = vpop.permute.xlu0 %1764  ;;  %v3518_v3 = vld [vmem:[%s6990_s28 + $0xf0] sm:$0xff] }
 0x3e9   : > { %2296 = vperm.xlu1 %3717, %v3514_v55   ;;  %v5569_v18 = vpop.permute.xlu1 %1766 }
 0x3ec   : > { %2291 = vperm.xlu0 %3716, %v3513_v33   ;;  %v5581_v22 = vpop.permute.xlu0 %1768  ;;  %v3531_v33 = vld [vmem:[%s6990_s28 + $0x158] sm:$0xff] }
 0x3ed   : > { %2455 = vperm.xlu1 %3717, %v3520_v4   ;;  %v5579_v6 = vpop.permute.xlu1 %1770 }
 0x3f0   : > { %2301 = vperm.xlu0 %3716, %v3515_v10   ;;  %v5591_v35 = vpop.permute.xlu0 %1772  ;;  %v3532_v10 = vld [vmem:[%s6990_s28 + $0x160] sm:$0xff] }
 0x3f1   : > { %2465 = vperm.xlu1 %3717, %v3522_v58   ;;  %v5589_v62 = vpop.permute.xlu1 %1774 }
 0x3f4   : > { %2460 = vperm.xlu0 %3716, %v3521_v63   ;;  %v5601_v26 = vpop.permute.xlu0 %1776  ;;  %v3519_v63 = vld [vmem:[%s6990_s28 + $0xf8] sm:$0xff] }
 0x3f5   : > { %2475 = vperm.xlu1 %3717, %v3524_v56   ;;  %v5599_v44 = vpop.permute.xlu1 %1778 }
 0x3f8   : > { %2470 = vperm.xlu0 %3716, %v3523_v16   ;;  %v3534_v16 = vld [vmem:[%s6990_s28 + $0x170] sm:$0xff] }
 0x3f9   : > { %2485 = vperm.xlu1 %3717, %v3526_v14  }
 0x3fb   : > { %v5612_v15 = vpop.permute.xlu1 %1782 }
 0x3fc   : > { %2480 = vperm.xlu0 %3716, %v3525_v23   ;;  %v5614_v31 = vpop.permute.xlu0 %1780  ;;  %v3533_v23 = vld [vmem:[%s6990_s28 + $0x168] sm:$0xff] }
 0x3fd   : > { %2495 = vperm.xlu1 %3717, %v3528_v47  }
 0x3ff   : > { %v5622_v54 = vpop.permute.xlu1 %1786 }
 0x400   : > { %2490 = vperm.xlu0 %3716, %v3527_v51   ;;  %v5624_v61 = vpop.permute.xlu0 %1784 }
 0x401   : > { %2306 = vperm.xlu1 %3717, %v3516_v32   ;;  %v3535_v32 = vld [vmem:[%s6990_s28 + $0x178] sm:$0xff]  ;;  %s5894_s28 = sld [smem:[#allocation8 + $0x83]] }
 0x403   : > { %v1791_v13 = vpop.permute.xlu1 %1790 }
 0x404   : > { %2500 = vperm.xlu0 %3716, %v3529_v11  }
 0x405   : > { %2505 = vperm.xlu1 %3717, %v3530_v43  }
 0x406   : > { %v5635_v39 = vpop.permute.xlu0 %1788 }
 0x407   : > { %v5640_v55 = vpop.permute.xlu1 %1955  ;;  %7053 = sst [smem:[#allocation85_spill]] %s5894_s28  ;;  %s5908_s28 = sld [smem:[#allocation8 + $0x203]] }
 0x408   : > { %6993 = vst [vmem:[#allocation45_spill] sm:$0xff] %v5640_v55  ;;  %2311 = vperm.xlu0 %3716, %v3517_v30  }
 0x409   : > { %2316 = vperm.xlu1 %3717, %v3518_v3  }
 0x40a   : > { %v1793_v4 = vpop.permute.xlu0 %1792 }
 0x40b   : > { %v5648_v58 = vpop.permute.xlu1 %1959 }
 0x40c   : > { %6994 = vst [vmem:[#allocation46_spill] sm:$0xff] %v5648_v58  ;;  %2510 = vperm.xlu0 %3716, %v3531_v33  }
 0x40d   : > { %2515 = vperm.xlu1 %3717, %v3532_v10   ;;  %7056 = sst [smem:[#allocation88_spill]] %s5908_s28  ;;  %s5926_s28 = sld [smem:[#allocation8 + $0x104]] }
 0x40e   : > { %v5653_v56 = vpop.permute.xlu0 %1957 }
 0x40f   : > { %6995 = vst [vmem:[#allocation47_spill] sm:$0xff] %v5653_v56  ;;  %v5658_v14 = vpop.permute.xlu1 %1963 }
 0x410   : > { %6996 = vst [vmem:[#allocation48_spill] sm:$0xff] %v5658_v14  ;;  %2321 = vperm.xlu0 %3716, %v3519_v63  }
 0x411   : > { %2525 = vperm.xlu1 %3717, %v3534_v16  }
 0x412   : > { %v5663_v47 = vpop.permute.xlu0 %1961 }
 0x413   : > { %6997 = vst [vmem:[#allocation49_spill] sm:$0xff] %v5663_v47  ;;  %v5665_v51 = vpop.permute.xlu1 %1967  ;;  %7067 = sst [smem:[#allocation93_spill]] %s5926_s28  ;;  %s5940_s28 = sld [smem:[#allocation8 + $0x284]] }
 0x414   : > { %6998 = vst [vmem:[#allocation50_spill] sm:$0xff] %v5665_v51  ;;  %2520 = vperm.xlu0 %3716, %v3533_v23  }
 0x416   : > { %v5670_v11 = vpop.permute.xlu0 %1965 }
 0x417   : > { %6999 = vst [vmem:[#allocation51_spill] sm:$0xff] %v5670_v11  ;;  %v5672_v43 = vpop.permute.xlu1 %1971 }
 0x418   : > { %7000 = vst [vmem:[#allocation52_spill] sm:$0xff] %v5672_v43  ;;  %2530 = vperm.xlu0 %3716, %v3535_v32  }
 0x419   : > { %7078 = sst [smem:[#allocation96_spill]] %s5940_s28  ;;  %s6004_s28 = sld [smem:[#allocation8 + $0x385]] }
 0x41a   : > { %v5674_v30 = vpop.permute.xlu0 %1969  ;;  %s7188_s5 = sld [smem:[#allocation96_spill]] }
 0x41b   : > { %7001 = vst [vmem:[#allocation53_spill] sm:$0xff] %v5674_v30  ;;  %v5676_v3 = vpop.permute.xlu1 %1975 }
 0x41c   : > { %7002 = vst [vmem:[#allocation54_spill] sm:$0xff] %v5676_v3 }
 0x41e   : > { %v5678_v33 = vpop.permute.xlu0 %1973 }
 0x41f   : > { %7003 = vst [vmem:[#allocation55_spill] sm:$0xff] %v5678_v33  ;;  %v5680_v10 = vpop.permute.xlu1 %1979 }
 0x420   : > { %7004 = vst [vmem:[#allocation56_spill] sm:$0xff] %v5680_v10 }
 0x422   : > { %v5682_v63 = vpop.permute.xlu0 %1977 }
 0x423   : > { %7005 = vst [vmem:[#allocation57_spill] sm:$0xff] %v5682_v63  ;;  %v1984_v16 = vpop.permute.xlu1 %1983 }
 0x426   : > { %v5684_v23 = vpop.permute.xlu0 %1981 }
 0x427   : > { %7006 = vst [vmem:[#allocation58_spill] sm:$0xff] %v5684_v23  ;;  %v5686_v51 = vpop.permute.xlu1 %2163 }
 0x428   : > { %7007 = vst [vmem:[#allocation59_spill] sm:$0xff] %v5686_v51  ;;  %v1615_v51 = vmul.f32 %v5274_v24, %v5466_v50 }
 0x42a   : > { %v1986_v47 = vpop.permute.xlu0 %1985 }
 0x42b   : > { %v5688_v11 = vpop.permute.xlu1 %2167 }
 0x42c   : > { %7008 = vst [vmem:[#allocation60_spill] sm:$0xff] %v5688_v11 }
 0x42e   : > { %v5690_v43 = vpop.permute.xlu0 %2165 }
 0x42f   : > { %7009 = vst [vmem:[#allocation61_spill] sm:$0xff] %v5690_v43  ;;  %v5692_v32 = vpop.permute.xlu1 %2171 }
 0x430   : > { %7010 = vst [vmem:[#allocation62_spill] sm:$0xff] %v5692_v32  ;;  %v1824_v32 = vadd.f32 %v1791_v13, %v1615_v51 }
 0x432   : > { %v5694_v30 = vpop.permute.xlu0 %2169  ;;  %v2017_v14 = vadd.f32 %v1984_v16, %v1824_v32 }
 0x433   : > { %7011 = vst [vmem:[#allocation63_spill] sm:$0xff] %v5694_v30  ;;  %v5696_v3 = vpop.permute.xlu1 %2175 }
 0x434   : > { %7012 = vst [vmem:[#allocation64_spill] sm:$0xff] %v5696_v3 }
 0x436   : > { %v5698_v33 = vpop.permute.xlu0 %2173 }
 0x437   : > { %7013 = vst [vmem:[#allocation65_spill] sm:$0xff] %v5698_v33  ;;  %v5700_v10 = vpop.permute.xlu1 %2179 }
 0x438   : > { %7014 = vst [vmem:[#allocation66_spill] sm:$0xff] %v5700_v10  ;;  %v1616_v10 = vmul.f32 %v5295_v28, %v5479_v41 }
 0x43a   : > { %v5702_v63 = vpop.permute.xlu0 %2177 }
 0x43b   : > { %7015 = vst [vmem:[#allocation67_spill] sm:$0xff] %v5702_v63  ;;  %v5704_v23 = vpop.permute.xlu1 %2183 }
 0x43c   : > { %7016 = vst [vmem:[#allocation68_spill] sm:$0xff] %v5704_v23  ;;  %v1825_v23 = vadd.f32 %v1793_v4, %v1616_v10 }
 0x43e   : > { %v5708_v11 = vpop.permute.xlu0 %2181  ;;  %v2018_v33 = vadd.f32 %v1986_v47, %v1825_v23 }
 0x43f   : > { %7017 = vst [vmem:[#allocation69_spill] sm:$0xff] %v5708_v11  ;;  %v5710_v43 = vpop.permute.xlu1 %2187 }
 0x440   : > { %7018 = vst [vmem:[#allocation70_spill] sm:$0xff] %v5710_v43 }
 0x442   : > { %v5712_v30 = vpop.permute.xlu0 %2185 }
 0x443   : > { %7019 = vst [vmem:[#allocation71_spill] sm:$0xff] %v5712_v30  ;;  %v2192_v3 = vpop.permute.xlu1 %2191 }
 0x444   : > { %v5714_v56 = vadd.f32 %v2192_v3, %v2017_v14 }
 0x446   : > { %7020 = vst [vmem:[#allocation72_spill] sm:$0xff] %v5714_v56  ;;  %v5718_v63 = vpop.permute.xlu0 %2189 }
 0x447   : > { %7021 = vst [vmem:[#allocation73_spill] sm:$0xff] %v5718_v63  ;;  %v2423_v63 = vld [vmem:[#allocation2 + $0x22] sm:$0xff] }
 0x44a   : > { %v2194_v58 = vpop.permute.xlu0 %2193 }
 0x44b   : > { %v5720_v24 = vadd.f32 %v2194_v58, %v2018_v33 }
 0x44d   : > { %7022 = vst [vmem:[#allocation74_spill] sm:$0xff] %v5720_v24  ;;  %v2421_v24 = vld [vmem:[#allocation2 + $0xa] sm:$0xff] }
 0x454   : > { %v2247_v11 = vpop.permute.xlu1 %2246 }
 0x455   : > { %v2324_v43 = vmul.f32 %v2247_v11, %v5388_v48 }
 0x457   : > { %2356 = vrot.lane.b32.xlu1 %v2324_v43, %s6991_s1 }
 0x458   : > { %v2257_v13 = vpop.permute.xlu1 %2256 }
 0x459   : > { %v2326_v51 = vmul.f32 %v2257_v13, %v5395_v27 }
 0x45b   : > { %v2252_v14 = vpop.permute.xlu0 %2251  ;;  %2360 = vrot.lane.b32.xlu1 %v2326_v51, %s6991_s1  ;;  %v2420_v51 = vld [vmem:[#allocation2 + $0x2] sm:$0xff] }
 0x45c   : > { %v2325_v28 = vmul.f32 %v2252_v14, %v5397_v57  ;;  %v2267_v3 = vpop.permute.xlu1 %2266 }
 0x45d   : > { %v2328_v4 = vmul.f32 %v2267_v3, %v5407_v46 }
 0x45e   : > { %2358 = vrot.lane.b32.xlu0 %v2325_v28, %s6991_s1 }
 0x45f   : > { %v2262_v58 = vpop.permute.xlu0 %2261  ;;  %2364 = vrot.lane.b32.xlu1 %v2328_v4, %s6991_s1  ;;  %v2422_v4 = vld [vmem:[#allocation2 + $0x1a] sm:$0xff] }
 0x460   : > { %v2327_v47 = vmul.f32 %v2262_v58, %v5409_v20  ;;  %v2277_v11 = vpop.permute.xlu1 %2276 }
 0x462   : > { %2362 = vrot.lane.b32.xlu0 %v2327_v47, %s6991_s1 }
 0x463   : > { %v2272_v43 = vpop.permute.xlu0 %2271 }
 0x464   : > { %v2329_v33 = vmul.f32 %v2272_v43, %v5421_v5  ;;  %v2287_v10 = vpop.permute.xlu1 %2286 }
 0x466   : > { %2366 = vrot.lane.b32.xlu0 %v2329_v33, %s6991_s1  ;;  %v2330_v33 = vmul.f32 %v2277_v11, %v5419_v36  ;;  %v2332_v11 = vmul.f32 %v2287_v10, %v5431_v12  ;;  %v2427_v10 = vld [vmem:[#allocation2 + $0x52] sm:$0xff] }
 0x467   : > { %v2282_v16 = vpop.permute.xlu0 %2281 }
 0x468   : > { %v2297_v23 = vpop.permute.xlu1 %2296 }
 0x46b   : > { %v2292_v32 = vpop.permute.xlu0 %2291 }
 0x46c   : > { %v2456_v13 = vpop.permute.xlu1 %2455 }
 0x46d   : > { %v2533_v14 = vmul.f32 %v2456_v13, %v2420_v51  ;;  %v2424_v13 = vld [vmem:[#allocation2 + $0x32] sm:$0xff] }
 0x46f   : > { %v2302_v28 = vpop.permute.xlu0 %2301  ;;  %2565 = vrot.lane.b32.xlu1 %v2533_v14, %s6991_s1 }
 0x470   : > { %v2466_v3 = vpop.permute.xlu1 %2465 }
 0x471   : > { %v2535_v58 = vmul.f32 %v2466_v3, %v2422_v4 }
 0x473   : > { %v2461_v47 = vpop.permute.xlu0 %2460  ;;  %2569 = vrot.lane.b32.xlu1 %v2535_v58, %s6991_s1  ;;  %v2425_v58 = vld [vmem:[#allocation2 + $0x3a] sm:$0xff] }
 0x474   : > { %v2534_v43 = vmul.f32 %v2461_v47, %v2421_v24  ;;  %v2476_v56 = vpop.permute.xlu1 %2475  ;;  %v2331_v24 = vmul.f32 %v2282_v16, %v5433_v45  ;;  %v2334_v16 = vmul.f32 %v2297_v23, %v5443_v21  ;;  %v2429_v23 = vld [vmem:[#allocation2 + $0x6a] sm:$0xff] }
 0x475   : > { %v2537_v55 = vmul.f32 %v2476_v56, %v2424_v13  ;;  %v2428_v13 = vld [vmem:[#allocation2 + $0x62] sm:$0xff] }
 0x476   : > { %2567 = vrot.lane.b32.xlu0 %v2534_v43, %s6991_s1  ;;  %v2426_v43 = vld [vmem:[#allocation2 + $0x4a] sm:$0xff] }
 0x477   : > { %v2471_v30 = vpop.permute.xlu0 %2470  ;;  %2368 = vrot.lane.b32.xlu1 %v2330_v33, %s6991_s1 }
 0x478   : > { %v2536_v51 = vmul.f32 %v2471_v30, %v2423_v63  ;;  %v2486_v14 = vpop.permute.xlu1 %2485 }
 0x479   : > { %v2539_v63 = vmul.f32 %v2486_v14, %v2426_v43 }
 0x47a   : > { %2571 = vrot.lane.b32.xlu0 %v2536_v51, %s6991_s1 }
 0x47b   : > { %v2481_v3 = vpop.permute.xlu0 %2480  ;;  %2573 = vrot.lane.b32.xlu1 %v2537_v55, %s6991_s1  ;;  %v2333_v55 = vmul.f32 %v2292_v32, %v5448_v49 }
 0x47c   : > { %v2496_v4 = vpop.permute.xlu1 %2495  ;;  %v2538_v30 = vmul.f32 %v2481_v3, %v2425_v58 }
 0x47d   : > { %v2541_v3 = vmul.f32 %v2496_v4, %v2428_v13  ;;  %v2432_v13 = vld [vmem:[#allocation2 + $0x92] sm:$0xff] }
 0x47e   : > { %2370 = vrot.lane.b32.xlu0 %v2331_v24, %s6991_s1 }
 0x47f   : > { %v2491_v47 = vpop.permute.xlu0 %2490  ;;  %2372 = vrot.lane.b32.xlu1 %v2332_v11, %s6991_s1  ;;  %v2335_v11 = vmul.f32 %v2302_v28, %v5459_v29 }
 0x480   : > { %v2307_v56 = vpop.permute.xlu1 %2306  ;;  %v2540_v51 = vmul.f32 %v2491_v47, %v2427_v10  ;;  %v2430_v47 = vld [vmem:[#allocation2 + $0x7a] sm:$0xff] }
 0x481   : > { %v2336_v32 = vmul.f32 %v2307_v56, %v5455_v8 }
 0x482   : > { %2575 = vrot.lane.b32.xlu0 %v2538_v30, %s6991_s1 }
 0x483   : > { %v2501_v33 = vpop.permute.xlu0 %2500  ;;  %2577 = vrot.lane.b32.xlu1 %v2539_v63, %s6991_s1 }
 0x484   : > { %v2506_v24 = vpop.permute.xlu1 %2505  ;;  %v2542_v30 = vmul.f32 %v2501_v33, %v2429_v23 }
 0x485   : > { %v2543_v63 = vmul.f32 %v2506_v24, %v2430_v47  ;;  %v1603_v47 = vmul.f32 %v5210_v0, %v5395_v27  ;;  %v1609_v0 = vmul.f32 %v5238_v60, %v5431_v12  ;;  %v1614_v60 = vmul.f32 %v5282_v17, %v5471_v42 }
 0x486   : > { %2374 = vrot.lane.b32.xlu0 %v2333_v55, %s6991_s1 }
 0x487   : > { %2376 = vrot.lane.b32.xlu1 %v2334_v16, %s6991_s1  ;;  %v2312_v14 = vpop.permute.xlu0 %2311  ;;  %v2431_v16 = vld [vmem:[#allocation2 + $0x82] sm:$0xff] }
 0x488   : > { %v2317_v58 = vpop.permute.xlu1 %2316  ;;  %v2337_v4 = vmul.f32 %v2312_v14, %v5471_v42  ;;  %v2434_v14 = vld [vmem:[#allocation2 + $0xaa] sm:$0xff] }
 0x489   : > { %v2338_v28 = vmul.f32 %v2317_v58, %v5466_v50 }
 0x48a   : > { %2579 = vrot.lane.b32.xlu0 %v2540_v51, %s6991_s1 }
 0x48b   : > { %2581 = vrot.lane.b32.xlu1 %v2541_v3, %s6991_s1  ;;  %v2511_v43 = vpop.permute.xlu0 %2510 }
 0x48c   : > { %v2516_v55 = vpop.permute.xlu1 %2515  ;;  %v2544_v10 = vmul.f32 %v2511_v43, %v2431_v16  ;;  %v2435_v43 = vld [vmem:[#allocation2 + $0xb2] sm:$0xff] }
 0x48d   : > { %v2545_v33 = vmul.f32 %v2516_v55, %v2432_v13  ;;  %v1604_v55 = vmul.f32 %v5225_v25, %v5409_v20  ;;  %v1610_v25 = vmul.f32 %v5255_v9, %v5448_v49  ;;  %v7075_v16 = vld [vmem:[#allocation56_spill] sm:$0xff]  ;;  %v7076_v13 = vld [vmem:[#allocation57_spill] sm:$0xff] }
 0x48e   : > { %2378 = vrot.lane.b32.xlu0 %v2335_v11, %s6991_s1 }
 0x48f   : > { %2380 = vrot.lane.b32.xlu1 %v2336_v32, %s6991_s1  ;;  %v2322_v56 = vpop.permute.xlu0 %2321  ;;  %v2433_v32 = vld [vmem:[#allocation2 + $0x9a] sm:$0xff] }
 0x490   : > { %v2526_v51 = vpop.permute.xlu1 %2525  ;;  %v2339_v3 = vmul.f32 %v2322_v56, %v5479_v41 }
 0x491   : > { %v2547_v11 = vmul.f32 %v2526_v51, %v2434_v14  ;;  %v7077_v51 = vld [vmem:[#allocation58_spill] sm:$0xff] }
 0x492   : > { %2583 = vrot.lane.b32.xlu0 %v2542_v30, %s6991_s1 }
 0x493   : > { %2585 = vrot.lane.b32.xlu1 %v2543_v63, %s6991_s1  ;;  %v2521_v24 = vpop.permute.xlu0 %2520  ;;  %v1602_v63 = vmul.f32 %v5216_v1, %v5397_v57  ;;  %v1608_v1 = vmul.f32 %v5243_v19, %v5433_v45 }
 0x494   : > { %v2546_v58 = vmul.f32 %v2521_v24, %v2433_v32 }
 0x496   : > { %2382 = vrot.lane.b32.xlu0 %v2337_v4, %s6991_s1  ;;  %v1605_v4 = vmul.f32 %v5220_v53, %v5407_v46  ;;  %v1611_v53 = vmul.f32 %v5249_v37, %v5443_v21  ;;  %v1812_v37 = vadd.f32 %v5569_v18, %v1603_v47  ;;  %v7064_v18 = vld [vmem:[#allocation49_spill] sm:$0xff] }
 0x497   : > { %2384 = vrot.lane.b32.xlu1 %v2338_v28, %s6991_s1  ;;  %v2531_v23 = vpop.permute.xlu0 %2530  ;;  %v1607_v28 = vmul.f32 %v5229_v7, %v5419_v36  ;;  %v1613_v7 = vmul.f32 %v5261_v52, %v5455_v8  ;;  %v1813_v52 = vadd.f32 %v5581_v22, %v1604_v55  ;;  %v7088_v55 = vld [vmem:[#allocation65_spill] sm:$0xff] }
 0x498   : > { %v2548_v30 = vmul.f32 %v2531_v23, %v2435_v43  ;;  %v1814_v9 = vadd.f32 %v5579_v6, %v1605_v4  ;;  %v7065_v6 = vld [vmem:[#allocation50_spill] sm:$0xff] }
 0x499   : > { %v7083_v43 = vld [vmem:[#allocation62_spill] sm:$0xff] }
 0x49a   : > { %2587 = vrot.lane.b32.xlu0 %v2544_v10, %s6991_s1 }
 0x49b   : > { %2589 = vrot.lane.b32.xlu1 %v2545_v33, %s6991_s1 }
 0x49e   : > { %2386 = vrot.lane.b32.xlu0 %v2339_v3, %s6991_s1  ;;  %v7080_v3 = vld [vmem:[#allocation59_spill] sm:$0xff] }
 0x49f   : > { %2593 = vrot.lane.b32.xlu1 %v2547_v11, %s6991_s1  ;;  %v7081_v11 = vld [vmem:[#allocation60_spill] sm:$0xff] }
 0x4a2   : > { %2591 = vrot.lane.b32.xlu0 %v2546_v58, %s6991_s1  ;;  %v7082_v58 = vld [vmem:[#allocation61_spill] sm:$0xff] }
 0x4a3   : > { %3157 = vrot.lane.b32.xlu1 %v5388_v48, %s6991_s1 }
 0x4a6   : > { %2595 = vrot.lane.b32.xlu0 %v2548_v30, %s6991_s1 }
 0x4a7   : > { %3161 = vrot.lane.b32.xlu1 %v5395_v27, %s6991_s1  ;;  %v1818_v27 = vadd.f32 %v5599_v44, %v1609_v0  ;;  %v7069_v44 = vld [vmem:[#allocation52_spill] sm:$0xff] }
 0x4aa   : > { %3159 = vrot.lane.b32.xlu0 %v5397_v57, %s6991_s1  ;;  %v1817_v57 = vadd.f32 %v5601_v26, %v1608_v1  ;;  %v2011_v26 = vadd.f32 %v7069_v44, %v1818_v27  ;;  %v7092_v1 = vld [vmem:[#allocation67_spill] sm:$0xff]  ;;  %v2630_v27 = vstv %s5790_s8  ;;  %s6018_s8 = sld [smem:[#allocation8 + $0x206]]  ;;  %v2790_v44 = vstv %s5838_s12 }
 0x4ab   : > { %3165 = vrot.lane.b32.xlu1 %v5407_v46, %s6991_s1  ;;  %v1820_v46 = vadd.f32 %v5612_v15, %v1611_v53  ;;  %v7070_v15 = vld [vmem:[#allocation53_spill] sm:$0xff] }
 0x4ae   : > { %3163 = vrot.lane.b32.xlu0 %v5409_v20, %s6991_s1  ;;  %v1819_v20 = vadd.f32 %v5614_v31, %v1610_v25  ;;  %v2010_v31 = vadd.f32 %v7070_v15, %v1817_v57  ;;  %v7093_v25 = vld [vmem:[#allocation68_spill] sm:$0xff]  ;;  %v2680_v57 = vstv %s5794_s10  ;;  %s6016_s10 = sld [smem:[#allocation8 + $0x186]]  ;;  %v2890_v15 = vstv %s5846_s0 }
 0x4af   : > { %3169 = vrot.lane.b32.xlu1 %v5419_v36, %s6991_s1  ;;  %v1822_v36 = vadd.f32 %v5622_v54, %v1613_v7  ;;  %v7071_v54 = vld [vmem:[#allocation54_spill] sm:$0xff] }
 0x4b0   : > { %v5977_v53 = vadd.f32 %v7092_v1, %v2010_v31  ;;  %7101 = sst [smem:[#allocation105_spill]] %s6018_s8  ;;  %v2646_v31 = vstv %s5858_s3  ;;  %s6062_s3 = sld [smem:[#allocation8 + $0x307]] }
 0x4b1   : > { %v2015_v10 = vadd.f32 %v7075_v16, %v1822_v36  ;;  %v2830_v36 = vstv %s5802_s15  ;;  %s6026_s15 = sld [smem:[#allocation8 + $0x286]] }
 0x4b2   : > { %3167 = vrot.lane.b32.xlu0 %v5421_v5, %s6991_s1 }
 0x4b3   : > { %3173 = vrot.lane.b32.xlu1 %v5431_v12, %s6991_s1  ;;  %v1823_v12 = vadd.f32 %v5635_v39, %v1614_v60  ;;  %v7074_v39 = vld [vmem:[#allocation55_spill] sm:$0xff] }
 0x4b4   : > { %v2012_v56 = vadd.f32 %v7074_v39, %v1819_v20  ;;  %v2780_v20 = vstv %s5800_s13  ;;  %7100 = sst [smem:[#allocation104_spill]] %s6016_s10  ;;  %v2990_v39 = vstv %s5860_s4  ;;  %s6086_s13 = sld [smem:[#allocation9 + $0x5]] }
 0x4b5   : > { %v2016_v24 = vadd.f32 %v7077_v51, %v1823_v12  ;;  %v2634_v12 = vstv %s5808_s14  ;;  %s6028_s14 = sld [smem:[#allocation8 + $0x306]]  ;;  %s6070_s4 = sld [smem:[#allocation9 + $0x2]] }
 0x4b6   : > { %3171 = vrot.lane.b32.xlu0 %v5433_v45, %s6991_s1  ;;  %v7058_v45 = vld [vmem:[#allocation45_spill] sm:$0xff]  ;;  %s7215_s8 = sld [smem:[#allocation104_spill]] }
 0x4b7   : > { %3177 = vrot.lane.b32.xlu1 %v5443_v21, %s6991_s1  ;;  %7102 = sst [smem:[#allocation106_spill]] %s6026_s15  ;;  %s7288_s15 = sld [smem:[#allocation17_spill]] }
 0x4ba   : > { %3175 = vrot.lane.b32.xlu0 %v5448_v49, %s6991_s1  ;;  %v7059_v49 = vld [vmem:[#allocation46_spill] sm:$0xff] }
 0x4bb   : > { %3181 = vrot.lane.b32.xlu1 %v5455_v8, %s6991_s1  ;;  %v2005_v8 = vadd.f32 %v7059_v49, %v1812_v37  ;;  %v6893_v49 = vstv %s5810_s25  ;;  %7103 = sst [smem:[#allocation107_spill]] %s6028_s14  ;;  %s6036_s25 = sld [smem:[#allocation8 + $0x386]] }
 0x4bc   : > { %7128 = sst [smem:[#allocation114_spill]] %s6070_s4  ;;  %s7163_s4 = sld [smem:[#allocation38_spill]] }
 0x4bd   : > { %v5948_v32 = vadd.f32 %v7081_v11, %v2005_v8  ;;  %v2734_v8 = vstv %s5816_s23  ;;  %s6088_s23 = sld [smem:[#allocation9 + $0x6]]  ;;  %s7227_s14 = sld [smem:[#allocation83_spill]] }
 0x4be   : > { %3179 = vrot.lane.b32.xlu0 %v5459_v29, %s6991_s1 }
 0x4bf   : > { %3185 = vrot.lane.b32.xlu1 %v5466_v50, %s6991_s1  ;;  %v1601_v50 = vmul.f32 %v5201_v38, %v5388_v48  ;;  %v1606_v38 = vmul.f32 %v5234_v34, %v5421_v5  ;;  %v1612_v34 = vmul.f32 %v5269_v2, %v5459_v29  ;;  %v1811_v48 = vadd.f32 %v5571_v40, %v1602_v63  ;;  %v7062_v29 = vld [vmem:[#allocation47_spill] sm:$0xff]  ;;  %v7087_v63 = vld [vmem:[#allocation64_spill] sm:$0xff] }
 0x4c0   : > { %v1816_v2 = vadd.f32 %v5589_v62, %v1607_v28  ;;  %v2006_v40 = vadd.f32 %v7064_v18, %v1813_v52  ;;  %v7068_v62 = vld [vmem:[#allocation51_spill] sm:$0xff]  ;;  %v2690_v18 = vstv %s5834_s21  ;;  %s7110_s21 = sld [smem:[#allocation85_spill]] }
 0x4c1   : > { %v1810_v19 = vadd.f32 %v5561_v59, %v1601_v50  ;;  %v1815_v17 = vadd.f32 %v5591_v35, %v1606_v38  ;;  %v1821_v5 = vadd.f32 %v5624_v61, %v1612_v34  ;;  %v2013_v61 = vadd.f32 %v7071_v54, %v1820_v46  ;;  %v7086_v50 = vld [vmem:[#allocation63_spill] sm:$0xff]  ;;  %v7089_v38 = vld [vmem:[#allocation66_spill] sm:$0xff]  ;;  %v7094_v34 = vld [vmem:[#allocation69_spill] sm:$0xff]  ;;  %7105 = sst [smem:[#allocation109_spill]] %s6036_s25 }
 0x4c2   : > { %3183 = vrot.lane.b32.xlu0 %v5471_v42, %s6991_s1  ;;  %v2004_v42 = vadd.f32 %v7062_v29, %v1811_v48  ;;  %v2009_v22 = vadd.f32 %v7065_v6, %v1816_v2  ;;  %v5961_v47 = vadd.f32 %v7086_v50, %v2006_v40  ;;  %v5970_v0 = vadd.f32 %v7089_v38, %v2011_v26  ;;  %v7099_v2 = vld [vmem:[#allocation73_spill] sm:$0xff] }
 0x4c3   : > { %v2003_v21 = vadd.f32 %v7058_v45, %v1810_v19  ;;  %v2008_v35 = vadd.f32 %v7068_v62, %v1815_v17  ;;  %v2014_v33 = vadd.f32 %v7076_v13, %v1821_v5  ;;  %v5980_v7 = vadd.f32 %v7093_v25, %v2013_v61  ;;  %v7095_v19 = vld [vmem:[#allocation70_spill] sm:$0xff] }
 0x4c4   : > { %v5951_v23 = vadd.f32 %v7082_v58, %v2004_v42  ;;  %v5964_v4 = vadd.f32 %v7087_v63, %v2009_v22  ;;  %v5983_v60 = vadd.f32 %v7094_v34, %v2012_v56  ;;  %v5986_v37 = vadd.f32 %v7095_v19, %v2015_v10 }
 0x4c5   : > { %v5945_v14 = vadd.f32 %v7080_v3, %v2003_v21  ;;  %v5967_v28 = vadd.f32 %v7088_v55, %v2008_v35  ;;  %v5998_v17 = vadd.f32 %v7099_v2, %v2016_v24  ;;  %v2730_v46 = vstv %s5796_s11  ;;  %s6054_s11 = sld [smem:[#allocation8 + $0x287]] }
 0x4c6   : > { %3187 = vrot.lane.b32.xlu0 %v5479_v41, %s6991_s1  ;;  %s5892_s1 = sld [smem:[#allocation9]]  ;;  %v7063_v41 = vld [vmem:[#allocation48_spill] sm:$0xff]  ;;  %v2880_v5 = vstv %s5804_s18  ;;  %v2684_v45 = vstv %s5814_s16  ;;  %v2930_v21 = vstv %s5806_s19  ;;  %s6032_s16 = sld [smem:[#allocation8 + $0x87]] }
 0x4c7   : > { %v2007_v59 = vadd.f32 %v7063_v41, %v1814_v9  ;;  %v7098_v9 = vld [vmem:[#allocation71_spill] sm:$0xff]  ;;  %v2784_v29 = vstv %s5820_s29  ;;  %v2834_v42 = vstv %s5822_s24  ;;  %v2884_v41 = vstv %s5824_s17  ;;  %s6043_s29 = sld [smem:[#allocation8 + $0x107]]  ;;  %s6075_s24 = sld [smem:[#allocation9 + $0x3]] }
 0x4c8   : > { %v5995_v52 = vadd.f32 %v7098_v9, %v2014_v33  ;;  %v6891_v40 = vstv %s5826_s26  ;;  %v6892_v6 = vstv %s5830_s27  ;;  %v2740_v35 = vstv %s5836_s9  ;;  %s7112_s26 = sld [smem:[#allocation86_spill]]  ;;  %s7113_s27 = sld [smem:[#allocation87_spill]] }
 0x4c9   : > { %v5954_v30 = vadd.f32 %v7083_v43, %v2007_v59  ;;  %v5988_v48 = vpop.permute.xlu1 %2356  ;;  %v2640_v59 = vstv %s5828_s22  ;;  %s6046_s22 = sld [smem:[#allocation8 + $0x187]]  ;;  %v2840_v26 = vstv %s5840_s20  ;;  %v2940_v61 = vstv %s5848_s2  ;;  %s7133_s2 = sld [smem:[#allocation99_spill]] }
 0x4ca   : > { %s6052_s18 = sld [smem:[#allocation8 + $0x207]]  ;;  %v2696_v33 = vstv %s7110_s21  ;;  %s7136_s21 = sld [smem:[#allocation102_spill]]  ;;  %v2404_v13 = vadd.f32 %v5988_v48, %v5945_v14 }
 0x4cb   : > { %7117 = sst [smem:[#allocation87_spill]] %s6054_s11  ;;  %s7174_s19 = sld [smem:[#allocation88_spill]] }
 0x4cc   : > { %7052 = sst [smem:[#allocation84_spill]] %s5892_s1  ;;  %s5910_s1 = sld [smem:[#allocation8 + $0x283]] }
 0x4cd   : > { %7104 = sst [smem:[#allocation108_spill]] %s6032_s16  ;;  %v6038_v22 = vpop.permute.xlu1 %2360  ;;  %s7175_s16 = sld [smem:[#allocation90_spill]] }
 0x4ce   : > { %7109 = sst [smem:[#allocation110_spill]] %s6043_s29  ;;  %s6067_s29 = sld [smem:[#allocation9 + $0x1]]  ;;  %v2746_v51 = vstv %s7112_s26  ;;  %v2796_v24 = vstv %s7113_s27  ;;  %v2406_v38 = vadd.f32 %v6038_v22, %v5948_v32 }
 0x4cf   : > { %7111 = sst [smem:[#allocation111_spill]] %s6046_s22  ;;  %s6064_s22 = sld [smem:[#allocation8 + $0x387]] }
 0x4d0   : > { %v6040_v62 = vpop.permute.xlu0 %2358  ;;  %7115 = sst [smem:[#allocation86_spill]] %s6052_s18  ;;  %s7182_s20 = sld [smem:[#allocation93_spill]] }
 0x4d1   : > { %7139 = sst [smem:[#allocation102_spill]] %s6088_s23  ;;  %v2365_v25 = vpop.permute.xlu1 %2364  ;;  %v2405_v54 = vadd.f32 %v6040_v62, %v5951_v23  ;;  %s7176_s23 = sld [smem:[#allocation91_spill]] }
 0x4d2   : > { %7057 = sst [smem:[#allocation89_spill]] %s5910_s1  ;;  %s5924_s1 = sld [smem:[#allocation8 + $0x84]]  ;;  %v2408_v9 = vadd.f32 %v2365_v25, %v5954_v30 }
 0x4d3   : > { %s7118_s9 = sld [smem:[#allocation89_spill]]  ;;  %s7140_s0 = sld [smem:[#allocation110_spill]] }
 0x4d4   : > { %7123 = sst [smem:[#allocation89_spill]] %s6062_s3  ;;  %s6077_s3 = sld [smem:[#allocation9 + $0x4]]  ;;  %v2363_v34 = vpop.permute.xlu0 %2362 }
 0x4d5   : > { %7125 = sst [smem:[#allocation112_spill]] %s6064_s22  ;;  %s7135_s22 = sld [smem:[#allocation101_spill]]  ;;  %v2407_v63 = vadd.f32 %v2363_v34, %v5961_v47 }
 0x4d6   : > { %7127 = sst [smem:[#allocation113_spill]] %s6067_s29  ;;  %s7137_s29 = sld [smem:[#allocation103_spill]] }
 0x4d7   : > { %7138 = sst [smem:[#allocation101_spill]] %s6086_s13  ;;  %s7144_s25 = sld [smem:[#allocation86_spill]] }
 0x4d8   : > { %7066 = sst [smem:[#allocation92_spill]] %s5924_s1  ;;  %s5942_s1 = sld [smem:[#allocation8 + $0x304]]  ;;  %v2367_v50 = vpop.permute.xlu0 %2366 }
 0x4d9   : > { %7141 = sst [smem:[#allocation103_spill]] %s6094_s6  ;;  %v6131_v32 = vadd.f32 %v2367_v50, %v5967_v28  ;;  %s7181_s12 = sld [smem:[#allocation92_spill]] }
 0x4da   : > { %7134 = sst [smem:[#allocation99_spill]] %s6077_s3  ;;  %s7183_s3 = sld [smem:[#allocation94_spill]] }
 0x4db   : > { %s7185_s6 = sld [smem:[#allocation95_spill]]  ;;  %s7196_s26 = sld [smem:[#allocation81_spill]] }
 0x4dc   : > { %s7197_s27 = sld [smem:[#allocation98_spill]]  ;;  %s7221_s13 = sld [smem:[#allocation105_spill]] }
 0x4dd   : > { %s7224_s18 = sld [smem:[#allocation106_spill]] }
 0x4de   : > { %7079 = sst [smem:[#allocation97_spill]] %s5942_s1  ;;  %s5972_s1 = sld [smem:[#allocation8 + $0x105]] }
 0x4df   : > { %s7131_s17 = sld [smem:[#allocation97_spill]] }
 0x4e0   : > { %7132 = sst [smem:[#allocation97_spill]] %s6075_s24  ;;  %s7180_s24 = sld [smem:[#allocation80_spill]] }
 0x4e1   : > { %v2566_v56 = vpop.permute.xlu1 %2565 }
 0x4e2   : > { %v2613_v19 = vadd.f32 %v2566_v56, %v2404_v13 }
 0x4e4   : > { %7090 = sst [smem:[#allocation100_spill]] %s5972_s1  ;;  %s6002_s1 = sld [smem:[#allocation8 + $0x305]]  ;;  %v2631_v13 = vmul.f32 %v2630_v27, %v2613_v19  ;;  %v2681_v56 = vmul.f32 %v2680_v57, %v2613_v19  ;;  %v2731_v23 = vmul.f32 %v2730_v46, %v2613_v19  ;;  %v2781_v30 = vmul.f32 %v2780_v20, %v2613_v19 }
 0x4e5   : > { %v2570_v10 = vpop.permute.xlu1 %2569  ;;  %v2831_v47 = vmul.f32 %v2830_v36, %v2613_v19  ;;  %v2881_v62 = vmul.f32 %v2880_v5, %v2613_v19  ;;  %v2931_v43 = vmul.f32 %v2930_v21, %v2613_v19  ;;  %v2981_v3 = vmul.f32 %v6893_v49, %v2613_v19  ;;  %s7198_s10 = sld [smem:[#allocation100_spill]] }
 0x4e6   : > { %v2615_v22 = vadd.f32 %v2570_v10, %v2406_v38 }
 0x4e8   : > { %v2568_v25 = vpop.permute.xlu0 %2567  ;;  %v2635_v28 = vmul.f32 %v2634_v12, %v2615_v22  ;;  %v2685_v10 = vmul.f32 %v2684_v45, %v2615_v22  ;;  %v2735_v50 = vmul.f32 %v2734_v8, %v2615_v22  ;;  %v2785_v38 = vmul.f32 %v2784_v29, %v2615_v22 }
 0x4e9   : > { %v6153_v34 = vadd.f32 %v2568_v25, %v2405_v54  ;;  %v2369_v48 = vpop.permute.xlu1 %2368  ;;  %v2835_v55 = vmul.f32 %v2834_v42, %v2615_v22  ;;  %v2885_v14 = vmul.f32 %v2884_v41, %v2615_v22  ;;  %v2935_v11 = vmul.f32 %v6891_v40, %v2615_v22 }
 0x4ea   : > { %v2637_v16 = vadd.f32 %v2635_v28, %v2631_v13  ;;  %v2687_v1 = vadd.f32 %v2685_v10, %v2681_v56  ;;  %v2737_v2 = vadd.f32 %v2735_v50, %v2731_v23  ;;  %v2410_v58 = vadd.f32 %v2369_v48, %v5964_v4 }
 0x4eb   : > { %v2632_v54 = vmul.f32 %v2630_v27, %v6153_v34  ;;  %v2787_v25 = vadd.f32 %v2785_v38, %v2781_v30  ;;  %v2682_v56 = vmul.f32 %v2680_v57, %v6153_v34  ;;  %v2732_v13 = vmul.f32 %v2730_v46, %v6153_v34 }
 0x4ec   : > { %v2572_v40 = vpop.permute.xlu0 %2571  ;;  %v2837_v4 = vadd.f32 %v2835_v55, %v2831_v47  ;;  %v2887_v48 = vadd.f32 %v2885_v14, %v2881_v62  ;;  %v2782_v19 = vmul.f32 %v2780_v20, %v6153_v34  ;;  %v2832_v30 = vmul.f32 %v2830_v36, %v6153_v34 }
 0x4ed   : > { %v6175_v27 = vadd.f32 %v2572_v40, %v2407_v63  ;;  %v2574_v23 = vpop.permute.xlu1 %2573  ;;  %v2937_v57 = vadd.f32 %v2935_v11, %v2931_v43  ;;  %v2882_v46 = vmul.f32 %v2880_v5, %v6153_v34  ;;  %v2985_v55 = vmul.f32 %v6892_v6, %v2615_v22 }
 0x4ee   : > { %v2617_v28 = vadd.f32 %v2574_v23, %v2408_v9  ;;  %v6191_v40 = vmul.f32 %v2930_v21, %v6153_v34 }
 0x4ef   : > { %v2636_v63 = vmul.f32 %v2634_v12, %v6175_v27  ;;  %v2686_v20 = vmul.f32 %v2684_v45, %v6175_v27  ;;  %v2736_v36 = vmul.f32 %v2734_v8, %v6175_v27  ;;  %v2786_v11 = vmul.f32 %v2784_v29, %v6175_v27 }
 0x4f0   : > { %v2371_v5 = vpop.permute.xlu0 %2370  ;;  %v2641_v43 = vmul.f32 %v2640_v59, %v2617_v28  ;;  %v2691_v21 = vmul.f32 %v2690_v18, %v2617_v28  ;;  %v2741_v9 = vmul.f32 %v2740_v35, %v2617_v28  ;;  %v2791_v12 = vmul.f32 %v2790_v44, %v2617_v28 }
 0x4f1   : > { %v2411_v45 = vadd.f32 %v2371_v5, %v5977_v53  ;;  %v2373_v8 = vpop.permute.xlu1 %2372  ;;  %v2638_v14 = vadd.f32 %v2636_v63, %v2632_v54  ;;  %v2688_v22 = vadd.f32 %v2686_v20, %v2682_v56  ;;  %v2738_v29 = vadd.f32 %v2736_v36, %v2732_v13 }
 0x4f2   : > { %v2412_v47 = vadd.f32 %v2373_v8, %v5970_v0  ;;  %v2643_v62 = vadd.f32 %v2641_v43, %v2637_v16  ;;  %v2693_v10 = vadd.f32 %v2691_v21, %v2687_v1  ;;  %v2743_v50 = vadd.f32 %v2741_v9, %v2737_v2 }
 0x4f3   : > { %v2793_v38 = vadd.f32 %v2791_v12, %v2787_v25  ;;  %v2841_v23 = vmul.f32 %v2840_v26, %v2617_v28  ;;  %v2788_v6 = vadd.f32 %v2786_v11, %v2782_v19  ;;  %v2891_v49 = vmul.f32 %v2890_v15, %v2617_v28 }
 0x4f4   : > { %v2576_v53 = vpop.permute.xlu0 %2575  ;;  %v2836_v54 = vmul.f32 %v2834_v42, %v6175_v27  ;;  %v2941_v0 = vmul.f32 %v2940_v61, %v2617_v28  ;;  %v2886_v16 = vmul.f32 %v2884_v41, %v6175_v27  ;;  %v2987_v1 = vadd.f32 %v2985_v55, %v2981_v3 }
 0x4f5   : > { %v6228_v2 = vadd.f32 %v2576_v53, %v6131_v32  ;;  %v2578_v25 = vpop.permute.xlu1 %2577  ;;  %v2843_v56 = vadd.f32 %v2841_v23, %v2837_v4  ;;  %v2893_v13 = vadd.f32 %v2891_v49, %v2887_v48  ;;  %v2991_v19 = vmul.f32 %v2990_v39, %v2617_v28 }
 0x4f6   : > { %v2619_v42 = vadd.f32 %v2578_v25, %v2410_v58  ;;  %v2838_v63 = vadd.f32 %v2836_v54, %v2832_v30  ;;  %v2943_v20 = vadd.f32 %v2941_v0, %v2937_v57  ;;  %v2888_v36 = vadd.f32 %v2886_v16, %v2882_v46 }
 0x4f7   : > { %v2642_v41 = vmul.f32 %v2640_v59, %v6228_v2  ;;  %v2692_v3 = vmul.f32 %v2690_v18, %v6228_v2  ;;  %v2742_v32 = vmul.f32 %v2740_v35, %v6228_v2  ;;  %v2792_v55 = vmul.f32 %v2790_v44, %v6228_v2 }
 0x4f8   : > { %v2375_v49 = vpop.permute.xlu0 %2374  ;;  %v2647_v4 = vmul.f32 %v2646_v31, %v2619_v42  ;;  %v2697_v58 = vmul.f32 %v2696_v33, %v2619_v42  ;;  %v2747_v48 = vmul.f32 %v2746_v51, %v2619_v42  ;;  %v2797_v59 = vmul.f32 %v2796_v24, %v2619_v42 }
 0x4f9   : > { %v2413_v18 = vadd.f32 %v2375_v49, %v5983_v60  ;;  %v2377_v35 = vpop.permute.xlu1 %2376  ;;  %v2644_v30 = vadd.f32 %v2642_v41, %v2638_v14  ;;  %v2694_v57 = vadd.f32 %v2692_v3, %v2688_v22  ;;  %v2744_v44 = vadd.f32 %v2742_v32, %v2738_v29 }
 0x4fa   : > { %v2414_v28 = vadd.f32 %v2377_v35, %v5980_v7  ;;  %v2649_v46 = vadd.f32 %v2647_v4, %v2643_v62  ;;  %v2699_v11 = vadd.f32 %v2697_v58, %v2693_v10  ;;  %v2749_v5 = vadd.f32 %v2747_v48, %v2743_v50 }
 0x4fb   : > { %v2799_v43 = vadd.f32 %v2797_v59, %v2793_v38  ;;  %v7177_v21 = vstv %s7174_s19  ;;  %v2794_v12 = vadd.f32 %v2792_v55, %v2788_v6  ;;  %v7178_v8 = vstv %s7118_s9 }
 0x4fc   : > { %v2847_v9 = vmul.f32 %v7177_v21, %v2619_v42  ;;  %v2897_v23 = vmul.f32 %v7178_v8, %v2619_v42  ;;  %v2580_v60 = vpop.permute.xlu0 %2579  ;;  %v2842_v14 = vmul.f32 %v2840_v26, %v6228_v2  ;;  %v7179_v22 = vstv %s7175_s16 }
 0x4fd   : > { %v2947_v7 = vmul.f32 %v7179_v22, %v2619_v42  ;;  %v2892_v29 = vmul.f32 %v2890_v15, %v6228_v2  ;;  %v2993_v62 = vadd.f32 %v2991_v19, %v2987_v1  ;;  %v6266_v10 = vadd.f32 %v2580_v60, %v2411_v45  ;;  %v2582_v6 = vpop.permute.xlu1 %2581 }
 0x4fe   : > { %v2849_v50 = vadd.f32 %v2847_v9, %v2843_v56  ;;  %v2899_v38 = vadd.f32 %v2897_v23, %v2893_v13  ;;  %v7184_v53 = vstv %s7176_s23  ;;  %v2621_v0 = vadd.f32 %v2582_v6, %v2412_v47 }
 0x4ff   : > { %v2997_v54 = vmul.f32 %v7184_v53, %v2619_v42  ;;  %v2844_v26 = vadd.f32 %v2842_v14, %v2838_v63  ;;  %v2949_v16 = vadd.f32 %v2947_v7, %v2943_v20  ;;  %v2894_v25 = vadd.f32 %v2892_v29, %v2888_v36 }
 0x500   : > { %v2648_v41 = vmul.f32 %v2646_v31, %v6266_v10  ;;  %v2698_v15 = vmul.f32 %v2696_v33, %v6266_v10  ;;  %v2748_v45 = vmul.f32 %v2746_v51, %v6266_v10  ;;  %v2798_v1 = vmul.f32 %v2796_v24, %v6266_v10  ;;  %v2379_v56 = vpop.permute.xlu0 %2378 }
 0x501   : > { %v7186_v13 = vstv %s7180_s24  ;;  %v7187_v47 = vstv %s7181_s12  ;;  %v7189_v63 = vstv %s7182_s20  ;;  %v7190_v36 = vstv %s7183_s3  ;;  %v2381_v51 = vpop.permute.xlu1 %2380  ;;  %s7235_s24 = sld [smem:[#allocation84_spill]]  ;;  %s7238_s12 = sld [smem:[#allocation113_spill]] }
 0x502   : > { %v2653_v19 = vmul.f32 %v7186_v13, %v2621_v0  ;;  %v2703_v42 = vmul.f32 %v7187_v47, %v2621_v0  ;;  %v2753_v20 = vmul.f32 %v7189_v63, %v2621_v0  ;;  %v2803_v31 = vmul.f32 %v7190_v36, %v2621_v0  ;;  %s7239_s20 = sld [smem:[#allocation114_spill]]  ;;  %s7240_s3 = sld [smem:[#allocation97_spill]] }
 0x503   : > { %v2415_v33 = vadd.f32 %v2379_v56, %v5995_v52  ;;  %v2650_v3 = vadd.f32 %v2648_v41, %v2644_v30  ;;  %v2700_v32 = vadd.f32 %v2698_v15, %v2694_v57  ;;  %v2750_v24 = vadd.f32 %v2748_v45, %v2744_v44 }
 0x504   : > { %v2416_v55 = vadd.f32 %v2381_v51, %v5986_v37  ;;  %v2655_v49 = vadd.f32 %v2653_v19, %v2649_v46  ;;  %v2705_v4 = vadd.f32 %v2703_v42, %v2699_v11  ;;  %v2755_v58 = vadd.f32 %v2753_v20, %v2749_v5  ;;  %v2584_v52 = vpop.permute.xlu0 %2583 }
 0x505   : > { %v2805_v48 = vadd.f32 %v2803_v31, %v2799_v43  ;;  %v7191_v59 = vstv %s7185_s6  ;;  %v2800_v21 = vadd.f32 %v2798_v1, %v2794_v12  ;;  %v7192_v9 = vstv %s7188_s5  ;;  %v2586_v43 = vpop.permute.xlu1 %2585  ;;  %v7208_v31 = vld [vmem:[#allocation72_spill] sm:$0xff] }
 0x506   : > { %v2853_v35 = vmul.f32 %v7191_v59, %v2621_v0  ;;  %v2903_v8 = vmul.f32 %v7192_v9, %v2621_v0  ;;  %v7193_v23 = vstv %s7174_s19  ;;  %v7194_v57 = vstv %s7131_s17  ;;  %s7229_s19 = sld [smem:[#allocation108_spill]] }
 0x507   : > { %v2848_v30 = vmul.f32 %v7193_v23, %v6266_v10  ;;  %v2953_v37 = vmul.f32 %v7194_v57, %v2621_v0  ;;  %v7195_v44 = vstv %s7118_s9  ;;  %v2999_v11 = vadd.f32 %v2997_v54, %v2993_v62  ;;  %s7214_s9 = sld [smem:[#allocation82_spill]] }
 0x508   : > { %v2898_v46 = vmul.f32 %v7195_v44, %v6266_v10  ;;  %v6304_v5 = vadd.f32 %v2584_v52, %v2413_v18  ;;  %v2855_v12 = vadd.f32 %v2853_v35, %v2849_v50  ;;  %v2905_v60 = vadd.f32 %v2903_v8, %v2899_v38  ;;  %v2383_v50 = vpop.permute.xlu0 %2382 }
 0x509   : > { %v7199_v14 = vstv %s7133_s2  ;;  %v2623_v7 = vadd.f32 %v2586_v43, %v2414_v28  ;;  %v2850_v29 = vadd.f32 %v2848_v30, %v2844_v26  ;;  %v2955_v6 = vadd.f32 %v2953_v37, %v2949_v16  ;;  %v2385_v42 = vpop.permute.xlu1 %2384 }
 0x50a   : > { %v3003_v22 = vmul.f32 %v7199_v14, %v2621_v0  ;;  %v2900_v53 = vadd.f32 %v2898_v46, %v2894_v25  ;;  %v7200_v41 = vmov %v7186_v13  ;;  %v7201_v45 = vmov %v7187_v47 }
 0x50b   : > { %v2654_v15 = vmul.f32 %v7200_v41, %v6304_v5  ;;  %v2704_v62 = vmul.f32 %v7201_v45, %v6304_v5  ;;  %v7202_v18 = vmov %v7189_v63  ;;  %v7203_v1 = vmov %v7190_v36 }
 0x50c   : > { %v2754_v54 = vmul.f32 %v7202_v18, %v6304_v5  ;;  %v2804_v56 = vmul.f32 %v7203_v1, %v6304_v5  ;;  %v7204_v38 = vstv %s7196_s26  ;;  %v7205_v28 = vstv %s7197_s27  ;;  %s7275_s26 = sld [smem:[#allocation112_spill]]  ;;  %s7282_s27 = sld [smem:[#allocation29_spill]] }
 0x50d   : > { %v2659_v0 = vmul.f32 %v7204_v38, %v2623_v7  ;;  %v2709_v26 = vmul.f32 %v7205_v28, %v2623_v7  ;;  %v7206_v16 = vstv %s7198_s10  ;;  %v7207_v13 = vstv %s7135_s22  ;;  %s7230_s22 = sld [smem:[#allocation111_spill]] }
 0x50e   : > { %v2759_v25 = vmul.f32 %v7206_v16, %v2623_v7  ;;  %v2809_v19 = vmul.f32 %v7207_v13, %v2623_v7  ;;  %v2417_v47 = vadd.f32 %v2383_v50, %v5998_v17  ;;  %v2656_v63 = vadd.f32 %v2654_v15, %v2650_v3  ;;  %v2588_v17 = vpop.permute.xlu0 %2587  ;;  %s7285_s10 = sld [smem:[#allocation103_spill]] }
 0x50f   : > { %v2706_v20 = vadd.f32 %v2704_v62, %v2700_v32  ;;  %v2756_v36 = vadd.f32 %v2754_v54, %v2750_v24  ;;  %v2418_v51 = vadd.f32 %v2385_v42, %v7208_v31  ;;  %v2661_v59 = vadd.f32 %v2659_v0, %v2655_v49 }
 0x510   : > { %v2711_v35 = vadd.f32 %v2709_v26, %v2705_v4  ;;  %v2761_v9 = vadd.f32 %v2759_v25, %v2755_v58  ;;  %v2811_v8 = vadd.f32 %v2809_v19, %v2805_v48  ;;  %v7209_v52 = vstv %s7136_s21  ;;  %v7228_v26 = vld [vmem:[#allocation74_spill] sm:$0xff] }
 0x511   : > { %v2859_v23 = vmul.f32 %v7209_v52, %v2623_v7  ;;  %v2806_v30 = vadd.f32 %v2804_v56, %v2800_v21  ;;  %v7210_v57 = vstv %s7137_s29  ;;  %v7211_v44 = vstv %s7185_s6  ;;  %v2590_v21 = vpop.permute.xlu1 %2589  ;;  %s7244_s6 = sld [smem:[#allocation99_spill]] }
 0x512   : > { %v2909_v37 = vmul.f32 %v7210_v57, %v2623_v7  ;;  %v2854_v3 = vmul.f32 %v7211_v44, %v6304_v5  ;;  %v7212_v32 = vstv %s6002_s1  ;;  %v7213_v49 = vstv %s7188_s5  ;;  %s7264_s5 = sld [smem:[#allocation89_spill]] }
 0x513   : > { %v2959_v24 = vmul.f32 %v7212_v32, %v2623_v7  ;;  %v2904_v4 = vmul.f32 %v7213_v49, %v6304_v5  ;;  %v6342_v58 = vadd.f32 %v3003_v22, %v2999_v11  ;;  %v6344_v48 = vadd.f32 %v2588_v17, %v2415_v33 }
 0x514   : > { %v2861_v46 = vadd.f32 %v2859_v23, %v2855_v12  ;;  %v2911_v43 = vadd.f32 %v2909_v37, %v2905_v60  ;;  %v7216_v14 = vstv %s6004_s28  ;;  %v6350_v15 = vadd.f32 %v2590_v21, %v2416_v55  ;;  %v2387_v55 = vpop.permute.xlu0 %2386 }
 0x515   : > { %v6348_v41 = vmul.f32 %v7216_v14, %v2623_v7  ;;  %v6352_v45 = vadd.f32 %v2854_v3, %v2850_v29  ;;  %v6354_v62 = vadd.f32 %v2959_v24, %v2955_v6  ;;  %v6356_v18 = vadd.f32 %v2904_v4, %v2900_v53  ;;  %v2594_v25 = vpop.permute.xlu1 %2593 }
 0x516   : > { %v7217_v11 = vmov %v7204_v38  ;;  %v7218_v22 = vmov %v7205_v28  ;;  %v7219_v12 = vmov %v7206_v16  ;;  %v7220_v7 = vmov %v7207_v13 }
 0x517   : > { %v2660_v33 = vmul.f32 %v7217_v11, %v6344_v48  ;;  %v2710_v54 = vmul.f32 %v7218_v22, %v6344_v48  ;;  %v2760_v60 = vmul.f32 %v7219_v12, %v6344_v48  ;;  %v2810_v1 = vmul.f32 %v7220_v7, %v6344_v48 }
 0x518   : > { %v7222_v29 = vstv %s7214_s9  ;;  %v7223_v53 = vstv %s6006_s7  ;;  %v7225_v50 = vstv %s6009_s30  ;;  %v7226_v0 = vstv %s7215_s8  ;;  %s7251_s7 = sld [smem:[#allocation87_spill]]  ;;  %s7262_s30 = sld [smem:[#allocation107_spill]] }
 0x519   : > { %v2665_v6 = vmul.f32 %v7222_v29, %v6350_v15  ;;  %v2715_v56 = vmul.f32 %v7223_v53, %v6350_v15  ;;  %v2765_v38 = vmul.f32 %v7225_v50, %v6350_v15  ;;  %v2815_v28 = vmul.f32 %v7226_v0, %v6350_v15 }
 0x51a   : > { %v2419_v16 = vadd.f32 %v2387_v55, %v7228_v26  ;;  %v2662_v13 = vadd.f32 %v2660_v33, %v2656_v63  ;;  %v2712_v19 = vadd.f32 %v2710_v54, %v2706_v20  ;;  %v2762_v42 = vadd.f32 %v2760_v60, %v2756_v36  ;;  %v2592_v63 = vpop.permute.xlu0 %2591 }
 0x51b   : > { %v6383_v31 = vadd.f32 %v2594_v25, %v2418_v51  ;;  %v2667_v52 = vadd.f32 %v2665_v6, %v2661_v59  ;;  %v2717_v23 = vadd.f32 %v2715_v56, %v2711_v35  ;;  %v2767_v57 = vadd.f32 %v2765_v38, %v2761_v9 }
 0x51c   : > { %v2817_v37 = vadd.f32 %v2815_v28, %v2811_v8  ;;  %v7231_v17 = vstv %s7221_s13  ;;  %v2812_v3 = vadd.f32 %v2810_v1, %v2806_v30  ;;  %v7232_v32 = vstv %s7224_s18 }
 0x51d   : > { %v2865_v44 = vmul.f32 %v7231_v17, %v6350_v15  ;;  %v2915_v24 = vmul.f32 %v7232_v32, %v6350_v15  ;;  %v7233_v20 = vstv %s7227_s14  ;;  %v7234_v51 = vstv %s7229_s19  ;;  %s3991_s19 = smov [#allocation11]  }
 0x51e   : > { %v2671_v36 = vmul.f32 %v7233_v20, %v6383_v31  ;;  %v2721_v59 = vmul.f32 %v7234_v51, %v6383_v31  ;;  %v7236_v35 = vstv %s7140_s0  ;;  %v7237_v8 = vstv %s7230_s22  ;;  %s7259_s0 = sld [smem:[#allocation101_spill]]  ;;  %s3910_s22 = sshll.u32 %s3991_s19, 4  ;;  %s3911_s22 = int_to_ptr.vmem [resolvable:$false] %s3910_s22 }
 0x51f   : > { %v2771_v9 = vmul.f32 %v7236_v35, %v6383_v31  ;;  %v2821_v30 = vmul.f32 %v7237_v8, %v6383_v31  ;;  %v6403_v49 = vadd.f32 %v2592_v63, %v2417_v47  ;;  %v2867_v4 = vadd.f32 %v2865_v44, %v2861_v46 }
 0x520   : > { %v7241_v21 = vstv %s7144_s25  ;;  %v2917_v11 = vadd.f32 %v2915_v24, %v2911_v43  ;;  %v2673_v33 = vadd.f32 %v2671_v36, %v2667_v52  ;;  %v2723_v22 = vadd.f32 %v2721_v59, %v2717_v23  ;;  %v2596_v43 = vpop.permute.xlu0 %2595 }
 0x521   : > { %v2871_v14 = vmul.f32 %v7241_v21, %v6383_v31  ;;  %v2773_v54 = vadd.f32 %v2771_v9, %v2767_v57  ;;  %v2823_v12 = vadd.f32 %v2821_v30, %v2817_v37  ;;  %v7242_v60 = vmov %v7222_v29 }
 0x522   : > { %v2666_v7 = vmul.f32 %v7242_v60, %v6403_v49  ;;  %v7243_v1 = vmov %v7223_v53  ;;  %v7245_v47 = vmov %v7225_v50  ;;  %v7246_v6 = vstv %s7235_s24  ;;  %s3912_s24 = scalar_lea.vmem %s3911_s22, 4096 }
 0x523   : > { %v2716_v55 = vmul.f32 %v7243_v1, %v6403_v49  ;;  %v2766_v29 = vmul.f32 %v7245_v47, %v6403_v49  ;;  %v2873_v46 = vadd.f32 %v2871_v14, %v2867_v4  ;;  %v6419_v53 = vadd.f32 %v7246_v6, %v2673_v33 }
 0x524   : > { %v7247_v56 = vstv %s7238_s12  ;;  %v7248_v38 = vstv %s7239_s20  ;;  %v7249_v28 = vstv %s7240_s3  ;;  %v6433_v25 = vadd.f32 %v2596_v43, %v2419_v16  ;;  %v6478_v43 = vpop.permute.xlu1 %3157 }
 0x525   : > { %v6423_v50 = vadd.f32 %v7247_v56, %v2723_v22  ;;  %v6427_v0 = vadd.f32 %v7248_v38, %v2773_v54  ;;  %v6431_v26 = vadd.f32 %v7249_v28, %v2823_v12  ;;  %v2668_v52 = vadd.f32 %v2666_v7, %v2662_v13 }
 0x526   : > { %v2718_v23 = vadd.f32 %v2716_v55, %v2712_v19  ;;  %v2768_v57 = vadd.f32 %v2766_v29, %v2762_v42  ;;  %v3606_v37 = vmul.f32 -1.442695, %v6419_v53  ;;  %v7250_v32 = vstv %s7244_s6 }
 0x527   : > { %v3608_v17 = vmul.f32 -1.442695, %v6423_v50  ;;  %v3610_v44 = vmul.f32 -1.442695, %v6427_v0  ;;  %v6440_v24 = vadd.f32 %v7250_v32, %v2873_v46  ;;  %v7252_v63 = vmov %v7233_v20 }
 0x528   : > { %v2672_v20 = vmul.f32 %v7252_v63, %v6433_v25  ;;  %v7253_v16 = vmov %v7234_v51  ;;  %v3612_v19 = vmul.f32 -1.442695, %v6431_v26  ;;  %v7254_v42 = vmov %v7236_v35 }
 0x529   : > { %v2722_v13 = vmul.f32 %v7253_v16, %v6433_v25  ;;  %v2772_v36 = vmul.f32 %v7254_v42, %v6433_v25  ;;  %3782 = vpow2.f32 %v3606_v37  ;;  %v3614_v51 = vmul.f32 -1.442695, %v6440_v24 }
 0x52a   : > { %v7255_v59 = vstv %s7215_s8  ;;  %v7256_v9 = vmov %v7237_v8  ;;  %3784 = vpow2.f32 %v3608_v17  ;;  %v2674_v30 = vadd.f32 %v2672_v20, %v2668_v52  ;;  %s7304_s8 = sld [smem:[#allocation124_spill]] }
 0x52b   : > { %v2816_v35 = vmul.f32 %v7255_v59, %v6403_v49  ;;  %v2822_v8 = vmul.f32 %v7256_v9, %v6433_v25  ;;  %v2724_v4 = vadd.f32 %v2722_v13, %v2718_v23  ;;  %v2774_v21 = vadd.f32 %v2772_v36, %v2768_v57 }
 0x52c   : > { %3786 = vpow2.f32 %v3610_v44  ;;  %v7257_v33 = vstv %s7251_s7  ;;  %v7258_v54 = vstv %s7136_s21  ;;  %v7260_v60 = vmov %v7246_v6  ;;  %s7274_s21 = sld [smem:[#allocation109_spill]] }
 0x52d   : > { %v2818_v14 = vadd.f32 %v2816_v35, %v2812_v3  ;;  %v2921_v22 = vmul.f32 %v7257_v33, %v6383_v31  ;;  %v2860_v12 = vmul.f32 %v7258_v54, %v6344_v48  ;;  %v6467_v7 = vadd.f32 %v7260_v60, %v2674_v30 }
 0x52e   : > { %v7261_v1 = vmov %v7247_v56  ;;  %3788 = vpow2.f32 %v3612_v19  ;;  %v7263_v47 = vmov %v7248_v38  ;;  %v7265_v52 = vstv %s7221_s13 }
 0x52f   : > { %v6471_v55 = vadd.f32 %v7261_v1, %v2724_v4  ;;  %v6475_v29 = vadd.f32 %v7263_v47, %v2774_v21  ;;  %3790 = vpow2.f32 %v3614_v51  ;;  %v2824_v3 = vadd.f32 %v2822_v8, %v2818_v14 }
 0x530   : > { %v2923_v46 = vadd.f32 %v2921_v22, %v2917_v11  ;;  %v2862_v6 = vadd.f32 %v2860_v12, %v6352_v45  ;;  %v3607_v56 = vmul.f32 -1.442695, %v6467_v7  ;;  %v2866_v23 = vmul.f32 %v7265_v52, %v6403_v49  ;;  %v6518_v12 = vpop.permute.xlu1 %3161 }
 0x531   : > { %v3609_v38 = vmul.f32 -1.442695, %v6471_v55  ;;  %v3611_v28 = vmul.f32 -1.442695, %v6475_v29  ;;  %v7266_v57 = vstv %s7240_s3  ;;  %v7267_v17 = vstv %s7259_s0 }
 0x532   : > { %v6488_v37 = vadd.f32 %v7266_v57, %v2824_v3  ;;  %v6492_v44 = vadd.f32 %v7267_v17, %v2923_v46  ;;  %v7268_v45 = vstv %s7144_s25  ;;  %v7269_v32 = vstv %s7262_s30  ;;  %s7272_s25 = sld [smem:[#allocation102_spill]] }
 0x533   : > { %v2872_v11 = vmul.f32 %v7268_v45, %v6433_v25  ;;  %v2965_v63 = vmul.f32 %v7269_v32, %v6350_v15  ;;  %3792 = vpow2.f32 %v3607_v56  ;;  %v2868_v20 = vadd.f32 %v2866_v23, %v2862_v6  ;;  %v3783_v4 = vpop.eup %3782 }
 0x534   : > { %v7270_v16 = vstv %s7264_s5  ;;  %v7271_v19 = vstv %s7137_s29  ;;  %3794 = vpow2.f32 %v3609_v38  ;;  %v3613_v36 = vmul.f32 -1.442695, %v6488_v37  ;;  %s7280_s29 = sld [smem:[#allocation36_spill]] }
 0x535   : > { %v2971_v13 = vmul.f32 %v7270_v16, %v6383_v31  ;;  %v2910_v42 = vmul.f32 %v7271_v19, %v6344_v48  ;;  %v3616_v51 = vmul.f32 -1.442695, %v6492_v44  ;;  %v2967_v59 = vadd.f32 %v2965_v63, %v6354_v62  ;;  %v3785_v62 = vpop.eup %3784 }
 0x536   : > { %3796 = vpow2.f32 %v3611_v28  ;;  %v2874_v35 = vadd.f32 %v2872_v11, %v2868_v20  ;;  %v7273_v8 = vstv %s7224_s18  ;;  %v7276_v14 = vmov %v7257_v33  ;;  %v3787_v47 = vpop.eup %3786 }
 0x537   : > { %v2912_v9 = vadd.f32 %v2910_v42, %v6356_v18  ;;  %v2916_v30 = vmul.f32 %v7273_v8, %v6403_v49  ;;  %3798 = vpow2.f32 %v3613_v36  ;;  %v2973_v21 = vadd.f32 %v2971_v13, %v2967_v59  ;;  %v6549_v59 = vpop.permute.xlu0 %3159 }
 0x538   : > { %v2922_v33 = vmul.f32 %v7276_v14, %v6433_v25  ;;  %v3011_v22 = vadd.f32 %v6348_v41, %v6342_v58  ;;  %v3077_v54 = vadd.f32 1.0, %v3783_v4  ;;  %3800 = vpow2.f32 %v3616_v51  ;;  %v3789_v28 = vpop.eup %3788 }
 0x539   : > { %v7277_v18 = vstv %s7244_s6  ;;  %v2918_v1 = vadd.f32 %v2916_v30, %v2912_v9  ;;  %v3079_v3 = vadd.f32 1.0, %v3785_v62  ;;  %v7278_v46 = vstv %s7272_s25  ;;  %v3791_v17 = vpop.eup %3790 }
 0x53a   : > { %v6522_v60 = vadd.f32 %v7277_v18, %v2874_v35  ;;  %v6526_v6 = vadd.f32 %v7278_v46, %v2973_v21  ;;  %v7279_v56 = vstv %s7274_s21  ;;  %v7281_v58 = vstv %s7275_s26  ;;  %v3166_v35 = vpop.permute.xlu1 %3165 }
 0x53b   : > { %v3015_v38 = vmul.f32 %v7279_v56, %v6350_v15  ;;  %v3021_v41 = vmul.f32 %v7281_v58, %v6383_v31  ;;  %3802 = vrcp.f32 %v3077_v54  ;;  %v3081_v52 = vadd.f32 1.0, %v3787_v47 }
 0x53c   : > { %v3615_v23 = vmul.f32 -1.442695, %v6522_v60  ;;  %v2924_v57 = vadd.f32 %v2922_v33, %v2918_v1  ;;  %3804 = vrcp.f32 %v3079_v3  ;;  %v3083_v45 = vadd.f32 1.0, %v3789_v28 }
 0x53d   : > { %v3618_v11 = vmul.f32 -1.442695, %v6526_v6  ;;  %v3017_v32 = vadd.f32 %v3015_v38, %v3011_v22  ;;  %3806 = vrcp.f32 %v3081_v52  ;;  %v3085_v15 = vadd.f32 1.0, %v3791_v17  ;;  %v3793_v51 = vpop.eup %3792 }
 0x53e   : > { %v7283_v63 = vstv %s7259_s0  ;;  %v7284_v31 = vstv %s7280_s29  ;;  %3808 = vrcp.f32 %v3083_v45  ;;  %v2942_v19 = vmul.f32 %v2940_v61, %v6228_v2  ;;  %v3795_v21 = vpop.eup %3794 }
 0x53f   : > { %v6538_v20 = vadd.f32 %v7283_v63, %v2924_v57  ;;  %v2936_v16 = vmul.f32 %v7284_v31, %v6175_v27  ;;  %v3023_v13 = vadd.f32 %v3021_v41, %v3017_v32  ;;  %v7286_v42 = vstv %s7282_s27  ;;  %v3170_v63 = vpop.permute.xlu1 %3169 }
 0x540   : > { %v2982_v36 = vmul.f32 %v7286_v42, %v6153_v34  ;;  %3810 = vrcp.f32 %v3085_v15  ;;  %v7287_v30 = vstv %s7175_s16  ;;  %v3078_v14 = vadd.f32 1.0, %v3793_v51  ;;  %v3797_v62 = vpop.eup %3796  ;;  %v6580_v15 = vpop.permute.xlu0 %3163 }
 0x541   : > { %v3617_v9 = vmul.f32 -1.442695, %v6538_v20  ;;  %v2938_v8 = vadd.f32 %v2936_v16, %v6191_v40  ;;  %v2948_v4 = vmul.f32 %v7287_v30, %v6266_v10  ;;  %3812 = vpow2.f32 %v3615_v23  ;;  %v3799_v47 = vpop.eup %3798 }
 0x542   : > { %v7289_v61 = vstv %s7285_s10  ;;  %v7290_v33 = vstv %s7131_s17  ;;  %v3080_v54 = vadd.f32 1.0, %v3795_v21  ;;  %3814 = vpow2.f32 %v3618_v11  ;;  %v3801_v58 = vpop.eup %3800  ;;  %s375_s17 = sand.u32 1, %s7288_s15  }
 0x543   : > { %v6558_v34 = vadd.f32 %v7289_v61, %v3023_v13  ;;  %v2954_v22 = vmul.f32 %v7290_v33, %v6304_v5  ;;  %v2944_v40 = vadd.f32 %v2942_v19, %v2938_v8  ;;  %v7291_v18 = vstv %s6002_s1  ;;  %s7303_s1 = sld [smem:[#allocation23_spill]]  ;;  %s6673_s18 = scalar_lea.sflag [#allocation4], %s375_s17 }
 0x544   : > { %v2960_v1 = vmul.f32 %v7291_v18, %v6344_v48  ;;  %3816 = vrcp.f32 %v3078_v14  ;;  %v3082_v3 = vadd.f32 1.0, %v3797_v62  ;;  %v7292_v56 = vstv %s7262_s30 }
 0x545   : > { %v3620_v46 = vmul.f32 -1.442695, %v6558_v34  ;;  %v2966_v38 = vmul.f32 %v7292_v56, %v6403_v49  ;;  %3818 = vrcp.f32 %v3080_v54  ;;  %v3084_v41 = vadd.f32 1.0, %v3799_v47  ;;  %v3803_v32 = vpop.eup %3802 }
 0x546   : > { %v2950_v28 = vadd.f32 %v2948_v4, %v2944_v40  ;;  %v7293_v52 = vstv %s7163_s4  ;;  %3820 = vrcp.f32 %v3082_v3  ;;  %v3087_v57 = vadd.f32 1.0, %v3801_v58  ;;  %v3805_v19 = vpop.eup %3804  ;;  %s6588_s4 = sshll.u32 %s375_s17, 7 }
 0x547   : > { %v2986_v23 = vmul.f32 %v7293_v52, %v6175_v27  ;;  %v7294_v17 = vstv %s7264_s5  ;;  %v2992_v11 = vmul.f32 %v2990_v39, %v6228_v2  ;;  %3822 = vrcp.f32 %v3084_v41  ;;  %v3807_v30 = vpop.eup %3806 }
 0x548   : > { %v2972_v45 = vmul.f32 %v7294_v17, %v6433_v25  ;;  %v2956_v31 = vadd.f32 %v2954_v22, %v2950_v28  ;;  %v7295_v13 = vstv %s7176_s23  ;;  %v3125_v42 = vmul.f32 %v3803_v32, %v6419_v53  ;;  %v3809_v21 = vpop.eup %3808 }
 0x549   : > { %v2988_v16 = vadd.f32 %v2986_v23, %v2982_v36  ;;  %v2998_v27 = vmul.f32 %v7295_v13, %v6266_v10  ;;  %3824 = vrcp.f32 %v3087_v57  ;;  %v7296_v39 = vstv %s7133_s2  ;;  %s7302_s2 = sld [smem:[#allocation20_spill]]  ;;  %p7305_p11 = scmp.ne.s32.totalorder %s7303_s1, 0 }
 0x54a   : > { %v3004_v2 = vmul.f32 %v7296_v39, %v6304_v5  ;;  %v7297_v51 = vstv %s6004_s28  ;;  %v3127_v36 = vmul.f32 %v3805_v19, %v6423_v50  ;;  %3826 = vpow2.f32 %v3617_v9  ;;  %v3811_v5 = vpop.eup %3810  ;;  %s6609_s28 = scalar_lea.vmem [#allocation11], %s6588_s4 }
 0x54b   : > { %v3010_v8 = vmul.f32 %v7297_v51, %v6344_v48  ;;  %v2962_v4 = vadd.f32 %v2960_v1, %v2956_v31  ;;  %v2994_v10 = vadd.f32 %v2992_v11, %v2988_v16  ;;  %v3205_v53 = vadd.f32 %v6478_v43, %v3125_v42  ;;  %v3813_v62 = vpop.eup %3812  ;;  %s3268_s16 = sshll.u32 %s6609_s28, 4  ;;  %s6667_s16 = int_to_ptr.vmem [resolvable:$true] %s3268_s16 }
 0x54c   : > { %v3129_v14 = vmul.f32 %v3807_v30, %v6427_v0  ;;  %3828 = vpow2.f32 %v3620_v46  ;;  %v7298_v61 = vstv %s7274_s21  ;;  %v3207_v22 = vadd.f32 %v6518_v12, %v3127_v36  ;;  %v3815_v1 = vpop.eup %3814  ;;  %v3174_v46 = vpop.permute.xlu1 %3173  ;;  %s3906_s14 = scalar_lea.vmem %s6667_s16, 2048  ;;  %p3913_p2 = scmp.lt.s32.totalorder %s6667_s16, %s3911_s22 }
 0x54d   : > { %v3016_v33 = vmul.f32 %v7298_v61, %v6403_v49  ;;  %v3131_v48 = vmul.f32 %v3809_v21, %v6431_v26  ;;  %v2968_v50 = vadd.f32 %v2966_v38, %v2962_v4  ;;  %v3000_v9 = vadd.f32 %v2998_v27, %v2994_v10  ;;  %v3168_v49 = vpop.permute.xlu0 %3167  ;;  %p3907_p8 = scmp.ne.s32.totalorder %s6667_s16, %s3906_s14  ;;  %p3914_p3 = scmp.lt.s32.totalorder %s3912_s24, %s3906_s14 }
 0x54e   : > { %v3221_v54 = vmax.f32 %v3205_v53, 0.0  ;;  %v3209_v40 = vadd.f32 %v3166_v35, %v3129_v14  ;;  %v3133_v18 = vmul.f32 %v3811_v5, %v6440_v24  ;;  %v7299_v43 = vstv %s7275_s26  ;;  %v3817_v26 = vpop.eup %3816 }
 0x54f   : > { %v3022_v0 = vmul.f32 %v7299_v43, %v6433_v25  ;;  %v3223_v47 = vmax.f32 %v3207_v22, 0.0  ;;  %v3211_v3 = vadd.f32 %v3170_v63, %v3131_v48  ;;  %v3086_v12 = vadd.f32 1.0, %v3813_v62  ;;  %v3819_v58 = vpop.eup %3818  ;;  %s3628_s11 = sshll.u32 %s7302_s2, 11  ;;  %p3908_p13 = pnand %p3907_p8, %p7305_p11 }
 0x550   : > { %v2974_v56 = vadd.f32 %v2972_v45, %v2968_v50  ;;  %3238 = vst.msk [vmem:[%s6609_s28] sm:$0xff] %vm3237_vm6, %v3221_v54  ;;  %v3225_v24 = vmax.f32 %v3209_v40, 0.0  ;;  %v3213_v35 = vadd.f32 %v3174_v46, %v3133_v18  ;;  %v3089_v38 = vadd.f32 1.0, %v3815_v1  ;;  %v3821_v57 = vpop.eup %3820  ;;  %s6665_s13 = scalar_lea.hbm %s7304_s8, %s3628_s11  ;;  %p3915_p4 = por %p3914_p3, %p3913_p2 }
 0x551   : > { %v3006_v25 = vadd.f32 %v3004_v2, %v3000_v9  ;;  %3240 = vst.msk [vmem:[%s6609_s28 + $0x10] sm:$0xff] %vm3237_vm6, %v3223_v47  ;;  %v3126_v41 = vmul.f32 %v3817_v26, %v6467_v7  ;;  %v3227_v28 = vmax.f32 %v3211_v3, 0.0  ;;  %3830 = vrcp.f32 %v3086_v12  ;;  %v3823_v32 = vpop.eup %3822  ;;  %p3909_p1 = pneg %p3908_p13 }
 0x552   : > { %v7300_v52 = vstv %s7272_s25  ;;  %3242 = vst.msk [vmem:[%s6609_s28 + $0x20] sm:$0xff] %vm3237_vm6, %v3225_v24  ;;  %v3128_v17 = vmul.f32 %v3819_v58, %v6471_v55  ;;  %v3229_v45 = vmax.f32 %v3213_v35, 0.0  ;;  %3832 = vrcp.f32 %v3089_v38 }
 0x553   : > { %v6618_v23 = vadd.f32 %v7300_v52, %v2974_v56  ;;  %v3012_v11 = vadd.f32 %v3010_v8, %v3006_v25  ;;  %v3206_v63 = vadd.f32 %v6549_v59, %v3126_v41  ;;  %3244 = vst.msk [vmem:[%s6609_s28 + $0x30] sm:$0xff] %vm3237_vm6, %v3227_v28  ;;  %v3130_v7 = vmul.f32 %v3821_v57, %v6475_v29  ;;  %v3825_v16 = vpop.eup %3824  ;;  %v3172_v59 = vpop.permute.xlu0 %3171  ;;  %p3916_p9 = pnand %p3915_p4, %p3909_p1 }
 0x554   : > { %v3208_v13 = vadd.f32 %v6580_v15, %v3128_v17  ;;  %3246 = vst.msk [vmem:[%s6609_s28 + $0x40] sm:$0xff] %vm3237_vm6, %v3229_v45  ;;  %v3132_v55 = vmul.f32 %v3823_v32, %v6488_v37  ;;  %v3827_v19 = vpop.eup %3826  ;;  %v3135_v2 = vmul.f32 %v3825_v16, %v6492_v44  ;;  %v3178_v8 = vpop.permute.xlu1 %3177  ;;  %v7301_v44 = vstv %s7285_s10 }
 0x555   : > { %v3619_v31 = vmul.f32 -1.442695, %v6618_v23  ;;  %v3018_v27 = vadd.f32 %v3016_v33, %v3012_v11  ;;  %v3222_v42 = vmax.f32 %v3206_v63, 0.0  ;;  %v3210_v39 = vadd.f32 %v3168_v49, %v3130_v7 }
 0x556   : > { %v3829_v29 = vpop.eup %3828  ;;  %v3224_v51 = vmax.f32 %v3208_v13, 0.0  ;;  %v3212_v15 = vadd.f32 %v3172_v59, %v3132_v55  ;;  %v3088_v30 = vadd.f32 1.0, %v3827_v19  ;;  %v3215_v4 = vadd.f32 %v3178_v8, %v3135_v2 }
 0x557   : > { %3834 = vpow2.f32 %v3619_v31  ;;  %v3024_v36 = vadd.f32 %v3022_v0, %v3018_v27  ;;  %3239 = vst.msk [vmem:[%s6609_s28 + $0x8] sm:$0xff] %vm3237_vm6, %v3222_v42  ;;  %v3226_v37 = vmax.f32 %v3210_v39, 0.0  ;;  %v3091_v10 = vadd.f32 1.0, %v3829_v29  ;;  %v3176_v48 = vpop.permute.xlu0 %3175 }
 0x558   : > { %3241 = vst.msk [vmem:[%s6609_s28 + $0x18] sm:$0xff] %vm3237_vm6, %v3224_v51  ;;  %v3228_v21 = vmax.f32 %v3212_v15, 0.0  ;;  %3836 = vrcp.f32 %v3088_v30  ;;  %v3231_v14 = vmax.f32 %v3215_v4, 0.0  ;;  %v3182_v62 = vpop.permute.xlu1 %3181 }
 0x559   : > { %v3028_v53 = vadd.f32 %v7301_v44, %v3024_v36  ;;  %3243 = vst.msk [vmem:[%s6609_s28 + $0x28] sm:$0xff] %vm3237_vm6, %v3226_v37  ;;  %3838 = vrcp.f32 %v3091_v10 }
 0x55a   : > { %3245 = vst.msk [vmem:[%s6609_s28 + $0x38] sm:$0xff] %vm3237_vm6, %v3228_v21  ;;  %3248 = vst.msk [vmem:[%s6609_s28 + $0x50] sm:$0xff] %vm3237_vm6, %v3231_v14 }
 0x55b   : > { %v3621_v61 = vmul.f32 -1.442695, %v3028_v53  ;;  %v3831_v33 = vpop.eup %3830  ;;  %v3180_v3 = vpop.permute.xlu0 %3179 }
 0x55c   : > { %v3833_v5 = vpop.eup %3832  ;;  %v3134_v22 = vmul.f32 %v3831_v33, %v6522_v60  ;;  %v3186_v46 = vpop.permute.xlu1 %3185 }
 0x55d   : > { %3840 = vpow2.f32 %v3621_v61  ;;  %v3137_v50 = vmul.f32 %v3833_v5, %v6526_v6 }
 0x55e   : > { %v3214_v9 = vadd.f32 %v3176_v48, %v3134_v22 }
 0x55f   : > { %v3217_v40 = vadd.f32 %v3182_v62, %v3137_v50  ;;  %v3184_v38 = vpop.permute.xlu0 %3183 }
 0x560   : > { %v3230_v18 = vmax.f32 %v3214_v9, 0.0 }
 0x561   : > { %v3835_v54 = vpop.eup %3834  ;;  %v3233_v0 = vmax.f32 %v3217_v40, 0.0 }
 0x562   : > { %v3090_v43 = vadd.f32 1.0, %v3835_v54  ;;  %v3837_v1 = vpop.eup %3836  ;;  %3247 = vst.msk [vmem:[%s6609_s28 + $0x48] sm:$0xff] %vm3237_vm6, %v3230_v18 }
 0x563   : > { %v3839_v47 = vpop.eup %3838  ;;  %3250 = vst.msk [vmem:[%s6609_s28 + $0x60] sm:$0xff] %vm3237_vm6, %v3233_v0  ;;  %v3136_v60 = vmul.f32 %v3837_v1, %v6538_v20  ;;  %v3188_v52 = vpop.permute.xlu0 %3187 }
 0x564   : > { %3842 = vrcp.f32 %v3090_v43  ;;  %v3139_v6 = vmul.f32 %v3839_v47, %v6558_v34 }
 0x565   : > { %v3216_v49 = vadd.f32 %v3180_v3, %v3136_v60 }
 0x566   : > { %v3219_v56 = vadd.f32 %v3186_v46, %v3139_v6 }
 0x567   : > { %v3841_v12 = vpop.eup %3840  ;;  %v3232_v26 = vmax.f32 %v3216_v49, 0.0 }
 0x568   : > { %v3092_v24 = vadd.f32 1.0, %v3841_v12  ;;  %v3235_v35 = vmax.f32 %v3219_v56, 0.0 }
 0x569   : > { %3249 = vst.msk [vmem:[%s6609_s28 + $0x58] sm:$0xff] %vm3237_vm6, %v3232_v26 }
 0x56a   : > { %3844 = vrcp.f32 %v3092_v24  ;;  %3252 = vst.msk [vmem:[%s6609_s28 + $0x70] sm:$0xff] %vm3237_vm6, %v3235_v35 }
 0x56e   : > { %v3843_v20 = vpop.eup %3842 }
 0x56f   : > { %v3138_v34 = vmul.f32 %v3843_v20, %v6618_v23 }
 0x571   : > { %v3218_v25 = vadd.f32 %v3184_v38, %v3138_v34 }
 0x573   : > { %v3234_v58 = vmax.f32 %v3218_v25, 0.0 }
 0x574   : > { %v3845_v41 = vpop.eup %3844 }
 0x575   : > { %3251 = vst.msk [vmem:[%s6609_s28 + $0x68] sm:$0xff] %vm3237_vm6, %v3234_v58  ;;  %v3140_v28 = vmul.f32 %v3845_v41, %v3028_v53 }
 0x577   : > { %v3220_v57 = vadd.f32 %v3188_v52, %v3140_v28 }
 0x579   : > { %v3236_v23 = vmax.f32 %v3220_v57, 0.0 }
 0x57b   : > { %3253 = vst.msk [vmem:[%s6609_s28 + $0x78] sm:$0xff] %vm3237_vm6, %v3236_v23 }
 0x57c   : > { %3919 = shalt.err (!%p3916_p9)
}
 0x57d   : > { %s3920_s12 = scalar_lea.hbm %s6665_s13, 2048  ;;  %s3924_s6 = scalar_lea.hbm %s7304_s8, 4096 }
 0x57e   : > { %p3921_p7 = scmp.ne.s32.totalorder %s6665_s13, %s3920_s12  ;;  %p3925_p6 = scmp.lt.u32.totalorder %s6665_s13, %s7304_s8 }
 0x57f   : > { %p3926_p12 = scmp.lt.u32.totalorder %s3924_s6, %s3920_s12  ;;  %p3928_p8 = scmp.lt.u32.totalorder %s3920_s12, %s6665_s13 }
 0x580   : > { %p3922_p0 = pnand %p3921_p7, %p7305_p11 }
 0x581   : > { %p3927_p10 = por %p3926_p12, %p3925_p6 }
 0x582   : > { %p3923_p5 = pneg %p3922_p0 }
 0x583   : > { %p3929_p13 = por %p3928_p8, %p3927_p10 }
 0x585   : > { %p3930_p1 = pnand %p3929_p13, %p3923_p5 }
 0x587   : > { %3933 = shalt.err (!%p3930_p1)
}
 0x588   : > { %s3992_s30 = smov 128   ;;  %s3993_s5 = smov 8  }
 0x589   : > { %3645 = dma.vmem_to_hbm [thread:$0]  (%p7305_p11), %s6667_s16, 2048, %s6665_s13, %s6673_s18, %s3992_s30, %s3992_s30, %s3993_s5  }
 0x58a PF: > { %s7306_s25 = sld [smem:[#allocation19_spill]]  ;;  %s7307_s21 = sld [smem:[#allocation16_spill]] }
 0x58b   : > { %s7308_s26 = sld [smem:[#allocation24_spill]] }
 0x590   : > { %p3672_p2 = scmp.ge.s32.totalorder %s7306_s25, 2  ;;  %s3283_s29 = sand.u32 1, %s7307_s21  }
 0x591   : > { %p7309_p3 = scmp.ne.s32.totalorder %s7308_s26, 0  ;;  %s3284_s27 = scalar_lea.sflag [#allocation4], %s3283_s29 }
 0x593   : > { %p3661_p4 = pnand %p3672_p2, %p7309_p3 }
 0x595   : > { %3963 = dma.done.wait (!%p3661_p4), %s3284_s27, 2048  }
 0x596   : > { %3965 = vsyncadd (!%p3661_p4), %s3284_s27, 4294965248  ;;  %s7310_s12 = sld [smem:[#allocation21_spill]]  ;;  %s7311_s30 = sld [smem:[#allocation17_spill]] }
 0x597   : > { %s7312_s10 = sld [smem:[#allocation18_spill]]  ;;  %s7313_s11 = sld [smem:[#allocation22_spill]] }
 0x59c   : > { %p22_p9 = scmp.ge.s32.totalorder %s7310_s12, 4  }
 0x59e   :  { %24 = sbr.rel (!%p22_p9) target bundleno = 17 (0x11), region = 116 }
 0x5a5   :  { %3289 = vsyncpa [#allocation4], 1 }
 0x5a6   :  { %3291 = vsyncpa [#allocation4 + $0x1], 1 }
 0x5a7   :  { %3292 = vsyncpa [#allocation5], 1 }
 0x5a8   :  { %3294 = vsyncpa [#allocation5 + $0x1], 1 }
 0x5a9   :  { %3295 = vsyncpa [#allocation7], 1 }
 0x5aa   :  { %3296 = vsyncpa [#allocation10], 1 }

</bundles_post_ra>
